<compile_context>
chip_gen: v7x
topology: tpu7x:2x2x1
jax: 0.10.0
libtpu: 0.0.40
codegen_flags: <defaults>
</compile_context>

<pallas_src>
import jax
import jax.numpy as jnp
from jax import lax
from jax.experimental import pallas as pl
from jax.experimental.pallas import tpu as pltpu

# ----------------------- configuration (small shapes) -----------------------
VOCAB = 50      # vocab_size
EMB = 16        # embedding_size
HID = 32        # hidden_size
B = 4           # batch
T = 8           # sequence length

GP = 128        # per-gate lane padding (lane-tile aligned gate slices)
NGATE = 3       # r, z, n
GW = NGATE * GP          # 384 = per-direction gate width
BP = 8          # batch padded to one sublane tile
HBOFF = 64      # lane offset of h_bwd inside the packed 128-lane hidden tile
assert HID <= HBOFF and HBOFF + HID <= GP


# ------------------------------- Pallas kernel ------------------------------
def gru_fused_kernel(tok_ref, tok_tm_ref, gi_tab_ref, whh_ref, bhh_ref,
                     fc1w_ref, fc1b_ref, fc2w_ref, fc2b_ref,
                     out_ref, gi_ref):
    Bp, T_ = tok_ref.shape            # (8, T)
    V = gi_tab_ref.shape[0]           # padded vocab
    Bo = out_ref.shape[0]             # real batch

    # ---- sequence lengths (reproduces PyTorch's argmax(x==0) quirk exactly:
    #      rows with no padding OR padding at position 0 get length T) ----
    tok = tok_ref[...]                                              # (Bp, T) int32
    t_iota = lax.broadcasted_iota(jnp.int32, (Bp, T_), 1)
    big = jnp.int32(T_ + 1)
    first_zero = jnp.min(jnp.where(tok == 0, t_iota, big),
                         axis=1, keepdims=True)                     # (Bp, 1)
    lens = jnp.where((first_zero == big) | (first_zero == 0),
                     jnp.int32(T_), first_zero)                     # (Bp, 1)

    # ---- embedding + input projection + input bias for ALL timesteps in one
    #      bf16 MXU dispatch: onehot(tok) @ folded_table -> (T*Bp, 6*GP) f32 ----
    tok_col = tok_tm_ref[...]                                       # (T*Bp, 1)
    vocab_iota = lax.broadcasted_iota(jnp.int32, (T_ * Bp, V), 1)
    onehot = (vocab_iota == tok_col).astype(jnp.bfloat16)           # exact 0/1
    gi_ref[...] = jnp.dot(onehot, gi_tab_ref[...],
                          preferred_element_type=jnp.float32)

    whh = whh_ref[...]          # (GP, 6*GP) bf16; fwd rows 0:H, bwd rows 64:64+H
    bhh = bhh_ref[...]          # (1, 6*GP) f32

    def sigm(x):                # one EUP tanh per gate (no divide on the chain)
        return 0.5 * jnp.tanh(0.5 * x) + 0.5

    def step(t, carry):
        # hf: (Bp, GP) f32, real values at lanes 0:HID, rest provably 0
        # hb: (Bp, GP) f32, real values at lanes HBOFF:HBOFF+HID, rest 0
        hf, hb = carry
        tb = T_ - 1 - t
        ti = pl.multiple_of(t * Bp, Bp)
        tbi = pl.multiple_of(tb * Bp, Bp)
        gi_f = gi_ref[pl.ds(ti, Bp), pl.ds(0, GW)]     # fwd gates, token t
        gi_b = gi_ref[pl.ds(tbi, Bp), pl.ds(GW, GW)]   # bwd gates, token T-1-t

        # single K=128 fused recurrent matmul for both directions
        h_packed = (hf + hb).astype(jnp.bfloat16)      # disjoint lanes -> pack
        gh = jnp.dot(h_packed, whh,
                     preferred_element_type=jnp.float32) + bhh      # (Bp, 6*GP)

        # forward direction gates (real at lanes 0:HID of each 128-lane tile)
        r_f = sigm(gi_f[:, 0:GP] + gh[:, 0:GP])
        z_f = sigm(gi_f[:, GP:2 * GP] + gh[:, GP:2 * GP])
        n_f = jnp.tanh(gi_f[:, 2 * GP:3 * GP] + r_f * gh[:, 2 * GP:3 * GP])
        hf_new = n_f + z_f * (hf - n_f)                # fused blend

        # backward direction gates (real at lanes HBOFF:HBOFF+HID)
        r_b = sigm(gi_b[:, 0:GP] + gh[:, GW:GW + GP])
        z_b = sigm(gi_b[:, GP:2 * GP] + gh[:, GW + GP:GW + 2 * GP])
        n_b = jnp.tanh(gi_b[:, 2 * GP:3 * GP] + r_b * gh[:, GW + 2 * GP:GW + 3 * GP])
        hb_new = n_b + z_b * (hb - n_b)

        # pack_padded_sequence semantics: steps past a row's length keep its h
        hf_next = jnp.where(t < lens, hf_new, hf)
        hb_next = jnp.where(tb < lens, hb_new, hb)
        return (hf_next, hb_next)

    h0 = jnp.zeros((Bp, GP), jnp.float32)
    hf_fin, hb_fin = lax.fori_loop(0, T_, step, (h0, h0), unroll=True)

    # ---- hidden = [h_fwd | h_bwd] packed on one 128-lane tile; fc1->relu->fc2
    h_final = hf_fin + hb_fin                                        # (Bp, GP)
    out1 = jnp.dot(h_final, fc1w_ref[...],
                   preferred_element_type=jnp.float32) + fc1b_ref[...]   # (Bp, H)
    out2 = jnp.maximum(out1, 0.0)
    y = jnp.dot(out2, fc2w_ref[...],
                preferred_element_type=jnp.float32) + fc2b_ref[...]      # (Bp, 1)
    out_ref[...] = y[0:Bo, :]


# ------------------- host-side one-time parameter folding --------------------
def prepare_operands(params):
    (emb_w,
     wih_f, whh_f, bih_f, bhh_f,
     wih_b, whh_b, bih_b, bhh_b,
     fc1_w, fc1_b, fc2_w, fc2_b) = params
    H = HID

    def pad_gates(m, off):      # (X, 3H) -> (X, 3*GP), gate g at g*GP + off
        out = jnp.zeros((m.shape[0], GW), jnp.float32)
        for g in range(NGATE):
            out = out.at[:, g * GP + off:g * GP + off + H].set(m[:, g * H:(g + 1) * H])
        return out

    # Folded input table: onehot(tok) @ table == emb(tok) @ wih^T + bih.
    # Backward-direction columns are pre-shifted to lane offset HBOFF so the
    # backward hidden math happens at the lanes where h_bwd is carried.
    gi_raw = jnp.concatenate(
        [pad_gates(emb_w @ wih_f.T + bih_f[None, :], 0),
         pad_gates(emb_w @ wih_b.T + bih_b[None, :], HBOFF)], axis=1)   # (V, 6*GP)
    vp = ((VOCAB + 15) // 16) * 16        # bf16 sublane-tile aligned rows
    gi_tab = jnp.zeros((vp, 2 * GW), jnp.float32).at[0:VOCAB, :].set(gi_raw)
    gi_tab = gi_tab.astype(jnp.bfloat16)  # one-hot gather runs in bf16

    # Fused K=128 recurrent weight: rows 0:H feed forward gate columns,
    # rows HBOFF:HBOFF+H feed backward gate columns; all padding is zero.
    whh_big = jnp.zeros((GP, 2 * GW), jnp.float32)
    whh_big = whh_big.at[0:H, 0:GW].set(pad_gates(whh_f.T, 0))
    whh_big = whh_big.at[HBOFF:HBOFF + H, GW:2 * GW].set(pad_gates(whh_b.T, HBOFF))
    whh_big = whh_big.astype(jnp.bfloat16)                           # MXU-native
    # TODO(synk): hold whh resident across steps via pltpu.matmul_push_rhs once
    # staging-register capacity for the 3 column tiles is confirmed per chip.

    bhh_all = jnp.concatenate([pad_gates(bhh_f[None, :], 0),
                               pad_gates(bhh_b[None, :], HBOFF)], axis=1)  # (1, 6*GP)

    # fc1 consumes the packed [h_fwd | h_bwd] 128-lane hidden directly.
    fc1_w_big = jnp.zeros((GP, H), jnp.float32)
    fc1_w_big = fc1_w_big.at[0:H, :].set(fc1_w[:, 0:H].T)
    fc1_w_big = fc1_w_big.at[HBOFF:HBOFF + H, :].set(fc1_w[:, H:2 * H].T)

    return (gi_tab, whh_big, bhh_all, fc1_w_big,
            fc1_b.reshape(1, H), fc2_w.T, fc2_b.reshape(1, 1))


# ------------------------------ host-side wrapper ----------------------------
def gru_model_forward(tok, operands):
    """tok: (B, T) int32 token ids. Returns (B, 1) float32."""
    gi_tab, whh_big, bhh_all, fc1_w_big, fc1_b2, fc2_wT, fc2_b2 = operands
    Bn, Tn = tok.shape

    # Pad batch to one sublane tile and lay the ids out time-major for the
    # in-kernel one-hot gather (row r = t*BP + b).
    tok_p = jnp.zeros((BP, Tn), jnp.int32).at[0:Bn, :].set(tok.astype(jnp.int32))
    tok_tm = tok_p.T.reshape(Tn * BP, 1)

    vmem = pl.BlockSpec(memory_space=pltpu.MemorySpace.VMEM)
    return pl.pallas_call(
        gru_fused_kernel,
        out_shape=jax.ShapeDtypeStruct((Bn, 1), jnp.float32),
        in_specs=[vmem] * 9,
        out_specs=vmem,
        scratch_shapes=[pltpu.VMEM((Tn * BP, 2 * GW), jnp.float32)],
    )(tok_p, tok_tm, gi_tab, whh_big, bhh_all, fc1_w_big, fc1_b2, fc2_wT, fc2_b2)


# -------------------------- deterministic parameters -------------------------
def init_params(key):
    ks = jax.random.split(key, 16)
    s = 1.0 / jnp.sqrt(jnp.float32(HID))

    def u(k, shape):
        return jax.random.uniform(k, shape, jnp.float32, -s, s)

    emb_w = 0.1 * jax.random.normal(ks[0], (VOCAB, EMB), jnp.float32)
    emb_w = emb_w.at[0].set(0.0)          # padding_idx = 0

    wih_f = u(ks[1], (3 * HID, EMB)); whh_f = u(ks[2], (3 * HID, HID))
    bih_f = u(ks[3], (3 * HID,));     bhh_f = u(ks[4], (3 * HID,))
    wih_b = u(ks[5], (3 * HID, EMB)); whh_b = u(ks[6], (3 * HID, HID))
    bih_b = u(ks[7], (3 * HID,));     bhh_b = u(ks[8], (3 * HID,))

    fc1_w = u(ks[9], (HID, 2 * HID)); fc1_b = u(ks[10], (HID,))
    fc2_w = u(ks[11], (1, HID));      fc2_b = u(ks[12], (1,))

    return (emb_w,
            wih_f, whh_f, bih_f, bhh_f,
            wih_b, whh_b, bih_b, bhh_b,
            fc1_w, fc1_b, fc2_w, fc2_b)


# ------------------------------ pure-JAX reference ---------------------------
def reference_forward(tok, params):
    (emb_w,
     wih_f, whh_f, bih_f, bhh_f,
     wih_b, whh_b, bih_b, bhh_b,
     fc1_w, fc1_b, fc2_w, fc2_b) = params

    first = jnp.argmax((tok == 0).astype(jnp.int32), axis=1)
    lens = jnp.where(first == 0, T, first)[:, None]                 # (B, 1)

    x = jnp.take(emb_w, tok, axis=0)                                # (B, T, E)

    def cell(x_t, h, wih, whh, bih, bhh):
        gi = x_t @ wih.T + bih
        gh = h @ whh.T + bhh
        r = jax.nn.sigmoid(gi[:, :HID] + gh[:, :HID])
        z = jax.nn.sigmoid(gi[:, HID:2 * HID] + gh[:, HID:2 * HID])
        n = jnp.tanh(gi[:, 2 * HID:] + r * gh[:, 2 * HID:])
        return (1.0 - z) * n + z * h

    h_f = jnp.zeros((tok.shape[0], HID), jnp.float32)
    h_b = jnp.zeros((tok.shape[0], HID), jnp.float32)
    for t in range(T):
        h_f = jnp.where(t < lens, cell(x[:, t], h_f, wih_f, whh_f, bih_f, bhh_f), h_f)
        tb = T - 1 - t
        h_b = jnp.where(tb < lens, cell(x[:, tb], h_b, wih_b, whh_b, bih_b, bhh_b), h_b)

    hidden = jnp.concatenate([h_f, h_b], axis=1)                    # (B, 2H)
    out1 = hidden @ fc1_w.T + fc1_b
    out2 = jnp.maximum(out1, 0.0)
    return out2 @ fc2_w.T + fc2_b


# ------------------------------------ main -----------------------------------
if __name__ == "__main__":
    key = jax.random.PRNGKey(0)
    pkey, xkey = jax.random.split(key)
    params = init_params(pkey)
    operands = prepare_operands(params)      # one-time parameter folding

    # Token ids in [1, VOCAB); introduce trailing padding (0) for some rows.
    tok = jax.random.randint(xkey, (B, T), 1, VOCAB, dtype=jnp.int32)
    tok = tok.at[1, 5:].set(0)   # length 5
    tok = tok.at[2, 3:].set(0)   # length 3
    tok = tok.at[3, 6:].set(0)   # length 6
    # row 0 has no padding -> argmax==0 path -> length T

    fwd = jax.jit(gru_model_forward)
    out = jax.block_until_ready(fwd(tok, operands))

    ref = jax.block_until_ready(reference_forward(tok, params))
    assert out.shape == (B, 1), out.shape
    assert jnp.allclose(out, ref, rtol=5e-2, atol=5e-2), (out, ref)

    print("KERNEL_OK")
</pallas_src>

<mosaic_0001>
module attributes {stable_mosaic.version = 11 : i64} {
  func.func @gru_fused_kernel(%arg0: memref<8x8xi32, #tpu.memory_space<vmem>>, %arg1: memref<64x1xi32, #tpu.memory_space<vmem>>, %arg2: memref<64x768xbf16, #tpu.memory_space<vmem>>, %arg3: memref<128x768xbf16, #tpu.memory_space<vmem>>, %arg4: memref<1x768xf32, #tpu.memory_space<vmem>>, %arg5: memref<128x32xf32, #tpu.memory_space<vmem>>, %arg6: memref<1x32xf32, #tpu.memory_space<vmem>>, %arg7: memref<32x1xf32, #tpu.memory_space<vmem>>, %arg8: memref<1x1xf32, #tpu.memory_space<vmem>>, %arg9: memref<4x1xf32, #tpu.memory_space<vmem>>, %arg10: memref<64x768xf32, #tpu.memory_space<vmem>>) attributes {dimension_semantics = [], scalar_prefetch = 0 : i64, scratch_operands = 1 : i64, tpu.core_type = #tpu.core_type<tc>} {
    %c0 = arith.constant 0 : index
    %c0_0 = arith.constant 0 : index
    %0 = vector.load %arg0[%c0, %c0_0] : memref<8x8xi32, #tpu.memory_space<vmem>>, vector<8x8xi32>
    %1 = tpu.iota {dimensions = array<i32: 1>} : vector<8x8xi32>
    %c0_i32 = arith.constant 0 : i32
    %2 = vector.broadcast %c0_i32 : i32 to vector<8x8xi32>
    %3 = arith.cmpi eq, %0, %2 : vector<8x8xi32>
    %c9_i32 = arith.constant 9 : i32
    %4 = vector.broadcast %c9_i32 : i32 to vector<8x8xi32>
    %5 = arith.select %3, %1, %4 : vector<8x8xi1>, vector<8x8xi32>
    %cst = arith.constant dense<2147483647> : vector<8xi32>
    %6 = vector.multi_reduction <minsi>, %5, %cst [1] : vector<8x8xi32> to vector<8xi32>
    %7 = vector.shape_cast %6 : vector<8xi32> to vector<8x1xi32>
    %c9_i32_1 = arith.constant 9 : i32
    %8 = vector.broadcast %c9_i32_1 : i32 to vector<8x1xi32>
    %9 = arith.cmpi eq, %7, %8 : vector<8x1xi32>
    %c0_i32_2 = arith.constant 0 : i32
    %10 = vector.broadcast %c0_i32_2 : i32 to vector<8x1xi32>
    %11 = arith.cmpi eq, %7, %10 : vector<8x1xi32>
    %12 = arith.ori %9, %11 : vector<8x1xi1>
    %c8_i32 = arith.constant 8 : i32
    %13 = vector.broadcast %c8_i32 : i32 to vector<8x1xi32>
    %14 = arith.select %12, %13, %7 : vector<8x1xi1>, vector<8x1xi32>
    %c0_3 = arith.constant 0 : index
    %c0_4 = arith.constant 0 : index
    %15 = vector.load %arg1[%c0_3, %c0_4] : memref<64x1xi32, #tpu.memory_space<vmem>>, vector<64x1xi32>
    %16 = tpu.iota {dimensions = array<i32: 1>} : vector<64x64xi32>
    %17 = vector.broadcast %15 : vector<64x1xi32> to vector<64x64xi32>
    %18 = arith.cmpi eq, %16, %17 : vector<64x64xi32>
    %19 = arith.extui %18 : vector<64x64xi1> to vector<64x64xi32>
    %20 = arith.sitofp %19 : vector<64x64xi32> to vector<64x64xf32>
    %21 = arith.truncf %20 : vector<64x64xf32> to vector<64x64xbf16>
    %c0_5 = arith.constant 0 : index
    %c0_6 = arith.constant 0 : index
    %22 = vector.load %arg2[%c0_5, %c0_6] : memref<64x768xbf16, #tpu.memory_space<vmem>>, vector<64x768xbf16>
    %cst_7 = arith.constant dense<0.000000e+00> : vector<64x768xf32>
    %23 = tpu.matmul %21, %22, %cst_7 {dimension_numbers = #tpu.dot_dimension_numbers<[1], [0], [0], [1], [0, 0, 1, 1], [], []>} : vector<64x64xbf16>, vector<64x768xbf16>, vector<64x768xf32> -> vector<64x768xf32>
    %c0_8 = arith.constant 0 : index
    %c0_9 = arith.constant 0 : index
    %24 = vector.load %arg10[%c0_8, %c0_9] : memref<64x768xf32, #tpu.memory_space<vmem>>, vector<64x768xf32>
    tpu.vector_store %arg10[%c0_8, %c0_9], %23 {strides = array<i32>} : memref<64x768xf32, #tpu.memory_space<vmem>>, vector<64x768xf32>,
    %c0_10 = arith.constant 0 : index
    %c0_11 = arith.constant 0 : index
    %25 = vector.load %arg3[%c0_10, %c0_11] : memref<128x768xbf16, #tpu.memory_space<vmem>>, vector<128x768xbf16>
    %c0_12 = arith.constant 0 : index
    %c0_13 = arith.constant 0 : index
    %26 = vector.load %arg4[%c0_12, %c0_13] : memref<1x768xf32, #tpu.memory_space<vmem>>, vector<1x768xf32>
    %cst_14 = arith.constant 0.000000e+00 : f32
    %27 = vector.broadcast %cst_14 : f32 to vector<8x128xf32>
    %c0_i32_15 = arith.constant 0 : i32
    %c7_i32 = arith.constant 7 : i32
    %28 = arith.subi %c7_i32, %c0_i32_15 : i32
    %c8_i32_16 = arith.constant 8 : i32
    %29 = arith.muli %c0_i32_15, %c8_i32_16 : i32
    %30 = tpu.assume_multiple %29, 8 : i32
    %c8_i32_17 = arith.constant 8 : i32
    %31 = arith.muli %28, %c8_i32_17 : i32
    %32 = tpu.assume_multiple %31, 8 : i32
    %33 = arith.index_cast %30 : i32 to index
    %c0_18 = arith.constant 0 : index
    %34 = vector.load %arg10[%33, %c0_18] : memref<64x768xf32, #tpu.memory_space<vmem>>, vector<8x384xf32>
    %35 = arith.index_cast %32 : i32 to index
    %c384 = arith.constant 384 : index
    %36 = vector.load %arg10[%35, %c384] : memref<64x768xf32, #tpu.memory_space<vmem>>, vector<8x384xf32>
    %37 = arith.addf %27, %27 : vector<8x128xf32>
    %38 = arith.truncf %37 : vector<8x128xf32> to vector<8x128xbf16>
    %cst_19 = arith.constant dense<0.000000e+00> : vector<8x768xf32>
    %39 = tpu.matmul %38, %25, %cst_19 {dimension_numbers = #tpu.dot_dimension_numbers<[1], [0], [0], [1], [0, 0, 1, 1], [], []>} : vector<8x128xbf16>, vector<128x768xbf16>, vector<8x768xf32> -> vector<8x768xf32>
    %40 = vector.broadcast %26 : vector<1x768xf32> to vector<8x768xf32>
    %41 = arith.addf %39, %40 : vector<8x768xf32>
    %42 = vector.extract_strided_slice %34 {offsets = [0, 0], sizes = [8, 128], strides = [1, 1]} : vector<8x384xf32> to vector<8x128xf32>
    %43 = vector.extract_strided_slice %41 {offsets = [0, 0], sizes = [8, 128], strides = [1, 1]} : vector<8x768xf32> to vector<8x128xf32>
    %44 = arith.addf %42, %43 : vector<8x128xf32>
    %cst_20 = arith.constant 5.000000e-01 : f32
    %45 = vector.broadcast %cst_20 : f32 to vector<8x128xf32>
    %46 = arith.mulf %45, %44 : vector<8x128xf32>
    %47 = math.tanh %46 : vector<8x128xf32>
    %cst_21 = arith.constant 5.000000e-01 : f32
    %48 = vector.broadcast %cst_21 : f32 to vector<8x128xf32>
    %49 = arith.mulf %48, %47 : vector<8x128xf32>
    %cst_22 = arith.constant 5.000000e-01 : f32
    %50 = vector.broadcast %cst_22 : f32 to vector<8x128xf32>
    %51 = arith.addf %49, %50 : vector<8x128xf32>
    %52 = vector.extract_strided_slice %34 {offsets = [0, 128], sizes = [8, 128], strides = [1, 1]} : vector<8x384xf32> to vector<8x128xf32>
    %53 = vector.extract_strided_slice %41 {offsets = [0, 128], sizes = [8, 128], strides = [1, 1]} : vector<8x768xf32> to vector<8x128xf32>
    %54 = arith.addf %52, %53 : vector<8x128xf32>
    %cst_23 = arith.constant 5.000000e-01 : f32
    %55 = vector.broadcast %cst_23 : f32 to vector<8x128xf32>
    %56 = arith.mulf %55, %54 : vector<8x128xf32>
    %57 = math.tanh %56 : vector<8x128xf32>
    %cst_24 = arith.constant 5.000000e-01 : f32
    %58 = vector.broadcast %cst_24 : f32 to vector<8x128xf32>
    %59 = arith.mulf %58, %57 : vector<8x128xf32>
    %cst_25 = arith.constant 5.000000e-01 : f32
    %60 = vector.broadcast %cst_25 : f32 to vector<8x128xf32>
    %61 = arith.addf %59, %60 : vector<8x128xf32>
    %62 = vector.extract_strided_slice %34 {offsets = [0, 256], sizes = [8, 128], strides = [1, 1]} : vector<8x384xf32> to vector<8x128xf32>
    %63 = vector.extract_strided_slice %41 {offsets = [0, 256], sizes = [8, 128], strides = [1, 1]} : vector<8x768xf32> to vector<8x128xf32>
    %64 = arith.mulf %51, %63 : vector<8x128xf32>
    %65 = arith.addf %62, %64 : vector<8x128xf32>
    %66 = math.tanh %65 : vector<8x128xf32>
    %67 = arith.subf %27, %66 : vector<8x128xf32>
    %68 = arith.mulf %61, %67 : vector<8x128xf32>
    %69 = arith.addf %66, %68 : vector<8x128xf32>
    %70 = vector.extract_strided_slice %36 {offsets = [0, 0], sizes = [8, 128], strides = [1, 1]} : vector<8x384xf32> to vector<8x128xf32>
    %71 = vector.extract_strided_slice %41 {offsets = [0, 384], sizes = [8, 128], strides = [1, 1]} : vector<8x768xf32> to vector<8x128xf32>
    %72 = arith.addf %70, %71 : vector<8x128xf32>
    %cst_26 = arith.constant 5.000000e-01 : f32
    %73 = vector.broadcast %cst_26 : f32 to vector<8x128xf32>
    %74 = arith.mulf %73, %72 : vector<8x128xf32>
    %75 = math.tanh %74 : vector<8x128xf32>
    %cst_27 = arith.constant 5.000000e-01 : f32
    %76 = vector.broadcast %cst_27 : f32 to vector<8x128xf32>
    %77 = arith.mulf %76, %75 : vector<8x128xf32>
    %cst_28 = arith.constant 5.000000e-01 : f32
    %78 = vector.broadcast %cst_28 : f32 to vector<8x128xf32>
    %79 = arith.addf %77, %78 : vector<8x128xf32>
    %80 = vector.extract_strided_slice %36 {offsets = [0, 128], sizes = [8, 128], strides = [1, 1]} : vector<8x384xf32> to vector<8x128xf32>
    %81 = vector.extract_strided_slice %41 {offsets = [0, 512], sizes = [8, 128], strides = [1, 1]} : vector<8x768xf32> to vector<8x128xf32>
    %82 = arith.addf %80, %81 : vector<8x128xf32>
    %cst_29 = arith.constant 5.000000e-01 : f32
    %83 = vector.broadcast %cst_29 : f32 to vector<8x128xf32>
    %84 = arith.mulf %83, %82 : vector<8x128xf32>
    %85 = math.tanh %84 : vector<8x128xf32>
    %cst_30 = arith.constant 5.000000e-01 : f32
    %86 = vector.broadcast %cst_30 : f32 to vector<8x128xf32>
    %87 = arith.mulf %86, %85 : vector<8x128xf32>
    %cst_31 = arith.constant 5.000000e-01 : f32
    %88 = vector.broadcast %cst_31 : f32 to vector<8x128xf32>
    %89 = arith.addf %87, %88 : vector<8x128xf32>
    %90 = vector.extract_strided_slice %36 {offsets = [0, 256], sizes = [8, 128], strides = [1, 1]} : vector<8x384xf32> to vector<8x128xf32>
    %91 = vector.extract_strided_slice %41 {offsets = [0, 640], sizes = [8, 128], strides = [1, 1]} : vector<8x768xf32> to vector<8x128xf32>
    %92 = arith.mulf %79, %91 : vector<8x128xf32>
    %93 = arith.addf %90, %92 : vector<8x128xf32>
    %94 = math.tanh %93 : vector<8x128xf32>
    %95 = arith.subf %27, %94 : vector<8x128xf32>
    %96 = arith.mulf %89, %95 : vector<8x128xf32>
    %97 = arith.addf %94, %96 : vector<8x128xf32>
    %98 = vector.broadcast %c0_i32_15 : i32 to vector<8x1xi32>
    %99 = arith.cmpi slt, %98, %14 : vector<8x1xi32>
    %100 = vector.shape_cast %99 : vector<8x1xi1> to vector<8x1xi1>
    %101 = vector.broadcast %100 : vector<8x1xi1> to vector<8x128xi1>
    %102 = arith.select %101, %69, %27 : vector<8x128xi1>, vector<8x128xf32>
    %103 = vector.broadcast %28 : i32 to vector<8x1xi32>
    %104 = arith.cmpi slt, %103, %14 : vector<8x1xi32>
    %105 = vector.shape_cast %104 : vector<8x1xi1> to vector<8x1xi1>
    %106 = vector.broadcast %105 : vector<8x1xi1> to vector<8x128xi1>
    %107 = arith.select %106, %97, %27 : vector<8x128xi1>, vector<8x128xf32>
    %c1_i32 = arith.constant 1 : i32
    %c7_i32_32 = arith.constant 7 : i32
    %108 = arith.subi %c7_i32_32, %c1_i32 : i32
    %c8_i32_33 = arith.constant 8 : i32
    %109 = arith.muli %c1_i32, %c8_i32_33 : i32
    %110 = tpu.assume_multiple %109, 8 : i32
    %c8_i32_34 = arith.constant 8 : i32
    %111 = arith.muli %108, %c8_i32_34 : i32
    %112 = tpu.assume_multiple %111, 8 : i32
    %113 = arith.index_cast %110 : i32 to index
    %c0_35 = arith.constant 0 : index
    %114 = vector.load %arg10[%113, %c0_35] : memref<64x768xf32, #tpu.memory_space<vmem>>, vector<8x384xf32>
    %115 = arith.index_cast %112 : i32 to index
    %c384_36 = arith.constant 384 : index
    %116 = vector.load %arg10[%115, %c384_36] : memref<64x768xf32, #tpu.memory_space<vmem>>, vector<8x384xf32>
    %117 = arith.addf %102, %107 : vector<8x128xf32>
    %118 = arith.truncf %117 : vector<8x128xf32> to vector<8x128xbf16>
    %cst_37 = arith.constant dense<0.000000e+00> : vector<8x768xf32>
    %119 = tpu.matmul %118, %25, %cst_37 {dimension_numbers = #tpu.dot_dimension_numbers<[1], [0], [0], [1], [0, 0, 1, 1], [], []>} : vector<8x128xbf16>, vector<128x768xbf16>, vector<8x768xf32> -> vector<8x768xf32>
    %120 = vector.broadcast %26 : vector<1x768xf32> to vector<8x768xf32>
    %121 = arith.addf %119, %120 : vector<8x768xf32>
    %122 = vector.extract_strided_slice %114 {offsets = [0, 0], sizes = [8, 128], strides = [1, 1]} : vector<8x384xf32> to vector<8x128xf32>
    %123 = vector.extract_strided_slice %121 {offsets = [0, 0], sizes = [8, 128], strides = [1, 1]} : vector<8x768xf32> to vector<8x128xf32>
    %124 = arith.addf %122, %123 : vector<8x128xf32>
    %cst_38 = arith.constant 5.000000e-01 : f32
    %125 = vector.broadcast %cst_38 : f32 to vector<8x128xf32>
    %126 = arith.mulf %125, %124 : vector<8x128xf32>
    %127 = math.tanh %126 : vector<8x128xf32>
    %cst_39 = arith.constant 5.000000e-01 : f32
    %128 = vector.broadcast %cst_39 : f32 to vector<8x128xf32>
    %129 = arith.mulf %128, %127 : vector<8x128xf32>
    %cst_40 = arith.constant 5.000000e-01 : f32
    %130 = vector.broadcast %cst_40 : f32 to vector<8x128xf32>
    %131 = arith.addf %129, %130 : vector<8x128xf32>
    %132 = vector.extract_strided_slice %114 {offsets = [0, 128], sizes = [8, 128], strides = [1, 1]} : vector<8x384xf32> to vector<8x128xf32>
    %133 = vector.extract_strided_slice %121 {offsets = [0, 128], sizes = [8, 128], strides = [1, 1]} : vector<8x768xf32> to vector<8x128xf32>
    %134 = arith.addf %132, %133 : vector<8x128xf32>
    %cst_41 = arith.constant 5.000000e-01 : f32
    %135 = vector.broadcast %cst_41 : f32 to vector<8x128xf32>
    %136 = arith.mulf %135, %134 : vector<8x128xf32>
    %137 = math.tanh %136 : vector<8x128xf32>
    %cst_42 = arith.constant 5.000000e-01 : f32
    %138 = vector.broadcast %cst_42 : f32 to vector<8x128xf32>
    %139 = arith.mulf %138, %137 : vector<8x128xf32>
    %cst_43 = arith.constant 5.000000e-01 : f32
    %140 = vector.broadcast %cst_43 : f32 to vector<8x128xf32>
    %141 = arith.addf %139, %140 : vector<8x128xf32>
    %142 = vector.extract_strided_slice %114 {offsets = [0, 256], sizes = [8, 128], strides = [1, 1]} : vector<8x384xf32> to vector<8x128xf32>
    %143 = vector.extract_strided_slice %121 {offsets = [0, 256], sizes = [8, 128], strides = [1, 1]} : vector<8x768xf32> to vector<8x128xf32>
    %144 = arith.mulf %131, %143 : vector<8x128xf32>
    %145 = arith.addf %142, %144 : vector<8x128xf32>
    %146 = math.tanh %145 : vector<8x128xf32>
    %147 = arith.subf %102, %146 : vector<8x128xf32>
    %148 = arith.mulf %141, %147 : vector<8x128xf32>
    %149 = arith.addf %146, %148 : vector<8x128xf32>
    %150 = vector.extract_strided_slice %116 {offsets = [0, 0], sizes = [8, 128], strides = [1, 1]} : vector<8x384xf32> to vector<8x128xf32>
    %151 = vector.extract_strided_slice %121 {offsets = [0, 384], sizes = [8, 128], strides = [1, 1]} : vector<8x768xf32> to vector<8x128xf32>
    %152 = arith.addf %150, %151 : vector<8x128xf32>
    %cst_44 = arith.constant 5.000000e-01 : f32
    %153 = vector.broadcast %cst_44 : f32 to vector<8x128xf32>
    %154 = arith.mulf %153, %152 : vector<8x128xf32>
    %155 = math.tanh %154 : vector<8x128xf32>
    %cst_45 = arith.constant 5.000000e-01 : f32
    %156 = vector.broadcast %cst_45 : f32 to vector<8x128xf32>
    %157 = arith.mulf %156, %155 : vector<8x128xf32>
    %cst_46 = arith.constant 5.000000e-01 : f32
    %158 = vector.broadcast %cst_46 : f32 to vector<8x128xf32>
    %159 = arith.addf %157, %158 : vector<8x128xf32>
    %160 = vector.extract_strided_slice %116 {offsets = [0, 128], sizes = [8, 128], strides = [1, 1]} : vector<8x384xf32> to vector<8x128xf32>
    %161 = vector.extract_strided_slice %121 {offsets = [0, 512], sizes = [8, 128], strides = [1, 1]} : vector<8x768xf32> to vector<8x128xf32>
    %162 = arith.addf %160, %161 : vector<8x128xf32>
    %cst_47 = arith.constant 5.000000e-01 : f32
    %163 = vector.broadcast %cst_47 : f32 to vector<8x128xf32>
    %164 = arith.mulf %163, %162 : vector<8x128xf32>
    %165 = math.tanh %164 : vector<8x128xf32>
    %cst_48 = arith.constant 5.000000e-01 : f32
    %166 = vector.broadcast %cst_48 : f32 to vector<8x128xf32>
    %167 = arith.mulf %166, %165 : vector<8x128xf32>
    %cst_49 = arith.constant 5.000000e-01 : f32
    %168 = vector.broadcast %cst_49 : f32 to vector<8x128xf32>
    %169 = arith.addf %167, %168 : vector<8x128xf32>
    %170 = vector.extract_strided_slice %116 {offsets = [0, 256], sizes = [8, 128], strides = [1, 1]} : vector<8x384xf32> to vector<8x128xf32>
    %171 = vector.extract_strided_slice %121 {offsets = [0, 640], sizes = [8, 128], strides = [1, 1]} : vector<8x768xf32> to vector<8x128xf32>
    %172 = arith.mulf %159, %171 : vector<8x128xf32>
    %173 = arith.addf %170, %172 : vector<8x128xf32>
    %174 = math.tanh %173 : vector<8x128xf32>
    %175 = arith.subf %107, %174 : vector<8x128xf32>
    %176 = arith.mulf %169, %175 : vector<8x128xf32>
    %177 = arith.addf %174, %176 : vector<8x128xf32>
    %178 = vector.broadcast %c1_i32 : i32 to vector<8x1xi32>
    %179 = arith.cmpi slt, %178, %14 : vector<8x1xi32>
    %180 = vector.shape_cast %179 : vector<8x1xi1> to vector<8x1xi1>
    %181 = vector.broadcast %180 : vector<8x1xi1> to vector<8x128xi1>
    %182 = arith.select %181, %149, %102 : vector<8x128xi1>, vector<8x128xf32>
    %183 = vector.broadcast %108 : i32 to vector<8x1xi32>
    %184 = arith.cmpi slt, %183, %14 : vector<8x1xi32>
    %185 = vector.shape_cast %184 : vector<8x1xi1> to vector<8x1xi1>
    %186 = vector.broadcast %185 : vector<8x1xi1> to vector<8x128xi1>
    %187 = arith.select %186, %177, %107 : vector<8x128xi1>, vector<8x128xf32>
    %c2_i32 = arith.constant 2 : i32
    %c7_i32_50 = arith.constant 7 : i32
    %188 = arith.subi %c7_i32_50, %c2_i32 : i32
    %c8_i32_51 = arith.constant 8 : i32
    %189 = arith.muli %c2_i32, %c8_i32_51 : i32
    %190 = tpu.assume_multiple %189, 8 : i32
    %c8_i32_52 = arith.constant 8 : i32
    %191 = arith.muli %188, %c8_i32_52 : i32
    %192 = tpu.assume_multiple %191, 8 : i32
    %193 = arith.index_cast %190 : i32 to index
    %c0_53 = arith.constant 0 : index
    %194 = vector.load %arg10[%193, %c0_53] : memref<64x768xf32, #tpu.memory_space<vmem>>, vector<8x384xf32>
    %195 = arith.index_cast %192 : i32 to index
    %c384_54 = arith.constant 384 : index
    %196 = vector.load %arg10[%195, %c384_54] : memref<64x768xf32, #tpu.memory_space<vmem>>, vector<8x384xf32>
    %197 = arith.addf %182, %187 : vector<8x128xf32>
    %198 = arith.truncf %197 : vector<8x128xf32> to vector<8x128xbf16>
    %cst_55 = arith.constant dense<0.000000e+00> : vector<8x768xf32>
    %199 = tpu.matmul %198, %25, %cst_55 {dimension_numbers = #tpu.dot_dimension_numbers<[1], [0], [0], [1], [0, 0, 1, 1], [], []>} : vector<8x128xbf16>, vector<128x768xbf16>, vector<8x768xf32> -> vector<8x768xf32>
    %200 = vector.broadcast %26 : vector<1x768xf32> to vector<8x768xf32>
    %201 = arith.addf %199, %200 : vector<8x768xf32>
    %202 = vector.extract_strided_slice %194 {offsets = [0, 0], sizes = [8, 128], strides = [1, 1]} : vector<8x384xf32> to vector<8x128xf32>
    %203 = vector.extract_strided_slice %201 {offsets = [0, 0], sizes = [8, 128], strides = [1, 1]} : vector<8x768xf32> to vector<8x128xf32>
    %204 = arith.addf %202, %203 : vector<8x128xf32>
    %cst_56 = arith.constant 5.000000e-01 : f32
    %205 = vector.broadcast %cst_56 : f32 to vector<8x128xf32>
    %206 = arith.mulf %205, %204 : vector<8x128xf32>
    %207 = math.tanh %206 : vector<8x128xf32>
    %cst_57 = arith.constant 5.000000e-01 : f32
    %208 = vector.broadcast %cst_57 : f32 to vector<8x128xf32>
    %209 = arith.mulf %208, %207 : vector<8x128xf32>
    %cst_58 = arith.constant 5.000000e-01 : f32
    %210 = vector.broadcast %cst_58 : f32 to vector<8x128xf32>
    %211 = arith.addf %209, %210 : vector<8x128xf32>
    %212 = vector.extract_strided_slice %194 {offsets = [0, 128], sizes = [8, 128], strides = [1, 1]} : vector<8x384xf32> to vector<8x128xf32>
    %213 = vector.extract_strided_slice %201 {offsets = [0, 128], sizes = [8, 128], strides = [1, 1]} : vector<8x768xf32> to vector<8x128xf32>
    %214 = arith.addf %212, %213 : vector<8x128xf32>
    %cst_59 = arith.constant 5.000000e-01 : f32
    %215 = vector.broadcast %cst_59 : f32 to vector<8x128xf32>
    %216 = arith.mulf %215, %214 : vector<8x128xf32>
    %217 = math.tanh %216 : vector<8x128xf32>
    %cst_60 = arith.constant 5.000000e-01 : f32
    %218 = vector.broadcast %cst_60 : f32 to vector<8x128xf32>
    %219 = arith.mulf %218, %217 : vector<8x128xf32>
    %cst_61 = arith.constant 5.000000e-01 : f32
    %220 = vector.broadcast %cst_61 : f32 to vector<8x128xf32>
    %221 = arith.addf %219, %220 : vector<8x128xf32>
    %222 = vector.extract_strided_slice %194 {offsets = [0, 256], sizes = [8, 128], strides = [1, 1]} : vector<8x384xf32> to vector<8x128xf32>
    %223 = vector.extract_strided_slice %201 {offsets = [0, 256], sizes = [8, 128], strides = [1, 1]} : vector<8x768xf32> to vector<8x128xf32>
    %224 = arith.mulf %211, %223 : vector<8x128xf32>
    %225 = arith.addf %222, %224 : vector<8x128xf32>
    %226 = math.tanh %225 : vector<8x128xf32>
    %227 = arith.subf %182, %226 : vector<8x128xf32>
    %228 = arith.mulf %221, %227 : vector<8x128xf32>
    %229 = arith.addf %226, %228 : vector<8x128xf32>
    %230 = vector.extract_strided_slice %196 {offsets = [0, 0], sizes = [8, 128], strides = [1, 1]} : vector<8x384xf32> to vector<8x128xf32>
    %231 = vector.extract_strided_slice %201 {offsets = [0, 384], sizes = [8, 128], strides = [1, 1]} : vector<8x768xf32> to vector<8x128xf32>
    %232 = arith.addf %230, %231 : vector<8x128xf32>
    %cst_62 = arith.constant 5.000000e-01 : f32
    %233 = vector.broadcast %cst_62 : f32 to vector<8x128xf32>
    %234 = arith.mulf %233, %232 : vector<8x128xf32>
    %235 = math.tanh %234 : vector<8x128xf32>
    %cst_63 = arith.constant 5.000000e-01 : f32
    %236 = vector.broadcast %cst_63 : f32 to vector<8x128xf32>
    %237 = arith.mulf %236, %235 : vector<8x128xf32>
    %cst_64 = arith.constant 5.000000e-01 : f32
    %238 = vector.broadcast %cst_64 : f32 to vector<8x128xf32>
    %239 = arith.addf %237, %238 : vector<8x128xf32>
    %240 = vector.extract_strided_slice %196 {offsets = [0, 128], sizes = [8, 128], strides = [1, 1]} : vector<8x384xf32> to vector<8x128xf32>
    %241 = vector.extract_strided_slice %201 {offsets = [0, 512], sizes = [8, 128], strides = [1, 1]} : vector<8x768xf32> to vector<8x128xf32>
    %242 = arith.addf %240, %241 : vector<8x128xf32>
    %cst_65 = arith.constant 5.000000e-01 : f32
    %243 = vector.broadcast %cst_65 : f32 to vector<8x128xf32>
    %244 = arith.mulf %243, %242 : vector<8x128xf32>
    %245 = math.tanh %244 : vector<8x128xf32>
    %cst_66 = arith.constant 5.000000e-01 : f32
    %246 = vector.broadcast %cst_66 : f32 to vector<8x128xf32>
    %247 = arith.mulf %246, %245 : vector<8x128xf32>
    %cst_67 = arith.constant 5.000000e-01 : f32
    %248 = vector.broadcast %cst_67 : f32 to vector<8x128xf32>
    %249 = arith.addf %247, %248 : vector<8x128xf32>
    %250 = vector.extract_strided_slice %196 {offsets = [0, 256], sizes = [8, 128], strides = [1, 1]} : vector<8x384xf32> to vector<8x128xf32>
    %251 = vector.extract_strided_slice %201 {offsets = [0, 640], sizes = [8, 128], strides = [1, 1]} : vector<8x768xf32> to vector<8x128xf32>
    %252 = arith.mulf %239, %251 : vector<8x128xf32>
    %253 = arith.addf %250, %252 : vector<8x128xf32>
    %254 = math.tanh %253 : vector<8x128xf32>
    %255 = arith.subf %187, %254 : vector<8x128xf32>
    %256 = arith.mulf %249, %255 : vector<8x128xf32>
    %257 = arith.addf %254, %256 : vector<8x128xf32>
    %258 = vector.broadcast %c2_i32 : i32 to vector<8x1xi32>
    %259 = arith.cmpi slt, %258, %14 : vector<8x1xi32>
    %260 = vector.shape_cast %259 : vector<8x1xi1> to vector<8x1xi1>
    %261 = vector.broadcast %260 : vector<8x1xi1> to vector<8x128xi1>
    %262 = arith.select %261, %229, %182 : vector<8x128xi1>, vector<8x128xf32>
    %263 = vector.broadcast %188 : i32 to vector<8x1xi32>
    %264 = arith.cmpi slt, %263, %14 : vector<8x1xi32>
    %265 = vector.shape_cast %264 : vector<8x1xi1> to vector<8x1xi1>
    %266 = vector.broadcast %265 : vector<8x1xi1> to vector<8x128xi1>
    %267 = arith.select %266, %257, %187 : vector<8x128xi1>, vector<8x128xf32>
    %c3_i32 = arith.constant 3 : i32
    %c7_i32_68 = arith.constant 7 : i32
    %268 = arith.subi %c7_i32_68, %c3_i32 : i32
    %c8_i32_69 = arith.constant 8 : i32
    %269 = arith.muli %c3_i32, %c8_i32_69 : i32
    %270 = tpu.assume_multiple %269, 8 : i32
    %c8_i32_70 = arith.constant 8 : i32
    %271 = arith.muli %268, %c8_i32_70 : i32
    %272 = tpu.assume_multiple %271, 8 : i32
    %273 = arith.index_cast %270 : i32 to index
    %c0_71 = arith.constant 0 : index
    %274 = vector.load %arg10[%273, %c0_71] : memref<64x768xf32, #tpu.memory_space<vmem>>, vector<8x384xf32>
    %275 = arith.index_cast %272 : i32 to index
    %c384_72 = arith.constant 384 : index
    %276 = vector.load %arg10[%275, %c384_72] : memref<64x768xf32, #tpu.memory_space<vmem>>, vector<8x384xf32>
    %277 = arith.addf %262, %267 : vector<8x128xf32>
    %278 = arith.truncf %277 : vector<8x128xf32> to vector<8x128xbf16>
    %cst_73 = arith.constant dense<0.000000e+00> : vector<8x768xf32>
    %279 = tpu.matmul %278, %25, %cst_73 {dimension_numbers = #tpu.dot_dimension_numbers<[1], [0], [0], [1], [0, 0, 1, 1], [], []>} : vector<8x128xbf16>, vector<128x768xbf16>, vector<8x768xf32> -> vector<8x768xf32>
    %280 = vector.broadcast %26 : vector<1x768xf32> to vector<8x768xf32>
    %281 = arith.addf %279, %280 : vector<8x768xf32>
    %282 = vector.extract_strided_slice %274 {offsets = [0, 0], sizes = [8, 128], strides = [1, 1]} : vector<8x384xf32> to vector<8x128xf32>
    %283 = vector.extract_strided_slice %281 {offsets = [0, 0], sizes = [8, 128], strides = [1, 1]} : vector<8x768xf32> to vector<8x128xf32>
    %284 = arith.addf %282, %283 : vector<8x128xf32>
    %cst_74 = arith.constant 5.000000e-01 : f32
    %285 = vector.broadcast %cst_74 : f32 to vector<8x128xf32>
    %286 = arith.mulf %285, %284 : vector<8x128xf32>
    %287 = math.tanh %286 : vector<8x128xf32>
    %cst_75 = arith.constant 5.000000e-01 : f32
    %288 = vector.broadcast %cst_75 : f32 to vector<8x128xf32>
    %289 = arith.mulf %288, %287 : vector<8x128xf32>
    %cst_76 = arith.constant 5.000000e-01 : f32
    %290 = vector.broadcast %cst_76 : f32 to vector<8x128xf32>
    %291 = arith.addf %289, %290 : vector<8x128xf32>
    %292 = vector.extract_strided_slice %274 {offsets = [0, 128], sizes = [8, 128], strides = [1, 1]} : vector<8x384xf32> to vector<8x128xf32>
    %293 = vector.extract_strided_slice %281 {offsets = [0, 128], sizes = [8, 128], strides = [1, 1]} : vector<8x768xf32> to vector<8x128xf32>
    %294 = arith.addf %292, %293 : vector<8x128xf32>
    %cst_77 = arith.constant 5.000000e-01 : f32
    %295 = vector.broadcast %cst_77 : f32 to vector<8x128xf32>
    %296 = arith.mulf %295, %294 : vector<8x128xf32>
    %297 = math.tanh %296 : vector<8x128xf32>
    %cst_78 = arith.constant 5.000000e-01 : f32
    %298 = vector.broadcast %cst_78 : f32 to vector<8x128xf32>
    %299 = arith.mulf %298, %297 : vector<8x128xf32>
    %cst_79 = arith.constant 5.000000e-01 : f32
    %300 = vector.broadcast %cst_79 : f32 to vector<8x128xf32>
    %301 = arith.addf %299, %300 : vector<8x128xf32>
    %302 = vector.extract_strided_slice %274 {offsets = [0, 256], sizes = [8, 128], strides = [1, 1]} : vector<8x384xf32> to vector<8x128xf32>
    %303 = vector.extract_strided_slice %281 {offsets = [0, 256], sizes = [8, 128], strides = [1, 1]} : vector<8x768xf32> to vector<8x128xf32>
    %304 = arith.mulf %291, %303 : vector<8x128xf32>
    %305 = arith.addf %302, %304 : vector<8x128xf32>
    %306 = math.tanh %305 : vector<8x128xf32>
    %307 = arith.subf %262, %306 : vector<8x128xf32>
    %308 = arith.mulf %301, %307 : vector<8x128xf32>
    %309 = arith.addf %306, %308 : vector<8x128xf32>
    %310 = vector.extract_strided_slice %276 {offsets = [0, 0], sizes = [8, 128], strides = [1, 1]} : vector<8x384xf32> to vector<8x128xf32>
    %311 = vector.extract_strided_slice %281 {offsets = [0, 384], sizes = [8, 128], strides = [1, 1]} : vector<8x768xf32> to vector<8x128xf32>
    %312 = arith.addf %310, %311 : vector<8x128xf32>
    %cst_80 = arith.constant 5.000000e-01 : f32
    %313 = vector.broadcast %cst_80 : f32 to vector<8x128xf32>
    %314 = arith.mulf %313, %312 : vector<8x128xf32>
    %315 = math.tanh %314 : vector<8x128xf32>
    %cst_81 = arith.constant 5.000000e-01 : f32
    %316 = vector.broadcast %cst_81 : f32 to vector<8x128xf32>
    %317 = arith.mulf %316, %315 : vector<8x128xf32>
    %cst_82 = arith.constant 5.000000e-01 : f32
    %318 = vector.broadcast %cst_82 : f32 to vector<8x128xf32>
    %319 = arith.addf %317, %318 : vector<8x128xf32>
    %320 = vector.extract_strided_slice %276 {offsets = [0, 128], sizes = [8, 128], strides = [1, 1]} : vector<8x384xf32> to vector<8x128xf32>
    %321 = vector.extract_strided_slice %281 {offsets = [0, 512], sizes = [8, 128], strides = [1, 1]} : vector<8x768xf32> to vector<8x128xf32>
    %322 = arith.addf %320, %321 : vector<8x128xf32>
    %cst_83 = arith.constant 5.000000e-01 : f32
    %323 = vector.broadcast %cst_83 : f32 to vector<8x128xf32>
    %324 = arith.mulf %323, %322 : vector<8x128xf32>
    %325 = math.tanh %324 : vector<8x128xf32>
    %cst_84 = arith.constant 5.000000e-01 : f32
    %326 = vector.broadcast %cst_84 : f32 to vector<8x128xf32>
    %327 = arith.mulf %326, %325 : vector<8x128xf32>
    %cst_85 = arith.constant 5.000000e-01 : f32
    %328 = vector.broadcast %cst_85 : f32 to vector<8x128xf32>
    %329 = arith.addf %327, %328 : vector<8x128xf32>
    %330 = vector.extract_strided_slice %276 {offsets = [0, 256], sizes = [8, 128], strides = [1, 1]} : vector<8x384xf32> to vector<8x128xf32>
    %331 = vector.extract_strided_slice %281 {offsets = [0, 640], sizes = [8, 128], strides = [1, 1]} : vector<8x768xf32> to vector<8x128xf32>
    %332 = arith.mulf %319, %331 : vector<8x128xf32>
    %333 = arith.addf %330, %332 : vector<8x128xf32>
    %334 = math.tanh %333 : vector<8x128xf32>
    %335 = arith.subf %267, %334 : vector<8x128xf32>
    %336 = arith.mulf %329, %335 : vector<8x128xf32>
    %337 = arith.addf %334, %336 : vector<8x128xf32>
    %338 = vector.broadcast %c3_i32 : i32 to vector<8x1xi32>
    %339 = arith.cmpi slt, %338, %14 : vector<8x1xi32>
    %340 = vector.shape_cast %339 : vector<8x1xi1> to vector<8x1xi1>
    %341 = vector.broadcast %340 : vector<8x1xi1> to vector<8x128xi1>
    %342 = arith.select %341, %309, %262 : vector<8x128xi1>, vector<8x128xf32>
    %343 = vector.broadcast %268 : i32 to vector<8x1xi32>
    %344 = arith.cmpi slt, %343, %14 : vector<8x1xi32>
    %345 = vector.shape_cast %344 : vector<8x1xi1> to vector<8x1xi1>
    %346 = vector.broadcast %345 : vector<8x1xi1> to vector<8x128xi1>
    %347 = arith.select %346, %337, %267 : vector<8x128xi1>, vector<8x128xf32>
    %c4_i32 = arith.constant 4 : i32
    %c7_i32_86 = arith.constant 7 : i32
    %348 = arith.subi %c7_i32_86, %c4_i32 : i32
    %c8_i32_87 = arith.constant 8 : i32
    %349 = arith.muli %c4_i32, %c8_i32_87 : i32
    %350 = tpu.assume_multiple %349, 8 : i32
    %c8_i32_88 = arith.constant 8 : i32
    %351 = arith.muli %348, %c8_i32_88 : i32
    %352 = tpu.assume_multiple %351, 8 : i32
    %353 = arith.index_cast %350 : i32 to index
    %c0_89 = arith.constant 0 : index
    %354 = vector.load %arg10[%353, %c0_89] : memref<64x768xf32, #tpu.memory_space<vmem>>, vector<8x384xf32>
    %355 = arith.index_cast %352 : i32 to index
    %c384_90 = arith.constant 384 : index
    %356 = vector.load %arg10[%355, %c384_90] : memref<64x768xf32, #tpu.memory_space<vmem>>, vector<8x384xf32>
    %357 = arith.addf %342, %347 : vector<8x128xf32>
    %358 = arith.truncf %357 : vector<8x128xf32> to vector<8x128xbf16>
    %cst_91 = arith.constant dense<0.000000e+00> : vector<8x768xf32>
    %359 = tpu.matmul %358, %25, %cst_91 {dimension_numbers = #tpu.dot_dimension_numbers<[1], [0], [0], [1], [0, 0, 1, 1], [], []>} : vector<8x128xbf16>, vector<128x768xbf16>, vector<8x768xf32> -> vector<8x768xf32>
    %360 = vector.broadcast %26 : vector<1x768xf32> to vector<8x768xf32>
    %361 = arith.addf %359, %360 : vector<8x768xf32>
    %362 = vector.extract_strided_slice %354 {offsets = [0, 0], sizes = [8, 128], strides = [1, 1]} : vector<8x384xf32> to vector<8x128xf32>
    %363 = vector.extract_strided_slice %361 {offsets = [0, 0], sizes = [8, 128], strides = [1, 1]} : vector<8x768xf32> to vector<8x128xf32>
    %364 = arith.addf %362, %363 : vector<8x128xf32>
    %cst_92 = arith.constant 5.000000e-01 : f32
    %365 = vector.broadcast %cst_92 : f32 to vector<8x128xf32>
    %366 = arith.mulf %365, %364 : vector<8x128xf32>
    %367 = math.tanh %366 : vector<8x128xf32>
    %cst_93 = arith.constant 5.000000e-01 : f32
    %368 = vector.broadcast %cst_93 : f32 to vector<8x128xf32>
    %369 = arith.mulf %368, %367 : vector<8x128xf32>
    %cst_94 = arith.constant 5.000000e-01 : f32
    %370 = vector.broadcast %cst_94 : f32 to vector<8x128xf32>
    %371 = arith.addf %369, %370 : vector<8x128xf32>
    %372 = vector.extract_strided_slice %354 {offsets = [0, 128], sizes = [8, 128], strides = [1, 1]} : vector<8x384xf32> to vector<8x128xf32>
    %373 = vector.extract_strided_slice %361 {offsets = [0, 128], sizes = [8, 128], strides = [1, 1]} : vector<8x768xf32> to vector<8x128xf32>
    %374 = arith.addf %372, %373 : vector<8x128xf32>
    %cst_95 = arith.constant 5.000000e-01 : f32
    %375 = vector.broadcast %cst_95 : f32 to vector<8x128xf32>
    %376 = arith.mulf %375, %374 : vector<8x128xf32>
    %377 = math.tanh %376 : vector<8x128xf32>
    %cst_96 = arith.constant 5.000000e-01 : f32
    %378 = vector.broadcast %cst_96 : f32 to vector<8x128xf32>
    %379 = arith.mulf %378, %377 : vector<8x128xf32>
    %cst_97 = arith.constant 5.000000e-01 : f32
    %380 = vector.broadcast %cst_97 : f32 to vector<8x128xf32>
    %381 = arith.addf %379, %380 : vector<8x128xf32>
    %382 = vector.extract_strided_slice %354 {offsets = [0, 256], sizes = [8, 128], strides = [1, 1]} : vector<8x384xf32> to vector<8x128xf32>
    %383 = vector.extract_strided_slice %361 {offsets = [0, 256], sizes = [8, 128], strides = [1, 1]} : vector<8x768xf32> to vector<8x128xf32>
    %384 = arith.mulf %371, %383 : vector<8x128xf32>
    %385 = arith.addf %382, %384 : vector<8x128xf32>
    %386 = math.tanh %385 : vector<8x128xf32>
    %387 = arith.subf %342, %386 : vector<8x128xf32>
    %388 = arith.mulf %381, %387 : vector<8x128xf32>
    %389 = arith.addf %386, %388 : vector<8x128xf32>
    %390 = vector.extract_strided_slice %356 {offsets = [0, 0], sizes = [8, 128], strides = [1, 1]} : vector<8x384xf32> to vector<8x128xf32>
    %391 = vector.extract_strided_slice %361 {offsets = [0, 384], sizes = [8, 128], strides = [1, 1]} : vector<8x768xf32> to vector<8x128xf32>
    %392 = arith.addf %390, %391 : vector<8x128xf32>
    %cst_98 = arith.constant 5.000000e-01 : f32
    %393 = vector.broadcast %cst_98 : f32 to vector<8x128xf32>
    %394 = arith.mulf %393, %392 : vector<8x128xf32>
    %395 = math.tanh %394 : vector<8x128xf32>
    %cst_99 = arith.constant 5.000000e-01 : f32
    %396 = vector.broadcast %cst_99 : f32 to vector<8x128xf32>
    %397 = arith.mulf %396, %395 : vector<8x128xf32>
    %cst_100 = arith.constant 5.000000e-01 : f32
    %398 = vector.broadcast %cst_100 : f32 to vector<8x128xf32>
    %399 = arith.addf %397, %398 : vector<8x128xf32>
    %400 = vector.extract_strided_slice %356 {offsets = [0, 128], sizes = [8, 128], strides = [1, 1]} : vector<8x384xf32> to vector<8x128xf32>
    %401 = vector.extract_strided_slice %361 {offsets = [0, 512], sizes = [8, 128], strides = [1, 1]} : vector<8x768xf32> to vector<8x128xf32>
    %402 = arith.addf %400, %401 : vector<8x128xf32>
    %cst_101 = arith.constant 5.000000e-01 : f32
    %403 = vector.broadcast %cst_101 : f32 to vector<8x128xf32>
    %404 = arith.mulf %403, %402 : vector<8x128xf32>
    %405 = math.tanh %404 : vector<8x128xf32>
    %cst_102 = arith.constant 5.000000e-01 : f32
    %406 = vector.broadcast %cst_102 : f32 to vector<8x128xf32>
    %407 = arith.mulf %406, %405 : vector<8x128xf32>
    %cst_103 = arith.constant 5.000000e-01 : f32
    %408 = vector.broadcast %cst_103 : f32 to vector<8x128xf32>
    %409 = arith.addf %407, %408 : vector<8x128xf32>
    %410 = vector.extract_strided_slice %356 {offsets = [0, 256], sizes = [8, 128], strides = [1, 1]} : vector<8x384xf32> to vector<8x128xf32>
    %411 = vector.extract_strided_slice %361 {offsets = [0, 640], sizes = [8, 128], strides = [1, 1]} : vector<8x768xf32> to vector<8x128xf32>
    %412 = arith.mulf %399, %411 : vector<8x128xf32>
    %413 = arith.addf %410, %412 : vector<8x128xf32>
    %414 = math.tanh %413 : vector<8x128xf32>
    %415 = arith.subf %347, %414 : vector<8x128xf32>
    %416 = arith.mulf %409, %415 : vector<8x128xf32>
    %417 = arith.addf %414, %416 : vector<8x128xf32>
    %418 = vector.broadcast %c4_i32 : i32 to vector<8x1xi32>
    %419 = arith.cmpi slt, %418, %14 : vector<8x1xi32>
    %420 = vector.shape_cast %419 : vector<8x1xi1> to vector<8x1xi1>
    %421 = vector.broadcast %420 : vector<8x1xi1> to vector<8x128xi1>
    %422 = arith.select %421, %389, %342 : vector<8x128xi1>, vector<8x128xf32>
    %423 = vector.broadcast %348 : i32 to vector<8x1xi32>
    %424 = arith.cmpi slt, %423, %14 : vector<8x1xi32>
    %425 = vector.shape_cast %424 : vector<8x1xi1> to vector<8x1xi1>
    %426 = vector.broadcast %425 : vector<8x1xi1> to vector<8x128xi1>
    %427 = arith.select %426, %417, %347 : vector<8x128xi1>, vector<8x128xf32>
    %c5_i32 = arith.constant 5 : i32
    %c7_i32_104 = arith.constant 7 : i32
    %428 = arith.subi %c7_i32_104, %c5_i32 : i32
    %c8_i32_105 = arith.constant 8 : i32
    %429 = arith.muli %c5_i32, %c8_i32_105 : i32
    %430 = tpu.assume_multiple %429, 8 : i32
    %c8_i32_106 = arith.constant 8 : i32
    %431 = arith.muli %428, %c8_i32_106 : i32
    %432 = tpu.assume_multiple %431, 8 : i32
    %433 = arith.index_cast %430 : i32 to index
    %c0_107 = arith.constant 0 : index
    %434 = vector.load %arg10[%433, %c0_107] : memref<64x768xf32, #tpu.memory_space<vmem>>, vector<8x384xf32>
    %435 = arith.index_cast %432 : i32 to index
    %c384_108 = arith.constant 384 : index
    %436 = vector.load %arg10[%435, %c384_108] : memref<64x768xf32, #tpu.memory_space<vmem>>, vector<8x384xf32>
    %437 = arith.addf %422, %427 : vector<8x128xf32>
    %438 = arith.truncf %437 : vector<8x128xf32> to vector<8x128xbf16>
    %cst_109 = arith.constant dense<0.000000e+00> : vector<8x768xf32>
    %439 = tpu.matmul %438, %25, %cst_109 {dimension_numbers = #tpu.dot_dimension_numbers<[1], [0], [0], [1], [0, 0, 1, 1], [], []>} : vector<8x128xbf16>, vector<128x768xbf16>, vector<8x768xf32> -> vector<8x768xf32>
    %440 = vector.broadcast %26 : vector<1x768xf32> to vector<8x768xf32>
    %441 = arith.addf %439, %440 : vector<8x768xf32>
    %442 = vector.extract_strided_slice %434 {offsets = [0, 0], sizes = [8, 128], strides = [1, 1]} : vector<8x384xf32> to vector<8x128xf32>
    %443 = vector.extract_strided_slice %441 {offsets = [0, 0], sizes = [8, 128], strides = [1, 1]} : vector<8x768xf32> to vector<8x128xf32>
    %444 = arith.addf %442, %443 : vector<8x128xf32>
    %cst_110 = arith.constant 5.000000e-01 : f32
    %445 = vector.broadcast %cst_110 : f32 to vector<8x128xf32>
    %446 = arith.mulf %445, %444 : vector<8x128xf32>
    %447 = math.tanh %446 : vector<8x128xf32>
    %cst_111 = arith.constant 5.000000e-01 : f32
    %448 = vector.broadcast %cst_111 : f32 to vector<8x128xf32>
    %449 = arith.mulf %448, %447 : vector<8x128xf32>
    %cst_112 = arith.constant 5.000000e-01 : f32
    %450 = vector.broadcast %cst_112 : f32 to vector<8x128xf32>
    %451 = arith.addf %449, %450 : vector<8x128xf32>
    %452 = vector.extract_strided_slice %434 {offsets = [0, 128], sizes = [8, 128], strides = [1, 1]} : vector<8x384xf32> to vector<8x128xf32>
    %453 = vector.extract_strided_slice %441 {offsets = [0, 128], sizes = [8, 128], strides = [1, 1]} : vector<8x768xf32> to vector<8x128xf32>
    %454 = arith.addf %452, %453 : vector<8x128xf32>
    %cst_113 = arith.constant 5.000000e-01 : f32
    %455 = vector.broadcast %cst_113 : f32 to vector<8x128xf32>
    %456 = arith.mulf %455, %454 : vector<8x128xf32>
    %457 = math.tanh %456 : vector<8x128xf32>
    %cst_114 = arith.constant 5.000000e-01 : f32
    %458 = vector.broadcast %cst_114 : f32 to vector<8x128xf32>
    %459 = arith.mulf %458, %457 : vector<8x128xf32>
    %cst_115 = arith.constant 5.000000e-01 : f32
    %460 = vector.broadcast %cst_115 : f32 to vector<8x128xf32>
    %461 = arith.addf %459, %460 : vector<8x128xf32>
    %462 = vector.extract_strided_slice %434 {offsets = [0, 256], sizes = [8, 128], strides = [1, 1]} : vector<8x384xf32> to vector<8x128xf32>
    %463 = vector.extract_strided_slice %441 {offsets = [0, 256], sizes = [8, 128], strides = [1, 1]} : vector<8x768xf32> to vector<8x128xf32>
    %464 = arith.mulf %451, %463 : vector<8x128xf32>
    %465 = arith.addf %462, %464 : vector<8x128xf32>
    %466 = math.tanh %465 : vector<8x128xf32>
    %467 = arith.subf %422, %466 : vector<8x128xf32>
    %468 = arith.mulf %461, %467 : vector<8x128xf32>
    %469 = arith.addf %466, %468 : vector<8x128xf32>
    %470 = vector.extract_strided_slice %436 {offsets = [0, 0], sizes = [8, 128], strides = [1, 1]} : vector<8x384xf32> to vector<8x128xf32>
    %471 = vector.extract_strided_slice %441 {offsets = [0, 384], sizes = [8, 128], strides = [1, 1]} : vector<8x768xf32> to vector<8x128xf32>
    %472 = arith.addf %470, %471 : vector<8x128xf32>
    %cst_116 = arith.constant 5.000000e-01 : f32
    %473 = vector.broadcast %cst_116 : f32 to vector<8x128xf32>
    %474 = arith.mulf %473, %472 : vector<8x128xf32>
    %475 = math.tanh %474 : vector<8x128xf32>
    %cst_117 = arith.constant 5.000000e-01 : f32
    %476 = vector.broadcast %cst_117 : f32 to vector<8x128xf32>
    %477 = arith.mulf %476, %475 : vector<8x128xf32>
    %cst_118 = arith.constant 5.000000e-01 : f32
    %478 = vector.broadcast %cst_118 : f32 to vector<8x128xf32>
    %479 = arith.addf %477, %478 : vector<8x128xf32>
    %480 = vector.extract_strided_slice %436 {offsets = [0, 128], sizes = [8, 128], strides = [1, 1]} : vector<8x384xf32> to vector<8x128xf32>
    %481 = vector.extract_strided_slice %441 {offsets = [0, 512], sizes = [8, 128], strides = [1, 1]} : vector<8x768xf32> to vector<8x128xf32>
    %482 = arith.addf %480, %481 : vector<8x128xf32>
    %cst_119 = arith.constant 5.000000e-01 : f32
    %483 = vector.broadcast %cst_119 : f32 to vector<8x128xf32>
    %484 = arith.mulf %483, %482 : vector<8x128xf32>
    %485 = math.tanh %484 : vector<8x128xf32>
    %cst_120 = arith.constant 5.000000e-01 : f32
    %486 = vector.broadcast %cst_120 : f32 to vector<8x128xf32>
    %487 = arith.mulf %486, %485 : vector<8x128xf32>
    %cst_121 = arith.constant 5.000000e-01 : f32
    %488 = vector.broadcast %cst_121 : f32 to vector<8x128xf32>
    %489 = arith.addf %487, %488 : vector<8x128xf32>
    %490 = vector.extract_strided_slice %436 {offsets = [0, 256], sizes = [8, 128], strides = [1, 1]} : vector<8x384xf32> to vector<8x128xf32>
    %491 = vector.extract_strided_slice %441 {offsets = [0, 640], sizes = [8, 128], strides = [1, 1]} : vector<8x768xf32> to vector<8x128xf32>
    %492 = arith.mulf %479, %491 : vector<8x128xf32>
    %493 = arith.addf %490, %492 : vector<8x128xf32>
    %494 = math.tanh %493 : vector<8x128xf32>
    %495 = arith.subf %427, %494 : vector<8x128xf32>
    %496 = arith.mulf %489, %495 : vector<8x128xf32>
    %497 = arith.addf %494, %496 : vector<8x128xf32>
    %498 = vector.broadcast %c5_i32 : i32 to vector<8x1xi32>
    %499 = arith.cmpi slt, %498, %14 : vector<8x1xi32>
    %500 = vector.shape_cast %499 : vector<8x1xi1> to vector<8x1xi1>
    %501 = vector.broadcast %500 : vector<8x1xi1> to vector<8x128xi1>
    %502 = arith.select %501, %469, %422 : vector<8x128xi1>, vector<8x128xf32>
    %503 = vector.broadcast %428 : i32 to vector<8x1xi32>
    %504 = arith.cmpi slt, %503, %14 : vector<8x1xi32>
    %505 = vector.shape_cast %504 : vector<8x1xi1> to vector<8x1xi1>
    %506 = vector.broadcast %505 : vector<8x1xi1> to vector<8x128xi1>
    %507 = arith.select %506, %497, %427 : vector<8x128xi1>, vector<8x128xf32>
    %c6_i32 = arith.constant 6 : i32
    %c7_i32_122 = arith.constant 7 : i32
    %508 = arith.subi %c7_i32_122, %c6_i32 : i32
    %c8_i32_123 = arith.constant 8 : i32
    %509 = arith.muli %c6_i32, %c8_i32_123 : i32
    %510 = tpu.assume_multiple %509, 8 : i32
    %c8_i32_124 = arith.constant 8 : i32
    %511 = arith.muli %508, %c8_i32_124 : i32
    %512 = tpu.assume_multiple %511, 8 : i32
    %513 = arith.index_cast %510 : i32 to index
    %c0_125 = arith.constant 0 : index
    %514 = vector.load %arg10[%513, %c0_125] : memref<64x768xf32, #tpu.memory_space<vmem>>, vector<8x384xf32>
    %515 = arith.index_cast %512 : i32 to index
    %c384_126 = arith.constant 384 : index
    %516 = vector.load %arg10[%515, %c384_126] : memref<64x768xf32, #tpu.memory_space<vmem>>, vector<8x384xf32>
    %517 = arith.addf %502, %507 : vector<8x128xf32>
    %518 = arith.truncf %517 : vector<8x128xf32> to vector<8x128xbf16>
    %cst_127 = arith.constant dense<0.000000e+00> : vector<8x768xf32>
    %519 = tpu.matmul %518, %25, %cst_127 {dimension_numbers = #tpu.dot_dimension_numbers<[1], [0], [0], [1], [0, 0, 1, 1], [], []>} : vector<8x128xbf16>, vector<128x768xbf16>, vector<8x768xf32> -> vector<8x768xf32>
    %520 = vector.broadcast %26 : vector<1x768xf32> to vector<8x768xf32>
    %521 = arith.addf %519, %520 : vector<8x768xf32>
    %522 = vector.extract_strided_slice %514 {offsets = [0, 0], sizes = [8, 128], strides = [1, 1]} : vector<8x384xf32> to vector<8x128xf32>
    %523 = vector.extract_strided_slice %521 {offsets = [0, 0], sizes = [8, 128], strides = [1, 1]} : vector<8x768xf32> to vector<8x128xf32>
    %524 = arith.addf %522, %523 : vector<8x128xf32>
    %cst_128 = arith.constant 5.000000e-01 : f32
    %525 = vector.broadcast %cst_128 : f32 to vector<8x128xf32>
    %526 = arith.mulf %525, %524 : vector<8x128xf32>
    %527 = math.tanh %526 : vector<8x128xf32>
    %cst_129 = arith.constant 5.000000e-01 : f32
    %528 = vector.broadcast %cst_129 : f32 to vector<8x128xf32>
    %529 = arith.mulf %528, %527 : vector<8x128xf32>
    %cst_130 = arith.constant 5.000000e-01 : f32
    %530 = vector.broadcast %cst_130 : f32 to vector<8x128xf32>
    %531 = arith.addf %529, %530 : vector<8x128xf32>
    %532 = vector.extract_strided_slice %514 {offsets = [0, 128], sizes = [8, 128], strides = [1, 1]} : vector<8x384xf32> to vector<8x128xf32>
    %533 = vector.extract_strided_slice %521 {offsets = [0, 128], sizes = [8, 128], strides = [1, 1]} : vector<8x768xf32> to vector<8x128xf32>
    %534 = arith.addf %532, %533 : vector<8x128xf32>
    %cst_131 = arith.constant 5.000000e-01 : f32
    %535 = vector.broadcast %cst_131 : f32 to vector<8x128xf32>
    %536 = arith.mulf %535, %534 : vector<8x128xf32>
    %537 = math.tanh %536 : vector<8x128xf32>
    %cst_132 = arith.constant 5.000000e-01 : f32
    %538 = vector.broadcast %cst_132 : f32 to vector<8x128xf32>
    %539 = arith.mulf %538, %537 : vector<8x128xf32>
    %cst_133 = arith.constant 5.000000e-01 : f32
    %540 = vector.broadcast %cst_133 : f32 to vector<8x128xf32>
    %541 = arith.addf %539, %540 : vector<8x128xf32>
    %542 = vector.extract_strided_slice %514 {offsets = [0, 256], sizes = [8, 128], strides = [1, 1]} : vector<8x384xf32> to vector<8x128xf32>
    %543 = vector.extract_strided_slice %521 {offsets = [0, 256], sizes = [8, 128], strides = [1, 1]} : vector<8x768xf32> to vector<8x128xf32>
    %544 = arith.mulf %531, %543 : vector<8x128xf32>
    %545 = arith.addf %542, %544 : vector<8x128xf32>
    %546 = math.tanh %545 : vector<8x128xf32>
    %547 = arith.subf %502, %546 : vector<8x128xf32>
    %548 = arith.mulf %541, %547 : vector<8x128xf32>
    %549 = arith.addf %546, %548 : vector<8x128xf32>
    %550 = vector.extract_strided_slice %516 {offsets = [0, 0], sizes = [8, 128], strides = [1, 1]} : vector<8x384xf32> to vector<8x128xf32>
    %551 = vector.extract_strided_slice %521 {offsets = [0, 384], sizes = [8, 128], strides = [1, 1]} : vector<8x768xf32> to vector<8x128xf32>
    %552 = arith.addf %550, %551 : vector<8x128xf32>
    %cst_134 = arith.constant 5.000000e-01 : f32
    %553 = vector.broadcast %cst_134 : f32 to vector<8x128xf32>
    %554 = arith.mulf %553, %552 : vector<8x128xf32>
    %555 = math.tanh %554 : vector<8x128xf32>
    %cst_135 = arith.constant 5.000000e-01 : f32
    %556 = vector.broadcast %cst_135 : f32 to vector<8x128xf32>
    %557 = arith.mulf %556, %555 : vector<8x128xf32>
    %cst_136 = arith.constant 5.000000e-01 : f32
    %558 = vector.broadcast %cst_136 : f32 to vector<8x128xf32>
    %559 = arith.addf %557, %558 : vector<8x128xf32>
    %560 = vector.extract_strided_slice %516 {offsets = [0, 128], sizes = [8, 128], strides = [1, 1]} : vector<8x384xf32> to vector<8x128xf32>
    %561 = vector.extract_strided_slice %521 {offsets = [0, 512], sizes = [8, 128], strides = [1, 1]} : vector<8x768xf32> to vector<8x128xf32>
    %562 = arith.addf %560, %561 : vector<8x128xf32>
    %cst_137 = arith.constant 5.000000e-01 : f32
    %563 = vector.broadcast %cst_137 : f32 to vector<8x128xf32>
    %564 = arith.mulf %563, %562 : vector<8x128xf32>
    %565 = math.tanh %564 : vector<8x128xf32>
    %cst_138 = arith.constant 5.000000e-01 : f32
    %566 = vector.broadcast %cst_138 : f32 to vector<8x128xf32>
    %567 = arith.mulf %566, %565 : vector<8x128xf32>
    %cst_139 = arith.constant 5.000000e-01 : f32
    %568 = vector.broadcast %cst_139 : f32 to vector<8x128xf32>
    %569 = arith.addf %567, %568 : vector<8x128xf32>
    %570 = vector.extract_strided_slice %516 {offsets = [0, 256], sizes = [8, 128], strides = [1, 1]} : vector<8x384xf32> to vector<8x128xf32>
    %571 = vector.extract_strided_slice %521 {offsets = [0, 640], sizes = [8, 128], strides = [1, 1]} : vector<8x768xf32> to vector<8x128xf32>
    %572 = arith.mulf %559, %571 : vector<8x128xf32>
    %573 = arith.addf %570, %572 : vector<8x128xf32>
    %574 = math.tanh %573 : vector<8x128xf32>
    %575 = arith.subf %507, %574 : vector<8x128xf32>
    %576 = arith.mulf %569, %575 : vector<8x128xf32>
    %577 = arith.addf %574, %576 : vector<8x128xf32>
    %578 = vector.broadcast %c6_i32 : i32 to vector<8x1xi32>
    %579 = arith.cmpi slt, %578, %14 : vector<8x1xi32>
    %580 = vector.shape_cast %579 : vector<8x1xi1> to vector<8x1xi1>
    %581 = vector.broadcast %580 : vector<8x1xi1> to vector<8x128xi1>
    %582 = arith.select %581, %549, %502 : vector<8x128xi1>, vector<8x128xf32>
    %583 = vector.broadcast %508 : i32 to vector<8x1xi32>
    %584 = arith.cmpi slt, %583, %14 : vector<8x1xi32>
    %585 = vector.shape_cast %584 : vector<8x1xi1> to vector<8x1xi1>
    %586 = vector.broadcast %585 : vector<8x1xi1> to vector<8x128xi1>
    %587 = arith.select %586, %577, %507 : vector<8x128xi1>, vector<8x128xf32>
    %c7_i32_140 = arith.constant 7 : i32
    %c7_i32_141 = arith.constant 7 : i32
    %588 = arith.subi %c7_i32_141, %c7_i32_140 : i32
    %c8_i32_142 = arith.constant 8 : i32
    %589 = arith.muli %c7_i32_140, %c8_i32_142 : i32
    %590 = tpu.assume_multiple %589, 8 : i32
    %c8_i32_143 = arith.constant 8 : i32
    %591 = arith.muli %588, %c8_i32_143 : i32
    %592 = tpu.assume_multiple %591, 8 : i32
    %593 = arith.index_cast %590 : i32 to index
    %c0_144 = arith.constant 0 : index
    %594 = vector.load %arg10[%593, %c0_144] : memref<64x768xf32, #tpu.memory_space<vmem>>, vector<8x384xf32>
    %595 = arith.index_cast %592 : i32 to index
    %c384_145 = arith.constant 384 : index
    %596 = vector.load %arg10[%595, %c384_145] : memref<64x768xf32, #tpu.memory_space<vmem>>, vector<8x384xf32>
    %597 = arith.addf %582, %587 : vector<8x128xf32>
    %598 = arith.truncf %597 : vector<8x128xf32> to vector<8x128xbf16>
    %cst_146 = arith.constant dense<0.000000e+00> : vector<8x768xf32>
    %599 = tpu.matmul %598, %25, %cst_146 {dimension_numbers = #tpu.dot_dimension_numbers<[1], [0], [0], [1], [0, 0, 1, 1], [], []>} : vector<8x128xbf16>, vector<128x768xbf16>, vector<8x768xf32> -> vector<8x768xf32>
    %600 = vector.broadcast %26 : vector<1x768xf32> to vector<8x768xf32>
    %601 = arith.addf %599, %600 : vector<8x768xf32>
    %602 = vector.extract_strided_slice %594 {offsets = [0, 0], sizes = [8, 128], strides = [1, 1]} : vector<8x384xf32> to vector<8x128xf32>
    %603 = vector.extract_strided_slice %601 {offsets = [0, 0], sizes = [8, 128], strides = [1, 1]} : vector<8x768xf32> to vector<8x128xf32>
    %604 = arith.addf %602, %603 : vector<8x128xf32>
    %cst_147 = arith.constant 5.000000e-01 : f32
    %605 = vector.broadcast %cst_147 : f32 to vector<8x128xf32>
    %606 = arith.mulf %605, %604 : vector<8x128xf32>
    %607 = math.tanh %606 : vector<8x128xf32>
    %cst_148 = arith.constant 5.000000e-01 : f32
    %608 = vector.broadcast %cst_148 : f32 to vector<8x128xf32>
    %609 = arith.mulf %608, %607 : vector<8x128xf32>
    %cst_149 = arith.constant 5.000000e-01 : f32
    %610 = vector.broadcast %cst_149 : f32 to vector<8x128xf32>
    %611 = arith.addf %609, %610 : vector<8x128xf32>
    %612 = vector.extract_strided_slice %594 {offsets = [0, 128], sizes = [8, 128], strides = [1, 1]} : vector<8x384xf32> to vector<8x128xf32>
    %613 = vector.extract_strided_slice %601 {offsets = [0, 128], sizes = [8, 128], strides = [1, 1]} : vector<8x768xf32> to vector<8x128xf32>
    %614 = arith.addf %612, %613 : vector<8x128xf32>
    %cst_150 = arith.constant 5.000000e-01 : f32
    %615 = vector.broadcast %cst_150 : f32 to vector<8x128xf32>
    %616 = arith.mulf %615, %614 : vector<8x128xf32>
    %617 = math.tanh %616 : vector<8x128xf32>
    %cst_151 = arith.constant 5.000000e-01 : f32
    %618 = vector.broadcast %cst_151 : f32 to vector<8x128xf32>
    %619 = arith.mulf %618, %617 : vector<8x128xf32>
    %cst_152 = arith.constant 5.000000e-01 : f32
    %620 = vector.broadcast %cst_152 : f32 to vector<8x128xf32>
    %621 = arith.addf %619, %620 : vector<8x128xf32>
    %622 = vector.extract_strided_slice %594 {offsets = [0, 256], sizes = [8, 128], strides = [1, 1]} : vector<8x384xf32> to vector<8x128xf32>
    %623 = vector.extract_strided_slice %601 {offsets = [0, 256], sizes = [8, 128], strides = [1, 1]} : vector<8x768xf32> to vector<8x128xf32>
    %624 = arith.mulf %611, %623 : vector<8x128xf32>
    %625 = arith.addf %622, %624 : vector<8x128xf32>
    %626 = math.tanh %625 : vector<8x128xf32>
    %627 = arith.subf %582, %626 : vector<8x128xf32>
    %628 = arith.mulf %621, %627 : vector<8x128xf32>
    %629 = arith.addf %626, %628 : vector<8x128xf32>
    %630 = vector.extract_strided_slice %596 {offsets = [0, 0], sizes = [8, 128], strides = [1, 1]} : vector<8x384xf32> to vector<8x128xf32>
    %631 = vector.extract_strided_slice %601 {offsets = [0, 384], sizes = [8, 128], strides = [1, 1]} : vector<8x768xf32> to vector<8x128xf32>
    %632 = arith.addf %630, %631 : vector<8x128xf32>
    %cst_153 = arith.constant 5.000000e-01 : f32
    %633 = vector.broadcast %cst_153 : f32 to vector<8x128xf32>
    %634 = arith.mulf %633, %632 : vector<8x128xf32>
    %635 = math.tanh %634 : vector<8x128xf32>
    %cst_154 = arith.constant 5.000000e-01 : f32
    %636 = vector.broadcast %cst_154 : f32 to vector<8x128xf32>
    %637 = arith.mulf %636, %635 : vector<8x128xf32>
    %cst_155 = arith.constant 5.000000e-01 : f32
    %638 = vector.broadcast %cst_155 : f32 to vector<8x128xf32>
    %639 = arith.addf %637, %638 : vector<8x128xf32>
    %640 = vector.extract_strided_slice %596 {offsets = [0, 128], sizes = [8, 128], strides = [1, 1]} : vector<8x384xf32> to vector<8x128xf32>
    %641 = vector.extract_strided_slice %601 {offsets = [0, 512], sizes = [8, 128], strides = [1, 1]} : vector<8x768xf32> to vector<8x128xf32>
    %642 = arith.addf %640, %641 : vector<8x128xf32>
    %cst_156 = arith.constant 5.000000e-01 : f32
    %643 = vector.broadcast %cst_156 : f32 to vector<8x128xf32>
    %644 = arith.mulf %643, %642 : vector<8x128xf32>
    %645 = math.tanh %644 : vector<8x128xf32>
    %cst_157 = arith.constant 5.000000e-01 : f32
    %646 = vector.broadcast %cst_157 : f32 to vector<8x128xf32>
    %647 = arith.mulf %646, %645 : vector<8x128xf32>
    %cst_158 = arith.constant 5.000000e-01 : f32
    %648 = vector.broadcast %cst_158 : f32 to vector<8x128xf32>
    %649 = arith.addf %647, %648 : vector<8x128xf32>
    %650 = vector.extract_strided_slice %596 {offsets = [0, 256], sizes = [8, 128], strides = [1, 1]} : vector<8x384xf32> to vector<8x128xf32>
    %651 = vector.extract_strided_slice %601 {offsets = [0, 640], sizes = [8, 128], strides = [1, 1]} : vector<8x768xf32> to vector<8x128xf32>
    %652 = arith.mulf %639, %651 : vector<8x128xf32>
    %653 = arith.addf %650, %652 : vector<8x128xf32>
    %654 = math.tanh %653 : vector<8x128xf32>
    %655 = arith.subf %587, %654 : vector<8x128xf32>
    %656 = arith.mulf %649, %655 : vector<8x128xf32>
    %657 = arith.addf %654, %656 : vector<8x128xf32>
    %658 = vector.broadcast %c7_i32_140 : i32 to vector<8x1xi32>
    %659 = arith.cmpi slt, %658, %14 : vector<8x1xi32>
    %660 = vector.shape_cast %659 : vector<8x1xi1> to vector<8x1xi1>
    %661 = vector.broadcast %660 : vector<8x1xi1> to vector<8x128xi1>
    %662 = arith.select %661, %629, %582 : vector<8x128xi1>, vector<8x128xf32>
    %663 = vector.broadcast %588 : i32 to vector<8x1xi32>
    %664 = arith.cmpi slt, %663, %14 : vector<8x1xi32>
    %665 = vector.shape_cast %664 : vector<8x1xi1> to vector<8x1xi1>
    %666 = vector.broadcast %665 : vector<8x1xi1> to vector<8x128xi1>
    %667 = arith.select %666, %657, %587 : vector<8x128xi1>, vector<8x128xf32>
    %c8_i32_159 = arith.constant 8 : i32
    %668 = arith.addf %662, %667 : vector<8x128xf32>
    %c0_160 = arith.constant 0 : index
    %c0_161 = arith.constant 0 : index
    %669 = vector.load %arg5[%c0_160, %c0_161] : memref<128x32xf32, #tpu.memory_space<vmem>>, vector<128x32xf32>
    %cst_162 = arith.constant dense<0.000000e+00> : vector<8x32xf32>
    %670 = tpu.matmul %668, %669, %cst_162 {dimension_numbers = #tpu.dot_dimension_numbers<[1], [0], [0], [1], [0, 0, 1, 1], [], []>} : vector<8x128xf32>, vector<128x32xf32>, vector<8x32xf32> -> vector<8x32xf32>
    %c0_163 = arith.constant 0 : index
    %c0_164 = arith.constant 0 : index
    %671 = vector.load %arg6[%c0_163, %c0_164] : memref<1x32xf32, #tpu.memory_space<vmem>>, vector<1x32xf32>
    %672 = vector.broadcast %671 : vector<1x32xf32> to vector<8x32xf32>
    %673 = arith.addf %670, %672 : vector<8x32xf32>
    %cst_165 = arith.constant 0.000000e+00 : f32
    %674 = vector.broadcast %cst_165 : f32 to vector<8x32xf32>
    %675 = arith.maximumf %673, %674 : vector<8x32xf32>
    %c0_166 = arith.constant 0 : index
    %c0_167 = arith.constant 0 : index
    %676 = vector.load %arg7[%c0_166, %c0_167] : memref<32x1xf32, #tpu.memory_space<vmem>>, vector<32x1xf32>
    %cst_168 = arith.constant dense<0.000000e+00> : vector<8x1xf32>
    %677 = tpu.matmul %675, %676, %cst_168 {dimension_numbers = #tpu.dot_dimension_numbers<[1], [0], [0], [1], [0, 0, 1, 1], [], []>} : vector<8x32xf32>, vector<32x1xf32>, vector<8x1xf32> -> vector<8x1xf32>
    %c0_169 = arith.constant 0 : index
    %c0_170 = arith.constant 0 : index
    %678 = vector.load %arg8[%c0_169, %c0_170] : memref<1x1xf32, #tpu.memory_space<vmem>>, vector<1x1xf32>
    %679 = vector.broadcast %678 : vector<1x1xf32> to vector<8x1xf32>
    %680 = arith.addf %677, %679 : vector<8x1xf32>
    %681 = vector.extract_strided_slice %680 {offsets = [0, 0], sizes = [4, 1], strides = [1, 1]} : vector<8x1xf32> to vector<4x1xf32>
    %c0_171 = arith.constant 0 : index
    %c0_172 = arith.constant 0 : index
    %682 = vector.load %arg9[%c0_171, %c0_172] : memref<4x1xf32, #tpu.memory_space<vmem>>, vector<4x1xf32>
    tpu.vector_store %arg9[%c0_171, %c0_172], %681 {strides = array<i32>} : memref<4x1xf32, #tpu.memory_space<vmem>>, vector<4x1xf32>,
    return
  }
}

</mosaic_0001>

<bundles_post_ra>
// kernel: gru_model_forward.1
= control target key start
LH: loop header
LB: loop body
LE: loop exit
PB: predicated region body
PF: predicated region fallthrough
CT: control target
= control target key end

     0   :  { %s4157_s0 = inlined_call_operand.vmem [shape: s32[8,8], index: 0, kind: input, shape index: {}]   ;;  %s4158_s1 = inlined_call_operand.vmem [shape: s32[64,1], index: 1, kind: input, shape index: {}]   ;;  %s4159_s2 = inlined_call_operand.vmem [shape: bf16[64,768], index: 2, kind: input, shape index: {}]   ;;  %s4160_s3 = inlined_call_operand.hbm [shape: bf16[128,768], index: 3, kind: input, shape index: {}]   ;;  %s4161_s4 = inlined_call_operand.vmem [shape: f32[1,768], index: 4, kind: input, shape index: {}]   ;;  %s4162_s5 = inlined_call_operand.vmem [shape: f32[128,32], index: 5, kind: input, shape index: {}]   ;;  %s4163_s6 = inlined_call_operand.vmem [shape: f32[1,32], index: 6, kind: input, shape index: {}]   ;;  %s4164_s7 = inlined_call_operand.vmem [shape: f32[32,1], index: 7, kind: input, shape index: {}]   ;;  %s4165_s8 = inlined_call_operand.<no memory space> [shape: f32[1,1], index: 8, kind: input, shape index: {}]   ;;  %s4166_s9 = inlined_call_operand.vmem [shape: f32[4,1], index: 9, kind: output, shape index: {}]  }
   0x1   :  { %v14_v0 = vstv %s4165_s8 }
   0x2   :  { %15 = vst [vmem:[#allocation3] sm:$0x1] %v14_v0 }
   0x3   :  { %16 = vsyncpa [#allocation5], 0  ;;  %s2916_s11 = smov [#allocation4]   ;;  %s2892_s15 = scalar_lea.hbm %s4160_s3, 6144 }
   0x4   :  { %s28_s12 = sshll.u32 %s2916_s11, 4  ;;  %p2893_p0 = scmp.ne.s32.totalorder %s4160_s3, %s2892_s15  ;;  %s29_s12 = int_to_ptr.vmem [resolvable:$true] %s28_s12 }
   0x5   :  { %p2896_p1 = scmp.lt.u32.totalorder %s2892_s15, %s4160_s3 }
   0x7   :  { %p2898_p2 = pnand %p2896_p1, %p2893_p0 }
   0x9   :  { %2901 = shalt.err (!%p2898_p2)
}
   0xa   :  { %s2902_s8 = scalar_lea.vmem %s29_s12, 6144  ;;  %p2907_p4 = scmp.lt.s32.totalorder %s29_s12, %s29_s12 }
   0xb   :  { %p2903_p3 = scmp.ne.s32.totalorder %s29_s12, %s2902_s8  ;;  %p2908_p5 = scmp.lt.s32.totalorder %s2902_s8, %s2902_s8 }
   0xd   :  { %p2909_p6 = por %p2908_p5, %p2907_p4 }
   0xf   :  { %p2910_p7 = pnand %p2909_p6, %p2903_p3 }
  0x11   :  { %2913 = shalt.err (!%p2910_p7)
}
  0x12   :  { %s2917_s20 = smov 384   ;;  %s2918_s21 = smov 24  }
  0x13   :  { %34 = dma.hbm_to_vmem [thread:$0]  %s4160_s3, 6144, %s29_s12, [#allocation5], %s2917_s20, %s2917_s20, %s2918_s21  }
  0x14   :  { %2914 = dma.done.wait [#allocation5], 6144  }
  0x15   :  { %2915 = vsyncadd [#allocation5], 4294961152  ;;  %v4169_v1 = vmov 0   ;;  %v76_v2 = vld [vmem:[%s4158_s1 + $0x10] sm:$0xff]  ;;  %v74_v3 = vld [vmem:[%s4158_s1] sm:$0xff]  ;;  %v4171_v28 = vlaneseq  ;;  %vm54_vm1 = vcmask 64512  }
  0x16   :  { %2639 = vset.pattern.permute.xlu1 %v4169_v1  ;;  %2638 = vset.pattern.permute.xlu0 %v4169_v1  ;;  %v77_v4 = vld [vmem:[%s4158_s1 + $0x18] sm:$0xff]  ;;  %v75_v5 = vld [vmem:[%s4158_s1 + $0x8] sm:$0xff]  ;;  %v78_v9 = vld [vmem:[%s4158_s1 + $0x20] sm:$0xff]  ;;  %vm278_vm4 = vcmask 523264   ;;  %v4167_v38 = vmov 0.0  }
  0x17   :  { %323 = vmatprep.mubr.bf16.mxu0 %v4169_v1  ;;  %396 = vmatprep.mubr.bf16.mxu1 %v4169_v1  ;;  %v2640_v6 = vld [vmem:[%s4159_s2 + $0x4] ss:$24 sps:$4 sm:$0xff]   ;;  %v79_v7 = vld [vmem:[%s4158_s1 + $0x28] sm:$0xff]  ;;  %v2644_v10 = vld [vmem:[%s4159_s2] ss:$24 sps:$4 sm:$0xff]   ;;  %v3074_v30 = vand.u32 127, %v4171_v28 }
  0x18   :  { %89 = vperm.xlu1 %2639, %v76_v2   ;;  %83 = vperm.xlu0 %2638, %v74_v3   ;;  %v2642_v8 = vld [vmem:[%s4159_s2 + $0xc] ss:$24 sps:$4 sm:$0xff]   ;;  %v2645_v11 = vld [vmem:[%s4159_s2 + $0x8] ss:$24 sps:$4 sm:$0xff]   ;;  %v2648_v13 = vld [vmem:[%s4159_s2 + $0x3c] ss:$24 sps:$4 sm:$0xff]  }
  0x19   :  { %291 = vmatprep.subr.bf16.mxu0 %v2640_v6  ;;  %364 = vmatprep.subr.bf16.mxu1 %v2642_v8  ;;  %v2646_v12 = vld [vmem:[%s4159_s2 + $0x34] ss:$24 sps:$4 sm:$0xff]   ;;  %v81_v14 = vld [vmem:[%s4158_s1 + $0x38] sm:$0xff]  ;;  %v2650_v16 = vld [vmem:[%s4159_s2 + $0x30] ss:$24 sps:$4 sm:$0xff]  }
  0x1a   :  { %292 = vmatpush1.bf16.msra.mxu0 %v2644_v10  ;;  %365 = vmatpush1.bf16.msra.mxu1 %v2645_v11  ;;  %v80_v15 = vld [vmem:[%s4158_s1 + $0x30] sm:$0xff]  ;;  %v2652_v18 = vld [vmem:[%s4159_s2 + $0x64] ss:$24 sps:$4 sm:$0xff]   ;;  %v2656_v20 = vld [vmem:[%s4159_s2 + $0x60] ss:$24 sps:$4 sm:$0xff]  }
  0x1b   :  { %293 = vmatprep.subr.bf16.mxu0 %v2646_v12  ;;  %v2651_v17 = vld [vmem:[%s4159_s2 + $0x38] ss:$24 sps:$4 sm:$0xff]   ;;  %366 = vmatprep.subr.bf16.mxu1 %v2648_v13  ;;  %v2654_v19 = vld [vmem:[%s4159_s2 + $0x6c] ss:$24 sps:$4 sm:$0xff]   ;;  %v2657_v21 = vld [vmem:[%s4159_s2 + $0x68] ss:$24 sps:$4 sm:$0xff]  }
  0x1c   :  { %92 = vperm.xlu1 %2639, %v77_v4   ;;  %86 = vperm.xlu0 %2638, %v75_v5   ;;  %v2658_v22 = vld [vmem:[%s4159_s2 + $0x94] ss:$24 sps:$4 sm:$0xff]   ;;  %v2662_v24 = vld [vmem:[%s4159_s2 + $0x90] ss:$24 sps:$4 sm:$0xff]   ;;  %v49_v29 = vld [vmem:[%s4157_s0] sm:$0xff] }
  0x1d   :  { %v2660_v23 = vld [vmem:[%s4159_s2 + $0x9c] ss:$24 sps:$4 sm:$0xff]   ;;  %v2663_v25 = vld [vmem:[%s4159_s2 + $0x98] ss:$24 sps:$4 sm:$0xff]   ;;  %vm52_vm0 = vcmp.eq.s32.totalorder %v49_v29, 0 }
  0x1e   :  { %294 = vmatpush1.bf16.msra.mxu0 %v2650_v16  ;;  %367 = vmatpush1.bf16.msra.mxu1 %v2651_v17  ;;  %v2666_v26 = vld [vmem:[%s4159_s2 + $0x14] ss:$24 sps:$4 sm:$0xff]   ;;  %v3067_v27 = vld [vmem:[#allocation4 + $0x4] ss:$24 sps:$4 sm:$0xff]   ;;  %v53_v31 = vsel %vm52_vm0, %v3074_v30, 9 }
  0x1f   :  { %295 = vmatprep.subr.bf16.mxu0 %v2652_v18  ;;  %368 = vmatprep.subr.bf16.mxu1 %v2654_v19  ;;  %4231 = vst [vmem:[#allocation7_spill] sm:$0xff] %v3067_v27  ;;  %v3077_v32 = vsel %vm54_vm1, %v53_v31, 2147483647  ;;  %v2664_v41 = vld [vmem:[%s4159_s2 + $0x10] ss:$24 sps:$4 sm:$0xff]  }
  0x20   :  { %98 = vperm.xlu1 %2639, %v79_v7   ;;  %95 = vperm.xlu0 %2638, %v78_v9   ;;  %v57_v33 = vshra.s32 %v3077_v32, 16  ;;  %v3090_v42 = vld [vmem:[#allocation4] ss:$24 sps:$4 sm:$0xff]   ;;  %v3094_v44 = vld [vmem:[#allocation4 + $0x34] ss:$24 sps:$4 sm:$0xff]  }
  0x21   :  { %v2675_v46 = vld [vmem:[%s4159_s2 + $0x44] ss:$24 sps:$4 sm:$0xff]   ;;  %v3106_v47 = vld [vmem:[#allocation4 + $0x30] ss:$24 sps:$4 sm:$0xff]   ;;  %v2673_v48 = vld [vmem:[%s4159_s2 + $0x40] ss:$24 sps:$4 sm:$0xff]  }
  0x22   :  { %296 = vmatpush1.bf16.msra.mxu0 %v2656_v20  ;;  %369 = vmatpush1.bf16.msra.mxu1 %v2657_v21  ;;  %v3080_v34 = vcvt.s32.f32 %v57_v33  ;;  %v3113_v49 = vld [vmem:[#allocation4 + $0x64] ss:$24 sps:$4 sm:$0xff]   ;;  %v2684_v50 = vld [vmem:[%s4159_s2 + $0x74] ss:$24 sps:$4 sm:$0xff]   ;;  %v3122_v55 = vld [vmem:[#allocation4 + $0x60] ss:$24 sps:$4 sm:$0xff]  }
  0x23   :  { %297 = vmatprep.subr.bf16.mxu0 %v2658_v22  ;;  %370 = vmatprep.subr.bf16.mxu1 %v2660_v23  ;;  %v3127_v57 = vld [vmem:[#allocation4 + $0x94] ss:$24 sps:$4 sm:$0xff]   ;;  %v2693_v59 = vld [vmem:[%s4159_s2 + $0xa4] ss:$24 sps:$4 sm:$0xff]   ;;  %v3142_v60 = vld [vmem:[#allocation4 + $0x90] ss:$24 sps:$4 sm:$0xff]  }
  0x24   :  { %104 = vperm.xlu1 %2639, %v81_v14   ;;  %101 = vperm.xlu0 %2638, %v80_v15   ;;  %v2682_v58 = vld [vmem:[%s4159_s2 + $0x70] ss:$24 sps:$4 sm:$0xff]   ;;  %v2691_v0 = vld [vmem:[%s4159_s2 + $0xa0] ss:$24 sps:$4 sm:$0xff]  }
  0x25   :  { %v3147_v61 = vld [vmem:[#allocation4 + $0xc4] ss:$24 sps:$4 sm:$0xff]   ;;  %v3155_v4 = vld [vmem:[#allocation4 + $0xc0] ss:$24 sps:$4 sm:$0xff]   ;;  %v3160_v6 = vld [vmem:[#allocation4 + $0xf4] ss:$24 sps:$4 sm:$0xff]  }
  0x26   :  { %298 = vmatpush1.bf16.msra.mxu0 %v2662_v24  ;;  %371 = vmatpush1.bf16.msra.mxu1 %v2663_v25  ;;  %v3162_v7 = vld [vmem:[#allocation4 + $0xc] ss:$24 sps:$4 sm:$0xff]   ;;  %v3171_v8 = vld [vmem:[#allocation4 + $0xf0] ss:$24 sps:$4 sm:$0xff]   ;;  %v3182_v12 = vld [vmem:[#allocation4 + $0x120] ss:$24 sps:$4 sm:$0xff]  }
  0x27   :  { %437 = vmatprep.subr.bf16.mxu0 %v2666_v26  ;;  %890 = vmatprep.subr.bf16.mxu1 %v3067_v27  ;;  %v3176_v9 = vld [vmem:[#allocation4 + $0x124] ss:$24 sps:$4 sm:$0xff]   ;;  %v3187_v14 = vld [vmem:[#allocation4 + $0x154] ss:$24 sps:$4 sm:$0xff]   ;;  %v3194_v15 = vld [vmem:[#allocation4 + $0x150] ss:$24 sps:$4 sm:$0xff]  }
  0x28   :  { %v3199_v16 = vld [vmem:[#allocation4 + $0x14] ss:$24 sps:$4 sm:$0xff]   ;;  %v3202_v17 = vld [vmem:[#allocation4 + $0x8] ss:$24 sps:$4 sm:$0xff]   ;;  %v3209_v20 = vld [vmem:[#allocation4 + $0x44] ss:$24 sps:$4 sm:$0xff]  }
  0x29   :  { %v3204_v18 = vld [vmem:[#allocation4 + $0x10] ss:$24 sps:$4 sm:$0xff]   ;;  %v3207_v19 = vld [vmem:[#allocation4 + $0x3c] ss:$24 sps:$4 sm:$0xff]   ;;  %v3218_v22 = vld [vmem:[#allocation4 + $0x40] ss:$24 sps:$4 sm:$0xff]  }
  0x2a   :  { %v3216_v21 = vld [vmem:[#allocation4 + $0x38] ss:$24 sps:$4 sm:$0xff]   ;;  %v3222_v23 = vld [vmem:[#allocation4 + $0x6c] ss:$24 sps:$4 sm:$0xff]   ;;  %v3230_v25 = vld [vmem:[#allocation4 + $0x68] ss:$24 sps:$4 sm:$0xff]  }
  0x2b   :  { %4232 = vst [vmem:[#allocation8_spill] sm:$0xff] %v3222_v23  ;;  %v3224_v24 = vld [vmem:[#allocation4 + $0x74] ss:$24 sps:$4 sm:$0xff]   ;;  %4233 = vst [vmem:[#allocation9_spill] sm:$0xff] %v3230_v25  ;;  %v3232_v26 = vld [vmem:[#allocation4 + $0x70] ss:$24 sps:$4 sm:$0xff]  }
  0x2c   :  { %v3236_v29 = vld [vmem:[#allocation4 + $0x9c] ss:$24 sps:$4 sm:$0xff]   ;;  %v3244_v31 = vld [vmem:[#allocation4 + $0x98] ss:$24 sps:$4 sm:$0xff]  }
  0x2d   :  { %4234 = vst [vmem:[#allocation10_spill] sm:$0xff] %v3236_v29  ;;  %4235 = vst [vmem:[#allocation11_spill] sm:$0xff] %v3244_v31  ;;  %v3246_v33 = vld [vmem:[#allocation4 + $0xa0] ss:$24 sps:$4 sm:$0xff]  }
  0x43   :  { %60 = vmin.xlane.f32.xlu0 %v3080_v34 }
  0x97   :  { %v84_v35 = vpop.permute.xlu0 %83  ;;  %v90_v36 = vpop.permute.xlu1 %89 }
  0x98   :  { %vm106_vm2 = vcmp.eq.s32.totalorder %v3074_v30, %v84_v35  ;;  %vm108_vm5 = vcmp.eq.s32.totalorder %v3074_v30, %v90_v36  ;;  %v3250_v35 = vld [vmem:[#allocation4 + $0xcc] ss:$24 sps:$4 sm:$0xff]  }
  0x99   :  { %v2438_v39 = vsel %vm106_vm2, 1.0, %v4167_v38  ;;  %v2440_v51 = vsel %vm108_vm5, 1.0, %v4167_v38  ;;  %4236 = vst [vmem:[#allocation12_spill] sm:$0xff] %v3250_v35  ;;  %v3252_v36 = vld [vmem:[#allocation4 + $0xd4] ss:$24 sps:$4 sm:$0xff]  }
  0x9b   :  { %v87_v37 = vpop.permute.xlu0 %86  ;;  %v93_v45 = vpop.permute.xlu1 %92 }
  0x9c   :  { %vm107_vm3 = vcmp.eq.s32.totalorder %v3074_v30, %v87_v37  ;;  %vm109_vm6 = vcmp.eq.s32.totalorder %v3074_v30, %v93_v45  ;;  %v56_v37 = vand.u32 65535, %v3077_v32 }
  0x9d   :  { %v2439_v40 = vsel %vm107_vm3, 1.0, %v4167_v38  ;;  %v2441_v52 = vsel %vm109_vm6, 1.0, %v4167_v38 }
  0x9e   :  { %v3092_v43 = vpack.c.bf16 %v2439_v40, %v2438_v39  ;;  %v3124_v56 = vpack.c.bf16 %v2441_v52, %v2440_v51  ;;  %v3258_v39 = vld [vmem:[#allocation4 + $0xc8] ss:$24 sps:$4 sm:$0xff]   ;;  %v58_v45 = vcvt.s32.f32 %v56_v37  ;;  %v3282_v51 = vld [vmem:[#allocation4 + $0x12c] ss:$24 sps:$4 sm:$0xff]  }
  0x9f   :  { %v99_v53 = vpop.permute.xlu1 %98  ;;  %v96_v54 = vpop.permute.xlu0 %95  ;;  %4237 = vst [vmem:[#allocation13_spill] sm:$0xff] %v3258_v39  ;;  %v3260_v40 = vld [vmem:[#allocation4 + $0xd0] ss:$24 sps:$4 sm:$0xff]   ;;  %4240 = vst [vmem:[#allocation16_spill] sm:$0xff] %v3282_v51  ;;  %v3284_v52 = vld [vmem:[#allocation4 + $0x134] ss:$24 sps:$4 sm:$0xff]  }
  0xa0   :  { %2470 = vmatmul.mubr.msk.bf16.vlgmr.msra.gmra.mrb[0].mxu0 %vm278_vm4, %v3092_v43  ;;  %2474 = vmatmul.mubr.msk.bf16.vlgmr.msra.gmra.mrb[0].mxu1 %vm278_vm4, %v3092_v43  ;;  %vm111_vm7 = vcmp.eq.s32.totalorder %v3074_v30, %v99_v53  ;;  %vm110_vm8 = vcmp.eq.s32.totalorder %v3074_v30, %v96_v54  ;;  %v3291_v53 = vld [vmem:[#allocation4 + $0x130] ss:$24 sps:$4 sm:$0xff]   ;;  %v3295_v54 = vld [vmem:[#allocation4 + $0x15c] ss:$24 sps:$4 sm:$0xff]  }
  0xa1   :  { %438 = vmatpush1.bf16.msra.mxu0 %v2664_v41  ;;  %891 = vmatpush1.bf16.msra.mxu1 %v3090_v42  ;;  %v2443_v62 = vsel %vm111_vm7, 1.0, %v4167_v38  ;;  %v2442_v63 = vsel %vm110_vm8, 1.0, %v4167_v38  ;;  %v3264_v41 = vld [vmem:[#allocation4 + $0xfc] ss:$24 sps:$4 sm:$0xff]   ;;  %4242 = vst [vmem:[#allocation18_spill] sm:$0xff] %v3295_v54  ;;  %vm2922_vm7 = vmmov 0  }
  0xa2   :  { %892 = vmatprep.subr.bf16.mxu1 %v3094_v44  ;;  %333 = vmatprep.mubr.bf16.mxu0 %v4169_v1  ;;  %v3157_v5 = vpack.c.bf16 %v2443_v62, %v2442_v63  ;;  %4238 = vst [vmem:[#allocation14_spill] sm:$0xff] %v3264_v41  ;;  %vm2350_vm8 = vcmask 261120  }
  0xa3   :  { %406 = vmatprep.mubr.bf16.mxu1 %v4169_v1  ;;  %439 = vmatprep.subr.bf16.mxu0 %v2675_v46  ;;  %v105_v2 = vpop.permute.xlu1 %104  ;;  %v102_v3 = vpop.permute.xlu0 %101  ;;  %v3276_v46 = vld [vmem:[#allocation4 + $0xf8] ss:$24 sps:$4 sm:$0xff]  }
  0xa4   :  { %vm113_vm9 = vcmp.eq.s32.totalorder %v3074_v30, %v105_v2  ;;  %vm112_vm10 = vcmp.eq.s32.totalorder %v3074_v30, %v102_v3  ;;  %v3238_v30 = vld [vmem:[#allocation4 + $0xa4] ss:$24 sps:$4 sm:$0xff]   ;;  %4239 = vst [vmem:[#allocation15_spill] sm:$0xff] %v3276_v46 }
  0xa5   :  { %893 = vmatpush1.bf16.msra.mxu1 %v3106_v47  ;;  %440 = vmatpush1.bf16.msra.mxu0 %v2673_v48  ;;  %v2445_v10 = vsel %vm113_vm9, 1.0, %v4167_v38  ;;  %v2444_v11 = vsel %vm112_vm10, 1.0, %v4167_v38  ;;  %v3278_v48 = vld [vmem:[#allocation4 + $0x100] ss:$24 sps:$4 sm:$0xff]   ;;  %vm2424_vm9 = vcmask 3072  }
  0xa6   :  { %894 = vmatprep.subr.bf16.mxu1 %v3113_v49  ;;  %441 = vmatprep.subr.bf16.mxu0 %v2684_v50  ;;  %v3184_v13 = vpack.c.bf16 %v2445_v10, %v2444_v11 }
  0xa8   :  { %2471 = vmatmul.mubr.msk.bf16.gmra.mrb[4].mxu0 %vm278_vm4, %v3124_v56  ;;  %2475 = vmatmul.mubr.msk.bf16.gmra.mrb[4].mxu1 %vm278_vm4, %v3124_v56 }
  0xa9   :  { %895 = vmatpush1.bf16.msra.mxu1 %v3122_v55  ;;  %343 = vmatprep.mubr.bf16.mxu0 %v4169_v1 }
  0xaa   :  { %896 = vmatprep.subr.bf16.mxu1 %v3127_v57  ;;  %416 = vmatprep.mubr.bf16.mxu1 %v4169_v1 }
  0xab   :  { %442 = vmatpush1.bf16.msra.mxu0 %v2682_v58  ;;  %v3303_v58 = vld [vmem:[#allocation4 + $0x158] ss:$24 sps:$4 sm:$0xff]  }
  0xac   :  { %443 = vmatprep.subr.bf16.mxu0 %v2693_v59  ;;  %4243 = vst [vmem:[#allocation19_spill] sm:$0xff] %v3303_v58  ;;  %v3305_v59 = vld [vmem:[#allocation4 + $0x160] ss:$24 sps:$4 sm:$0xff]  }
  0xad   :  { %897 = vmatpush1.bf16.msra.mxu1 %v3142_v60 }
  0xae   :  { %898 = vmatprep.subr.bf16.mxu1 %v3147_v61 }
  0xaf   :  { %444 = vmatpush1.bf16.msra.mxu0 %v2691_v0 }
  0xb0   :  { %2472 = vmatmul.mubr.msk.bf16.gmra.mrb[8].mxu0 %vm278_vm4, %v3157_v5  ;;  %2476 = vmatmul.mubr.msk.bf16.gmra.mrb[8].mxu1 %vm278_vm4, %v3157_v5 }
  0xb1   :  { %899 = vmatpush1.bf16.msra.mxu1 %v3155_v4  ;;  %353 = vmatprep.mubr.bf16.mxu0 %v4169_v1 }
  0xb2   :  { %900 = vmatprep.subr.bf16.mxu1 %v3160_v6  ;;  %426 = vmatprep.mubr.bf16.mxu1 %v4169_v1 }
  0xb3   :  { %931 = vmatprep.subr.bf16.mxu0 %v3162_v7 }
  0xb5   :  { %901 = vmatpush1.bf16.msra.mxu1 %v3171_v8 }
  0xb6   :  { %902 = vmatprep.subr.bf16.mxu1 %v3176_v9 }
  0xb8   :  { %2473 = vmatmul.mubr.msk.bf16.gmra.mrb[12].mxu0 %vm278_vm4, %v3184_v13  ;;  %2477 = vmatmul.mubr.msk.bf16.gmra.mrb[12].mxu1 %vm278_vm4, %v3184_v13 }
  0xb9   :  { %903 = vmatpush1.bf16.msra.mxu1 %v3182_v12  ;;  %469 = vmatprep.mubr.bf16.mxu0 %v4169_v1 }
  0xba   :  { %904 = vmatprep.subr.bf16.mxu1 %v3187_v14  ;;  %922 = vmatprep.mubr.bf16.mxu1 %v4169_v1 }
  0xbd   :  { %905 = vmatpush1.bf16.msra.mxu1 %v3194_v15 }
  0xbe   :  { %972 = vmatprep.subr.bf16.mxu1 %v3199_v16 }
  0xc0   :  { %2478 = vmatmul.mubr.msk.bf16.vlgmr.msra.gmra.mrb[16].mxu0 %vm278_vm4, %v3092_v43  ;;  %923 = vmatmul.mubr.bf16.vlgmr.msra.gmra.mrb[16].mxu1 %v4169_v1  ;;  %v3266_v43 = vld [vmem:[#allocation4 + $0x104] ss:$24 sps:$4 sm:$0xff]  }
  0xc1   :  { %932 = vmatpush1.bf16.msra.mxu0 %v3202_v17  ;;  %973 = vmatpush1.bf16.msra.mxu1 %v3204_v18 }
  0xc2   :  { %933 = vmatprep.subr.bf16.mxu0 %v3207_v19  ;;  %974 = vmatprep.subr.bf16.mxu1 %v3209_v20 }
  0xc3   :  { %479 = vmatprep.mubr.bf16.mxu0 %v4169_v1  ;;  %1004 = vmatprep.mubr.bf16.mxu1 %v4169_v1 }
  0xc5   :  { %934 = vmatpush1.bf16.msra.mxu0 %v3216_v21  ;;  %975 = vmatpush1.bf16.msra.mxu1 %v3218_v22 }
  0xc6   :  { %935 = vmatprep.subr.bf16.mxu0 %v3222_v23  ;;  %976 = vmatprep.subr.bf16.mxu1 %v3224_v24 }
  0xc8   :  { %2479 = vmatmul.mubr.msk.bf16.gmra.mrb[20].mxu0 %vm278_vm4, %v3124_v56  ;;  %v3297_v56 = vld [vmem:[#allocation4 + $0x164] ss:$24 sps:$4 sm:$0xff]  }
  0xc9   :  { %936 = vmatpush1.bf16.msra.mxu0 %v3230_v25  ;;  %977 = vmatpush1.bf16.msra.mxu1 %v3232_v26 }
  0xca   :  { %937 = vmatprep.subr.bf16.mxu0 %v3236_v29  ;;  %978 = vmatprep.subr.bf16.mxu1 %v3238_v30 }
  0xcb   :  { %489 = vmatprep.mubr.bf16.mxu0 %v4169_v1 }
  0xcd   :  { %938 = vmatpush1.bf16.msra.mxu0 %v3244_v31  ;;  %979 = vmatpush1.bf16.msra.mxu1 %v3246_v33 }
  0xce   :  { %939 = vmatprep.subr.bf16.mxu0 %v3250_v35  ;;  %980 = vmatprep.subr.bf16.mxu1 %v3252_v36 }
  0xd0   :  { %2480 = vmatmul.mubr.msk.bf16.gmra.mrb[24].mxu0 %vm278_vm4, %v3157_v5  ;;  %v3270_v32 = vpop.xlane.xlu0 %60 }
  0xd1   :  { %940 = vmatpush1.bf16.msra.mxu0 %v3258_v39  ;;  %981 = vmatpush1.bf16.msra.mxu1 %v3260_v40  ;;  %vm62_vm11 = vcmp.eq.f32.partialorder %v3080_v34, %v3270_v32  ;;  %v3289_v34 = vld [vmem:[#allocation4 + $0x128] ss:$24 sps:$4 sm:$0xff]  }
  0xd2   :  { %941 = vmatprep.subr.bf16.mxu0 %v3264_v41  ;;  %982 = vmatprep.subr.bf16.mxu1 %v3266_v43  ;;  %v63_v50 = vsel %vm62_vm11, %v58_v45, inf  ;;  %4241 = vst [vmem:[#allocation17_spill] sm:$0xff] %v3289_v34 }
  0xd3   :  { %64 = vmin.xlane.f32.xlu1 %v63_v50  ;;  %499 = vmatprep.mubr.bf16.mxu0 %v4169_v1 }
  0xd5   :  { %942 = vmatpush1.bf16.msra.mxu0 %v3276_v46  ;;  %983 = vmatpush1.bf16.msra.mxu1 %v3278_v48 }
  0xd6   :  { %943 = vmatprep.subr.bf16.mxu0 %v3282_v51  ;;  %984 = vmatprep.subr.bf16.mxu1 %v3284_v52 }
  0xd8   :  { %2481 = vmatmul.mubr.msk.bf16.gmra.mrb[28].mxu0 %vm278_vm4, %v3184_v13 }
  0xd9   :  { %944 = vmatpush1.bf16.msra.mxu0 %v3289_v34  ;;  %985 = vmatpush1.bf16.msra.mxu1 %v3291_v53 }
  0xda   :  { %945 = vmatprep.subr.bf16.mxu0 %v3295_v54  ;;  %986 = vmatprep.subr.bf16.mxu1 %v3297_v56 }
  0xdb   :  { %963 = vmatprep.mubr.bf16.mxu0 %v4169_v1 }
  0xdd   :  { %946 = vmatpush1.bf16.msra.mxu0 %v3303_v58  ;;  %987 = vmatpush1.bf16.msra.mxu1 %v3305_v59 }
  0xde   :  { %1067 = vmatprep.subr.bf16.mxu0 %v3067_v27  ;;  %1108 = vmatprep.subr.bf16.mxu1 %v3162_v7 }
  0xe0   :  { %1005 = vmatmul.mubr.bf16.vlgmr.msra.gmra.mrb[20].mxu1 %v4169_v1  ;;  %964 = vmatmul.mubr.bf16.vlgmr.msra.gmra.mrb[32].mxu0 %v4169_v1 }
  0xe1   :  { %1068 = vmatpush1.bf16.msra.mxu0 %v3090_v42  ;;  %1109 = vmatpush1.bf16.msra.mxu1 %v3202_v17 }
  0xe2   :  { %1069 = vmatprep.subr.bf16.mxu0 %v3094_v44  ;;  %1110 = vmatprep.subr.bf16.mxu1 %v3207_v19 }
  0xe3   :  { %1099 = vmatprep.mubr.bf16.mxu0 %v4169_v1  ;;  %1140 = vmatprep.mubr.bf16.mxu1 %v4169_v1 }
  0xe5   :  { %1070 = vmatpush1.bf16.msra.mxu0 %v3106_v47  ;;  %1111 = vmatpush1.bf16.msra.mxu1 %v3216_v21 }
  0xe6   :  { %1071 = vmatprep.subr.bf16.mxu0 %v3113_v49  ;;  %1112 = vmatprep.subr.bf16.mxu1 %v3222_v23 }
  0xe9   :  { %1072 = vmatpush1.bf16.msra.mxu0 %v3122_v55  ;;  %1113 = vmatpush1.bf16.msra.mxu1 %v3230_v25 }
  0xea   :  { %1073 = vmatprep.subr.bf16.mxu0 %v3127_v57  ;;  %1114 = vmatprep.subr.bf16.mxu1 %v3236_v29 }
  0xed   :  { %1074 = vmatpush1.bf16.msra.mxu0 %v3142_v60  ;;  %1115 = vmatpush1.bf16.msra.mxu1 %v3244_v31 }
  0xee   :  { %1075 = vmatprep.subr.bf16.mxu0 %v3147_v61  ;;  %1116 = vmatprep.subr.bf16.mxu1 %v3250_v35 }
  0xf1   :  { %1076 = vmatpush1.bf16.msra.mxu0 %v3155_v4  ;;  %1117 = vmatpush1.bf16.msra.mxu1 %v3258_v39 }
  0xf2   :  { %1077 = vmatprep.subr.bf16.mxu0 %v3160_v6  ;;  %1118 = vmatprep.subr.bf16.mxu1 %v3264_v41 }
  0xf5   :  { %1078 = vmatpush1.bf16.msra.mxu0 %v3171_v8  ;;  %1119 = vmatpush1.bf16.msra.mxu1 %v3276_v46 }
  0xf6   :  { %1079 = vmatprep.subr.bf16.mxu0 %v3176_v9  ;;  %1120 = vmatprep.subr.bf16.mxu1 %v3282_v51 }
  0xf9   :  { %1080 = vmatpush1.bf16.msra.mxu0 %v3182_v12  ;;  %1121 = vmatpush1.bf16.msra.mxu1 %v3289_v34 }
  0xfa   :  { %1081 = vmatprep.subr.bf16.mxu0 %v3187_v14  ;;  %1122 = vmatprep.subr.bf16.mxu1 %v3295_v54 }
  0xfd   :  { %1082 = vmatpush1.bf16.msra.mxu0 %v3194_v15  ;;  %1123 = vmatpush1.bf16.msra.mxu1 %v3303_v58 }
  0xfe   :  { %1149 = vmatprep.subr.bf16.mxu0 %v3199_v16  ;;  %1244 = vmatprep.subr.bf16.mxu1 %v3067_v27 }
 0x173   :  { %v325_v62 = vpop.f32.mrb[0].mxu0  ;;  %v3350_v63 = vpop.f32.mrb[0].mxu1 }
 0x174   :  { %v327_v0 = vpop.f32.mrb[1].mxu0  ;;  %v3352_v2 = vpop.f32.mrb[1].mxu1 }
 0x175   :  { %4244 = vst [vmem:[#allocation20_spill] sm:$0xff] %v3352_v2  ;;  %v3354_v3 = vpop.f32.mrb[2].mxu0  ;;  %v3356_v5 = vpop.f32.mrb[2].mxu1 }
 0x176   :  { %4245 = vst [vmem:[#allocation21_spill] sm:$0xff] %v3354_v3  ;;  %4246 = vst [vmem:[#allocation22_spill] sm:$0xff] %v3356_v5  ;;  %v3358_v10 = vpop.f32.mrb[3].mxu0  ;;  %v3360_v11 = vpop.f32.mrb[3].mxu1 }
 0x177   :  { %4247 = vst [vmem:[#allocation23_spill] sm:$0xff] %v3358_v10  ;;  %4248 = vst [vmem:[#allocation24_spill] sm:$0xff] %v3360_v11 }
 0x17b   :  { %v3362_v13 = vpop.f32.mrb[4].mxu0  ;;  %v3364_v37 = vpop.f32.mrb[4].mxu1 }
 0x17c   :  { %4249 = vst [vmem:[#allocation25_spill] sm:$0xff] %v3362_v13  ;;  %4250 = vst [vmem:[#allocation26_spill] sm:$0xff] %v3364_v37  ;;  %v3366_v45 = vpop.f32.mrb[5].mxu0  ;;  %v3368_v50 = vpop.f32.mrb[5].mxu1 }
 0x17d   :  { %4251 = vst [vmem:[#allocation27_spill] sm:$0xff] %v3366_v45  ;;  %4252 = vst [vmem:[#allocation28_spill] sm:$0xff] %v3368_v50  ;;  %v3370_v38 = vpop.f32.mrb[6].mxu0  ;;  %v3372_v1 = vpop.f32.mrb[6].mxu1 }
 0x17e   :  { %4253 = vst [vmem:[#allocation29_spill] sm:$0xff] %v3370_v38  ;;  %4254 = vst [vmem:[#allocation30_spill] sm:$0xff] %v3372_v1  ;;  %v3374_v28 = vpop.f32.mrb[7].mxu0  ;;  %v3376_v2 = vpop.f32.mrb[7].mxu1  ;;  %v4265_v1 = vlaneseq }
 0x17f   :  { %4255 = vst [vmem:[#allocation31_spill] sm:$0xff] %v3374_v28  ;;  %4256 = vst [vmem:[#allocation32_spill] sm:$0xff] %v3376_v2 }
 0x180   :  { %v3395_v28 = vshrl.u32 %v4265_v1, 7 }
 0x182   :  { %v626_v1 = vsub.s32 1, %v3395_v28 }
 0x183   :  { %v3378_v5 = vpop.f32.mrb[8].mxu0  ;;  %v3380_v10 = vpop.f32.mrb[8].mxu1 }
 0x184   :  { %4257 = vst [vmem:[#allocation33_spill] sm:$0xff] %v3378_v5  ;;  %4258 = vst [vmem:[#allocation34_spill] sm:$0xff] %v3380_v10  ;;  %v3382_v11 = vpop.f32.mrb[9].mxu0  ;;  %v3384_v13 = vpop.f32.mrb[9].mxu1 }
 0x185   :  { %4259 = vst [vmem:[#allocation35_spill] sm:$0xff] %v3382_v11  ;;  %4260 = vst [vmem:[#allocation36_spill] sm:$0xff] %v3384_v13  ;;  %v3386_v37 = vpop.f32.mrb[10].mxu0  ;;  %v3388_v45 = vpop.f32.mrb[10].mxu1  ;;  %v622_v13 = vsub.s32 0, %v3395_v28 }
 0x186   :  { %4261 = vst [vmem:[#allocation37_spill] sm:$0xff] %v3386_v37  ;;  %4262 = vst [vmem:[#allocation38_spill] sm:$0xff] %v3388_v45  ;;  %v3390_v50 = vpop.f32.mrb[11].mxu0  ;;  %v3392_v38 = vpop.f32.mrb[11].mxu1 }
 0x187   :  { %4263 = vst [vmem:[#allocation39_spill] sm:$0xff] %v3390_v50  ;;  %4264 = vst [vmem:[#allocation40_spill] sm:$0xff] %v3392_v38  ;;  %v3413_v50 = vld [vmem:[%s4161_s4] sm:$0x3f] }
 0x188   :  { %v3422_v38 = vrot.slane %v3413_v50, %v626_v1 }
 0x18a   :  { %4274 = vst [vmem:[#allocation49_spill] sm:$0xff] %v3422_v38 }
 0x18b   :  { %v3397_v2 = vpop.f32.mrb[12].mxu0  ;;  %v3399_v5 = vpop.f32.mrb[12].mxu1 }
 0x18c   :  { %4266 = vst [vmem:[#allocation41_spill] sm:$0xff] %v3397_v2  ;;  %4267 = vst [vmem:[#allocation42_spill] sm:$0xff] %v3399_v5  ;;  %v3401_v10 = vpop.f32.mrb[13].mxu0  ;;  %v3403_v11 = vpop.f32.mrb[13].mxu1 }
 0x18d   :  { %4268 = vst [vmem:[#allocation43_spill] sm:$0xff] %v3401_v10  ;;  %4269 = vst [vmem:[#allocation44_spill] sm:$0xff] %v3403_v11  ;;  %v3406_v37 = vpop.f32.mrb[14].mxu0  ;;  %v3408_v45 = vpop.f32.mrb[14].mxu1  ;;  %v3419_v10 = vrot.slane %v3413_v50, %v622_v13 }
 0x18e   :  { %4270 = vst [vmem:[#allocation45_spill] sm:$0xff] %v3406_v37  ;;  %4271 = vst [vmem:[#allocation46_spill] sm:$0xff] %v3408_v45  ;;  %v3416_v2 = vpop.f32.mrb[15].mxu0  ;;  %v434_v5 = vpop.f32.mrb[15].mxu1 }
 0x18f   :  { %4272 = vst [vmem:[#allocation47_spill] sm:$0xff] %v3416_v2  ;;  %4273 = vst [vmem:[#allocation48_spill] sm:$0xff] %v3419_v10 }
 0x193   :  { %v3424_v11 = vpop.f32.mrb[16].mxu0  ;;  %v924_v37 = vpop.f32.mrb[16].mxu1 }
 0x194   :  { %4275 = vst [vmem:[#allocation50_spill] sm:$0xff] %v3424_v11  ;;  %v925_v45 = vadd.f32 %v924_v37, %v3419_v10  ;;  %v3427_v3 = vpop.f32.mrb[17].mxu0  ;;  %v926_v27 = vpop.f32.mrb[17].mxu1 }
 0x195   :  { %4276 = vst [vmem:[#allocation51_spill] sm:$0xff] %v3427_v3  ;;  %v927_v58 = vadd.f32 %v926_v27, %v3422_v38  ;;  %v3430_v54 = vpop.f32.mrb[18].mxu0  ;;  %v928_v2 = vpop.f32.mrb[18].mxu1 }
 0x196   :  { %4277 = vst [vmem:[#allocation52_spill] sm:$0xff] %v3430_v54  ;;  %v1013_v34 = vadd.f32 %v925_v45, %v325_v62  ;;  %v3432_v51 = vpop.f32.mrb[19].mxu0  ;;  %v929_v13 = vpop.f32.mrb[19].mxu1 }
 0x197   :  { %4278 = vst [vmem:[#allocation53_spill] sm:$0xff] %v3432_v51  ;;  %v1018_v46 = vadd.f32 %v927_v58, %v327_v0  ;;  %v638_v0 = vsub.s32 4, %v3395_v28  ;;  %v630_v13 = vsub.s32 2, %v3395_v28 }
 0x198   :  { %v1014_v3 = vmul.f32 0.5, %v1013_v34  ;;  %v634_v34 = vsub.s32 3, %v3395_v28 }
 0x19a   :  { %2748 = vtanh.f32 %v1014_v3 }
 0x19b   :  { %v3434_v1 = vpop.f32.mrb[20].mxu0 }
 0x19c   :  { %4279 = vst [vmem:[#allocation54_spill] sm:$0xff] %v3434_v1  ;;  %v3436_v41 = vpop.f32.mrb[21].mxu0  ;;  %v3461_v1 = vrot.slane %v3413_v50, %v630_v13 }
 0x19d   :  { %4280 = vst [vmem:[#allocation55_spill] sm:$0xff] %v3436_v41  ;;  %v3438_v11 = vpop.f32.mrb[22].mxu0  ;;  %v3458_v41 = vrot.slane %v3413_v50, %v638_v0 }
 0x19e   :  { %4281 = vst [vmem:[#allocation56_spill] sm:$0xff] %v3438_v11  ;;  %v3440_v37 = vpop.f32.mrb[23].mxu0  ;;  %v1019_v11 = vmul.f32 0.5, %v1018_v46 }
 0x19f   :  { %4282 = vst [vmem:[#allocation57_spill] sm:$0xff] %v3440_v37  ;;  %4289 = vst [vmem:[#allocation64_spill] sm:$0xff] %v3458_v41 }
 0x1a0   :  { %2750 = vtanh.f32 %v1019_v11 }
 0x1a3   :  { %v3442_v10 = vpop.f32.mrb[24].mxu0 }
 0x1a4   :  { %4283 = vst [vmem:[#allocation58_spill] sm:$0xff] %v3442_v10  ;;  %v3444_v27 = vpop.f32.mrb[25].mxu0  ;;  %v2749_v51 = vpop.eup %2748 }
 0x1a5   :  { %4284 = vst [vmem:[#allocation59_spill] sm:$0xff] %v3444_v27  ;;  %v3446_v2 = vpop.f32.mrb[26].mxu0  ;;  %v1016_v37 = vmul.f32 0.5, %v2749_v51  ;;  %v3464_v27 = vrot.slane %v3413_v50, %v634_v34 }
 0x1a6   :  { %4285 = vst [vmem:[#allocation60_spill] sm:$0xff] %v3446_v2  ;;  %v3448_v62 = vpop.f32.mrb[27].mxu0 }
 0x1a7   :  { %4286 = vst [vmem:[#allocation61_spill] sm:$0xff] %v3448_v62 }
 0x1ab   :  { %v3450_v45 = vpop.f32.mrb[28].mxu0 }
 0x1ac   :  { %4287 = vst [vmem:[#allocation62_spill] sm:$0xff] %v3450_v45  ;;  %v3452_v58 = vpop.f32.mrb[29].mxu0  ;;  %v1017_v45 = vadd.f32 0.5, %v1016_v37  ;;  %v642_v37 = vsub.s32 5, %v3395_v28  ;;  %v67_v28 = vcvt.f32.s32 %v3270_v32 }
 0x1ad   :  { %4288 = vst [vmem:[#allocation63_spill] sm:$0xff] %v3452_v58  ;;  %v505_v54 = vpop.f32.mrb[30].mxu0 }
 0x1ae   :  { %v507_v3 = vpop.f32.mrb[31].mxu0 }
 0x1b3   :  { %v1006_v10 = vpop.f32.mrb[20].mxu1  ;;  %v965_v62 = vpop.f32.mrb[32].mxu0 }
 0x1b4   :  { %v1007_v2 = vadd.f32 %v1006_v10, %v3458_v41  ;;  %v966_v58 = vadd.f32 %v965_v62, %v3461_v1  ;;  %v967_v38 = vpop.f32.mrb[33].mxu0  ;;  %v1008_v39 = vpop.f32.mrb[21].mxu1 }
 0x1b5   :  { %v968_v0 = vadd.f32 %v967_v38, %v3464_v27  ;;  %v969_v35 = vpop.f32.mrb[34].mxu0  ;;  %v1010_v13 = vpop.f32.mrb[22].mxu1  ;;  %v3472_v38 = vrot.slane %v3413_v50, %v642_v37 }
 0x1b6   :  { %v1034_v31 = vadd.f32 %v1007_v2, %v505_v54  ;;  %v1023_v51 = vmul.f32 %v1017_v45, %v966_v58  ;;  %v970_v46 = vpop.f32.mrb[35].mxu0  ;;  %v1011_v29 = vpop.f32.mrb[23].mxu1 }
 0x1b7   :  { %v1029_v34 = vadd.f32 %v968_v0, %v434_v5  ;;  %v2751_v10 = vpop.eup %2750 }
 0x1b8   :  { %v1024_v25 = vadd.f32 %v1023_v51, %v3350_v63  ;;  %v1021_v62 = vmul.f32 0.5, %v2751_v10  ;;  %v1035_v11 = vmul.f32 0.5, %v1034_v31  ;;  %v1009_v63 = vadd.f32 %v1008_v39, %v3472_v38 }
 0x1b9   :  { %v1030_v23 = vmul.f32 0.5, %v1029_v34  ;;  %v68_v31 = vshll.u32 %v67_v28, 16  ;;  %v4299_v28 = vld [vmem:[#allocation16_spill] sm:$0xff] }
 0x1ba   :  { %2752 = vtanh.f32 %v1024_v25  ;;  %v1022_v54 = vadd.f32 0.5, %v1021_v62 }
 0x1bb   :  { %2754 = vtanh.f32 %v1030_v23  ;;  %v65_v23 = vpop.xlane.xlu1 %64 }
 0x1bc   :  { %2756 = vtanh.f32 %v1035_v11  ;;  %v66_v13 = vcvt.f32.s32 %v65_v23  ;;  %v4297_v23 = vld [vmem:[#allocation14_spill] sm:$0xff] }
 0x1be   :  { %v69_v50 = vadd.s32 %v68_v31, %v66_v13  ;;  %v4301_v13 = vld [vmem:[#allocation18_spill] sm:$0xff]  ;;  %v4302_v31 = vld [vmem:[#allocation19_spill] sm:$0xff] }
 0x1c0   :  { %vm70_vm12 = vcmp.eq.s32.totalorder %v69_v50, 9  ;;  %vm71_vm13 = vcmp.eq.s32.totalorder %v69_v50, 0 }
 0x1c1   :  { %vm72_vm14 = vmor %vm70_vm12, %vm71_vm13 }
 0x1c2   :  { %v3476_v39 = vsel %vm72_vm14, 8, %v69_v50  ;;  %v4303_v50 = vld [vmem:[#allocation7_spill] sm:$0xff] }
 0x1c3   :  { %vm1045_vm15 = vcmp.gt.s32.totalorder %v3476_v39, 0  ;;  %vm1049_vm0 = vcmp.gt.s32.totalorder %v3476_v39, 7  ;;  %vm1222_vm1 = vcmp.gt.s32.totalorder %v3476_v39, 1  ;;  %vm1226_vm2 = vcmp.gt.s32.totalorder %v3476_v39, 6 }
 0x1c4   :  { %v2753_v41 = vpop.eup %2752  ;;  %vm1399_vm3 = vcmp.gt.s32.totalorder %v3476_v39, 2  ;;  %vm1403_vm4 = vcmp.gt.s32.totalorder %v3476_v39, 5  ;;  %vm1576_vm5 = vcmp.gt.s32.totalorder %v3476_v39, 3  ;;  %vm1580_vm6 = vcmp.gt.s32.totalorder %v3476_v39, 4 }
 0x1c5   :  { %v2755_v35 = vpop.eup %2754  ;;  %v1026_v2 = vsub.f32 0.0, %v2753_v41 }
 0x1c6   :  { %v1032_v45 = vmul.f32 0.5, %v2755_v35  ;;  %v2757_v51 = vpop.eup %2756 }
 0x1c7   :  { %v1027_v29 = vmul.f32 %v1026_v2, %v1022_v54  ;;  %v1037_v46 = vmul.f32 0.5, %v2757_v51  ;;  %v4290_v54 = vmov 0   ;;  %v4291_v2 = vld [vmem:[#allocation8_spill] sm:$0xff] }
 0x1c8   :  { %v1033_v5 = vadd.f32 0.5, %v1032_v45  ;;  %v4292_v45 = vld [vmem:[#allocation9_spill] sm:$0xff] }
 0x1c9   :  { %v1028_v25 = vadd.f32 %v2753_v41, %v1027_v29  ;;  %v1038_v10 = vadd.f32 0.5, %v1037_v46  ;;  %v4293_v29 = vld [vmem:[#allocation10_spill] sm:$0xff] }
 0x1ca   :  { %v1039_v58 = vmul.f32 %v1033_v5, %v1009_v63  ;;  %v4294_v63 = vld [vmem:[#allocation11_spill] sm:$0xff]  ;;  %v4295_v5 = vld [vmem:[#allocation12_spill] sm:$0xff] }
 0x1cb   :  { %v3482_v32 = vsel %vm1045_vm15, %v1028_v25, 0.0  ;;  %v4296_v25 = vld [vmem:[#allocation13_spill] sm:$0xff] }
 0x1cc   :  { %v1040_v0 = vadd.f32 %v1039_v58, %v507_v3  ;;  %v4298_v58 = vld [vmem:[#allocation15_spill] sm:$0xff] }
 0x1ce   :  { %2758 = vtanh.f32 %v1040_v0  ;;  %v4300_v0 = vld [vmem:[#allocation17_spill] sm:$0xff] }
 0x1d8   :  { %v2759_v34 = vpop.eup %2758 }
 0x1d9   :  { %v1042_v37 = vsub.f32 0.0, %v2759_v34 }
 0x1db   :  { %v1043_v41 = vmul.f32 %v1042_v37, %v1038_v10 }
 0x1dd   :  { %v1044_v62 = vadd.f32 %v2759_v34, %v1043_v41  ;;  %v4304_v34 = vld [vmem:[#allocation48_spill] sm:$0xff] }
 0x1df   :  { %v3486_v3 = vsel %vm1049_vm0, %v1044_v62, 0.0  ;;  %v4305_v62 = vld [vmem:[#allocation49_spill] sm:$0xff] }
 0x1e0   :  { %v1065_v11 = vadd.f32 %v3486_v3, %v3482_v32 }
 0x1e2   :  { %v1066_v35 = vpack.c.bf16 %v1065_v11, %v1065_v11 }
 0x1e4   :  { %1100 = vmatmul.mubr.bf16.vlgmr.msra.gmra.mrb[36].mxu0 %v1066_v35  ;;  %1141 = vmatmul.mubr.bf16.vlgmr.msra.gmra.mrb[24].mxu1 %v1066_v35 }
 0x1e5   :  { %1150 = vmatpush1.bf16.msra.mxu0 %v3204_v18  ;;  %1181 = vmatprep.mubr.bf16.mxu0 %v4290_v54 }
 0x1e6   :  { %1151 = vmatprep.subr.bf16.mxu0 %v3209_v20  ;;  %1245 = vmatpush1.bf16.msra.mxu1 %v3090_v42 }
 0x1e7   :  { %1246 = vmatprep.subr.bf16.mxu1 %v3094_v44  ;;  %1276 = vmatprep.mubr.bf16.mxu1 %v4290_v54 }
 0x1e9   :  { %1152 = vmatpush1.bf16.msra.mxu0 %v3218_v22 }
 0x1ea   :  { %1153 = vmatprep.subr.bf16.mxu0 %v3224_v24  ;;  %1247 = vmatpush1.bf16.msra.mxu1 %v3106_v47 }
 0x1eb   :  { %1248 = vmatprep.subr.bf16.mxu1 %v3113_v49 }
 0x1ed   :  { %1154 = vmatpush1.bf16.msra.mxu0 %v3232_v26 }
 0x1ee   :  { %1155 = vmatprep.subr.bf16.mxu0 %v3238_v30  ;;  %1249 = vmatpush1.bf16.msra.mxu1 %v3122_v55 }
 0x1ef   :  { %1250 = vmatprep.subr.bf16.mxu1 %v3127_v57 }
 0x1f1   :  { %1156 = vmatpush1.bf16.msra.mxu0 %v3246_v33 }
 0x1f2   :  { %1157 = vmatprep.subr.bf16.mxu0 %v3252_v36  ;;  %1251 = vmatpush1.bf16.msra.mxu1 %v3142_v60 }
 0x1f3   :  { %1252 = vmatprep.subr.bf16.mxu1 %v3147_v61 }
 0x1f5   :  { %1158 = vmatpush1.bf16.msra.mxu0 %v3260_v40 }
 0x1f6   :  { %1159 = vmatprep.subr.bf16.mxu0 %v3266_v43  ;;  %1253 = vmatpush1.bf16.msra.mxu1 %v3155_v4 }
 0x1f7   :  { %1254 = vmatprep.subr.bf16.mxu1 %v3160_v6 }
 0x1f9   :  { %1160 = vmatpush1.bf16.msra.mxu0 %v3278_v48 }
 0x1fa   :  { %1161 = vmatprep.subr.bf16.mxu0 %v3284_v52  ;;  %1255 = vmatpush1.bf16.msra.mxu1 %v3171_v8 }
 0x1fb   :  { %1256 = vmatprep.subr.bf16.mxu1 %v3176_v9 }
 0x1fd   :  { %1162 = vmatpush1.bf16.msra.mxu0 %v3291_v53 }
 0x1fe   :  { %1163 = vmatprep.subr.bf16.mxu0 %v3297_v56  ;;  %1257 = vmatpush1.bf16.msra.mxu1 %v3182_v12 }
 0x1ff   :  { %1258 = vmatprep.subr.bf16.mxu1 %v3187_v14 }
 0x201   :  { %1164 = vmatpush1.bf16.msra.mxu0 %v3305_v59 }
 0x202   :  { %1285 = vmatprep.subr.bf16.mxu0 %v3162_v7  ;;  %1259 = vmatpush1.bf16.msra.mxu1 %v3194_v15 }
 0x203   :  { %1326 = vmatprep.subr.bf16.mxu1 %v3199_v16 }
 0x204   :  { %1182 = vmatmul.mubr.bf16.vlgmr.msra.gmra.mrb[40].mxu0 %v1066_v35 }
 0x205   :  { %1286 = vmatpush1.bf16.msra.mxu0 %v3202_v17  ;;  %1317 = vmatprep.mubr.bf16.mxu0 %v4290_v54 }
 0x206   :  { %1287 = vmatprep.subr.bf16.mxu0 %v3207_v19 }
 0x209   :  { %1288 = vmatpush1.bf16.msra.mxu0 %v3216_v21 }
 0x20a   :  { %1289 = vmatprep.subr.bf16.mxu0 %v4291_v2 }
 0x20d   :  { %1290 = vmatpush1.bf16.msra.mxu0 %v4292_v45 }
 0x20e   :  { %1291 = vmatprep.subr.bf16.mxu0 %v4293_v29 }
 0x211   :  { %1292 = vmatpush1.bf16.msra.mxu0 %v4294_v63  ;;  %v4308_v63 = vld [vmem:[#allocation44_spill] sm:$0xff] }
 0x212   :  { %1293 = vmatprep.subr.bf16.mxu0 %v4295_v5  ;;  %v4307_v5 = vld [vmem:[#allocation23_spill] sm:$0xff] }
 0x215   :  { %1294 = vmatpush1.bf16.msra.mxu0 %v4296_v25 }
 0x216   :  { %1295 = vmatprep.subr.bf16.mxu0 %v4297_v23  ;;  %v4306_v23 = vld [vmem:[#allocation21_spill] sm:$0xff] }
 0x219   :  { %1296 = vmatpush1.bf16.msra.mxu0 %v4298_v58 }
 0x21a   :  { %1297 = vmatprep.subr.bf16.mxu0 %v4299_v28 }
 0x21d   :  { %1298 = vmatpush1.bf16.msra.mxu0 %v4300_v0 }
 0x21e   :  { %1299 = vmatprep.subr.bf16.mxu0 %v4301_v13 }
 0x221   :  { %1300 = vmatpush1.bf16.msra.mxu0 %v4302_v31 }
 0x222   :  { %1421 = vmatprep.subr.bf16.mxu0 %v4303_v50 }
 0x2b7   :  { %v1101_v51 = vpop.f32.mrb[36].mxu0  ;;  %v1142_v46 = vpop.f32.mrb[24].mxu1 }
 0x2b8   :  { %v1102_v10 = vadd.f32 %v1101_v51, %v4304_v34  ;;  %v1103_v37 = vpop.f32.mrb[37].mxu0  ;;  %v1144_v41 = vpop.f32.mrb[25].mxu1 }
 0x2b9   :  { %v1104_v11 = vadd.f32 %v1103_v37, %v4305_v62  ;;  %v1145_v35 = vadd.f32 %v1144_v41, %v3464_v27  ;;  %v1105_v58 = vpop.f32.mrb[38].mxu0  ;;  %v1146_v28 = vpop.f32.mrb[26].mxu1  ;;  %v1143_v37 = vadd.f32 %v1142_v46, %v3461_v1 }
 0x2ba   :  { %v1190_v0 = vadd.f32 %v1102_v10, %v4306_v23  ;;  %v1106_v25 = vpop.f32.mrb[39].mxu0  ;;  %v1147_v13 = vpop.f32.mrb[27].mxu1  ;;  %v4309_v28 = vld [vmem:[#allocation22_spill] sm:$0xff] }
 0x2bb   :  { %v1195_v31 = vadd.f32 %v1104_v11, %v4307_v5  ;;  %v1206_v50 = vadd.f32 %v1145_v35, %v4308_v63  ;;  %v4311_v35 = vld [vmem:[#allocation62_spill] sm:$0xff] }
 0x2bc   :  { %v1191_v29 = vmul.f32 0.5, %v1190_v0  ;;  %v4310_v0 = vld [vmem:[#allocation64_spill] sm:$0xff] }
 0x2bd   :  { %v1207_v45 = vmul.f32 0.5, %v1206_v50  ;;  %v1196_v51 = vmul.f32 0.5, %v1195_v31 }
 0x2be   :  { %2760 = vtanh.f32 %v1191_v29 }
 0x2bf   :  { %2762 = vtanh.f32 %v1207_v45 }
 0x2c0   :  { %2764 = vtanh.f32 %v1196_v51 }
 0x2c8   :  { %v2761_v34 = vpop.eup %2760 }
 0x2c9   :  { %v1193_v2 = vmul.f32 0.5, %v2761_v34  ;;  %v2763_v25 = vpop.eup %2762 }
 0x2ca   :  { %v2765_v13 = vpop.eup %2764  ;;  %v1209_v5 = vmul.f32 0.5, %v2763_v25 }
 0x2cb   :  { %v1194_v41 = vadd.f32 0.5, %v1193_v2  ;;  %v1198_v63 = vmul.f32 0.5, %v2765_v13 }
 0x2cc   :  { %v1210_v45 = vadd.f32 0.5, %v1209_v5 }
 0x2cd   :  { %v1200_v58 = vmul.f32 %v1194_v41, %v1143_v37  ;;  %v1199_v37 = vadd.f32 0.5, %v1198_v63 }
 0x2cf   :  { %v1201_v23 = vadd.f32 %v1200_v58, %v4309_v28  ;;  %v4312_v28 = vld [vmem:[#allocation63_spill] sm:$0xff] }
 0x2d1   :  { %2766 = vtanh.f32 %v1201_v23 }
 0x2d7   :  { %v1183_v10 = vpop.f32.mrb[40].mxu0 }
 0x2d8   :  { %v1184_v29 = vadd.f32 %v1183_v10, %v4310_v0  ;;  %v1185_v11 = vpop.f32.mrb[41].mxu0 }
 0x2d9   :  { %v1186_v31 = vadd.f32 %v1185_v11, %v3472_v38  ;;  %v1187_v34 = vpop.f32.mrb[42].mxu0 }
 0x2da   :  { %v1211_v46 = vadd.f32 %v1184_v29, %v4311_v35  ;;  %v1188_v2 = vpop.f32.mrb[43].mxu0 }
 0x2db   :  { %v2767_v50 = vpop.eup %2766  ;;  %v1216_v51 = vmul.f32 %v1210_v45, %v1186_v31 }
 0x2dc   :  { %v1203_v41 = vsub.f32 %v3482_v32, %v2767_v50  ;;  %v1212_v58 = vmul.f32 0.5, %v1211_v46 }
 0x2dd   :  { %v1217_v23 = vadd.f32 %v1216_v51, %v4312_v28 }
 0x2de   :  { %v1204_v25 = vmul.f32 %v1203_v41, %v1199_v37  ;;  %2768 = vtanh.f32 %v1212_v58  ;;  %v4328_v58 = vld [vmem:[#allocation27_spill] sm:$0xff] }
 0x2df   :  { %2770 = vtanh.f32 %v1217_v23  ;;  %v4329_v23 = vld [vmem:[#allocation40_spill] sm:$0xff] }
 0x2e0   :  { %v1205_v13 = vadd.f32 %v2767_v50, %v1204_v25  ;;  %v4327_v50 = vld [vmem:[#allocation25_spill] sm:$0xff] }
 0x2e2   :  { %v3560_v63 = vsel %vm1222_vm1, %v1205_v13, %v3482_v32 }
 0x2e8   :  { %v2769_v10 = vpop.eup %2768 }
 0x2e9   :  { %v2771_v0 = vpop.eup %2770  ;;  %v1214_v11 = vmul.f32 0.5, %v2769_v10 }
 0x2ea   :  { %v1219_v5 = vsub.f32 %v3486_v3, %v2771_v0 }
 0x2eb   :  { %v1215_v34 = vadd.f32 0.5, %v1214_v11 }
 0x2ed   :  { %v1220_v29 = vmul.f32 %v1219_v5, %v1215_v34 }
 0x2ef   :  { %v1221_v35 = vadd.f32 %v2771_v0, %v1220_v29 }
 0x2f1   :  { %v3565_v31 = vsel %vm1226_vm2, %v1221_v35, %v3486_v3 }
 0x2f2   :  { %v1242_v45 = vadd.f32 %v3565_v31, %v3560_v63 }
 0x2f4   :  { %v1243_v46 = vpack.c.bf16 %v1242_v45, %v1242_v45 }
 0x2f6   :  { %1277 = vmatmul.mubr.bf16.vlgmr.msra.gmra.mrb[28].mxu1 %v1243_v46  ;;  %1318 = vmatmul.mubr.bf16.vlgmr.msra.gmra.mrb[44].mxu0 %v1243_v46 }
 0x2f7   :  { %1327 = vmatpush1.bf16.msra.mxu1 %v3204_v18  ;;  %1358 = vmatprep.mubr.bf16.mxu1 %v4290_v54 }
 0x2f8   :  { %1328 = vmatprep.subr.bf16.mxu1 %v3209_v20  ;;  %1422 = vmatpush1.bf16.msra.mxu0 %v3090_v42  ;;  %v4313_v42 = vld [vmem:[#allocation8_spill] sm:$0xff] }
 0x2f9   :  { %1423 = vmatprep.subr.bf16.mxu0 %v3094_v44  ;;  %1453 = vmatprep.mubr.bf16.mxu0 %v4290_v54  ;;  %v4314_v44 = vld [vmem:[#allocation9_spill] sm:$0xff] }
 0x2fb   :  { %1329 = vmatpush1.bf16.msra.mxu1 %v3218_v22 }
 0x2fc   :  { %1330 = vmatprep.subr.bf16.mxu1 %v3224_v24  ;;  %1424 = vmatpush1.bf16.msra.mxu0 %v3106_v47  ;;  %v4315_v47 = vld [vmem:[#allocation10_spill] sm:$0xff] }
 0x2fd   :  { %1425 = vmatprep.subr.bf16.mxu0 %v3113_v49  ;;  %v4316_v49 = vld [vmem:[#allocation11_spill] sm:$0xff] }
 0x2ff   :  { %1331 = vmatpush1.bf16.msra.mxu1 %v3232_v26 }
 0x300   :  { %1332 = vmatprep.subr.bf16.mxu1 %v3238_v30  ;;  %1426 = vmatpush1.bf16.msra.mxu0 %v3122_v55  ;;  %v4317_v55 = vld [vmem:[#allocation12_spill] sm:$0xff] }
 0x301   :  { %1427 = vmatprep.subr.bf16.mxu0 %v3127_v57  ;;  %v4318_v57 = vld [vmem:[#allocation13_spill] sm:$0xff] }
 0x303   :  { %1333 = vmatpush1.bf16.msra.mxu1 %v3246_v33 }
 0x304   :  { %1334 = vmatprep.subr.bf16.mxu1 %v3252_v36  ;;  %1428 = vmatpush1.bf16.msra.mxu0 %v3142_v60  ;;  %v4319_v60 = vld [vmem:[#allocation14_spill] sm:$0xff] }
 0x305   :  { %1429 = vmatprep.subr.bf16.mxu0 %v3147_v61  ;;  %v4320_v61 = vld [vmem:[#allocation15_spill] sm:$0xff] }
 0x307   :  { %1335 = vmatpush1.bf16.msra.mxu1 %v3260_v40 }
 0x308   :  { %1336 = vmatprep.subr.bf16.mxu1 %v3266_v43  ;;  %1430 = vmatpush1.bf16.msra.mxu0 %v3155_v4  ;;  %v4321_v4 = vld [vmem:[#allocation16_spill] sm:$0xff] }
 0x309   :  { %1431 = vmatprep.subr.bf16.mxu0 %v3160_v6  ;;  %v4322_v6 = vld [vmem:[#allocation17_spill] sm:$0xff] }
 0x30b   :  { %1337 = vmatpush1.bf16.msra.mxu1 %v3278_v48 }
 0x30c   :  { %1338 = vmatprep.subr.bf16.mxu1 %v3284_v52  ;;  %1432 = vmatpush1.bf16.msra.mxu0 %v3171_v8  ;;  %v4324_v8 = vld [vmem:[#allocation19_spill] sm:$0xff] }
 0x30d   :  { %1433 = vmatprep.subr.bf16.mxu0 %v3176_v9  ;;  %v3619_v9 = vld [vmem:[#allocation4 + $0x4] ss:$24 sps:$4 sm:$0xff]  }
 0x30e   :  { %4325 = vst [vmem:[#allocation7_spill] sm:$0xff] %v3619_v9 }
 0x30f   :  { %1339 = vmatpush1.bf16.msra.mxu1 %v3291_v53 }
 0x310   :  { %1340 = vmatprep.subr.bf16.mxu1 %v3297_v56  ;;  %1434 = vmatpush1.bf16.msra.mxu0 %v3182_v12 }
 0x311   :  { %1435 = vmatprep.subr.bf16.mxu0 %v3187_v14 }
 0x313   :  { %1341 = vmatpush1.bf16.msra.mxu1 %v3305_v59 }
 0x314   :  { %1462 = vmatprep.subr.bf16.mxu1 %v3162_v7  ;;  %1436 = vmatpush1.bf16.msra.mxu0 %v3194_v15  ;;  %v4323_v7 = vld [vmem:[#allocation18_spill] sm:$0xff]  ;;  %v4326_v15 = vld [vmem:[#allocation48_spill] sm:$0xff] }
 0x315   :  { %1503 = vmatprep.subr.bf16.mxu0 %v3199_v16 }
 0x316   :  { %1359 = vmatmul.mubr.bf16.vlgmr.msra.gmra.mrb[32].mxu1 %v1243_v46  ;;  %v4330_v46 = vld [vmem:[#allocation26_spill] sm:$0xff] }
 0x317   :  { %1463 = vmatpush1.bf16.msra.mxu1 %v3202_v17  ;;  %1494 = vmatprep.mubr.bf16.mxu1 %v4290_v54 }
 0x318   :  { %1464 = vmatprep.subr.bf16.mxu1 %v3207_v19 }
 0x31b   :  { %1465 = vmatpush1.bf16.msra.mxu1 %v3216_v21 }
 0x31c   :  { %1466 = vmatprep.subr.bf16.mxu1 %v4313_v42 }
 0x31f   :  { %1467 = vmatpush1.bf16.msra.mxu1 %v4314_v44 }
 0x320   :  { %1468 = vmatprep.subr.bf16.mxu1 %v4315_v47 }
 0x323   :  { %1469 = vmatpush1.bf16.msra.mxu1 %v4316_v49 }
 0x324   :  { %1470 = vmatprep.subr.bf16.mxu1 %v4317_v55 }
 0x327   :  { %1471 = vmatpush1.bf16.msra.mxu1 %v4318_v57 }
 0x328   :  { %1472 = vmatprep.subr.bf16.mxu1 %v4319_v60 }
 0x32b   :  { %1473 = vmatpush1.bf16.msra.mxu1 %v4320_v61 }
 0x32c   :  { %1474 = vmatprep.subr.bf16.mxu1 %v4321_v4 }
 0x32f   :  { %1475 = vmatpush1.bf16.msra.mxu1 %v4322_v6 }
 0x330   :  { %1476 = vmatprep.subr.bf16.mxu1 %v4323_v7 }
 0x333   :  { %1477 = vmatpush1.bf16.msra.mxu1 %v4324_v8 }
 0x334   :  { %1592 = vmatprep.subr.bf16.mxu1 %v3619_v9 }
 0x3c9   :  { %v1278_v12 = vpop.f32.mrb[28].mxu1  ;;  %v1319_v14 = vpop.f32.mrb[44].mxu0 }
 0x3ca   :  { %v1279_v16 = vadd.f32 %v1278_v12, %v4326_v15  ;;  %v1280_v17 = vpop.f32.mrb[29].mxu1  ;;  %v1321_v19 = vpop.f32.mrb[45].mxu0  ;;  %v1320_v29 = vadd.f32 %v1319_v14, %v3461_v1 }
 0x3cb   :  { %v1281_v32 = vadd.f32 %v1280_v17, %v4305_v62  ;;  %v1322_v3 = vadd.f32 %v1321_v19, %v3464_v27  ;;  %v1282_v0 = vpop.f32.mrb[30].mxu1  ;;  %v1323_v2 = vpop.f32.mrb[46].mxu0 }
 0x3cc   :  { %v1367_v51 = vadd.f32 %v1279_v16, %v4327_v50  ;;  %v1283_v37 = vpop.f32.mrb[31].mxu1  ;;  %v1324_v41 = vpop.f32.mrb[47].mxu0  ;;  %v4331_v0 = vld [vmem:[#allocation64_spill] sm:$0xff] }
 0x3cd   :  { %v1372_v28 = vadd.f32 %v1281_v32, %v4328_v58  ;;  %v1383_v25 = vadd.f32 %v1322_v3, %v4329_v23  ;;  %v4332_v58 = vld [vmem:[#allocation60_spill] sm:$0xff] }
 0x3ce   :  { %v1368_v13 = vmul.f32 0.5, %v1367_v51 }
 0x3cf   :  { %v1384_v10 = vmul.f32 0.5, %v1383_v25  ;;  %v1373_v11 = vmul.f32 0.5, %v1372_v28 }
 0x3d0   :  { %2772 = vtanh.f32 %v1368_v13 }
 0x3d1   :  { %2774 = vtanh.f32 %v1384_v10 }
 0x3d2   :  { %2776 = vtanh.f32 %v1373_v11 }
 0x3da   :  { %v2773_v5 = vpop.eup %2772 }
 0x3db   :  { %v1370_v34 = vmul.f32 0.5, %v2773_v5  ;;  %v2775_v16 = vpop.eup %2774  ;;  %v4333_v5 = vld [vmem:[#allocation61_spill] sm:$0xff] }
 0x3dc   :  { %v2777_v17 = vpop.eup %2776  ;;  %v1386_v19 = vmul.f32 0.5, %v2775_v16 }
 0x3dd   :  { %v1371_v35 = vadd.f32 0.5, %v1370_v34  ;;  %v1375_v3 = vmul.f32 0.5, %v2777_v17 }
 0x3de   :  { %v1387_v37 = vadd.f32 0.5, %v1386_v19 }
 0x3df   :  { %v1377_v45 = vmul.f32 %v1371_v35, %v1320_v29  ;;  %v1376_v13 = vadd.f32 0.5, %v1375_v3 }
 0x3e1   :  { %v1378_v12 = vadd.f32 %v1377_v45, %v4330_v46 }
 0x3e3   :  { %2778 = vtanh.f32 %v1378_v12 }
 0x3e9   :  { %v1360_v32 = vpop.f32.mrb[32].mxu1 }
 0x3ea   :  { %v1361_v2 = vadd.f32 %v1360_v32, %v4331_v0  ;;  %v1362_v50 = vpop.f32.mrb[33].mxu1 }
 0x3eb   :  { %v1363_v51 = vadd.f32 %v1362_v50, %v3472_v38  ;;  %v1364_v41 = vpop.f32.mrb[34].mxu1 }
 0x3ec   :  { %v1388_v14 = vadd.f32 %v1361_v2, %v4332_v58  ;;  %v1365_v28 = vpop.f32.mrb[35].mxu1  ;;  %v3673_v41 = vld [vmem:[#allocation4 + $0x94] ss:$24 sps:$4 sm:$0xff]  }
 0x3ed   :  { %v2779_v23 = vpop.eup %2778  ;;  %v1393_v25 = vmul.f32 %v1387_v37, %v1363_v51  ;;  %v3653_v37 = vld [vmem:[#allocation4] ss:$24 sps:$4 sm:$0xff]   ;;  %v4336_v28 = vld [vmem:[#allocation36_spill] sm:$0xff] }
 0x3ee   :  { %v1380_v10 = vsub.f32 %v3560_v63, %v2779_v23  ;;  %v1389_v11 = vmul.f32 0.5, %v1388_v14  ;;  %v4335_v14 = vld [vmem:[#allocation31_spill] sm:$0xff] }
 0x3ef   :  { %v1394_v34 = vadd.f32 %v1393_v25, %v4333_v5 }
 0x3f0   :  { %v1381_v29 = vmul.f32 %v1380_v10, %v1376_v13  ;;  %2780 = vtanh.f32 %v1389_v11 }
 0x3f1   :  { %2782 = vtanh.f32 %v1394_v34 }
 0x3f2   :  { %v1382_v35 = vadd.f32 %v2779_v23, %v1381_v29 }
 0x3f4   :  { %v3641_v3 = vsel %vm1399_vm3, %v1382_v35, %v3560_v63  ;;  %v3656_v63 = vld [vmem:[#allocation4 + $0x34] ss:$24 sps:$4 sm:$0xff]  }
 0x3fa   :  { %v2781_v45 = vpop.eup %2780 }
 0x3fb   :  { %v2783_v46 = vpop.eup %2782  ;;  %v1391_v12 = vmul.f32 0.5, %v2781_v45  ;;  %v4337_v45 = vld [vmem:[#allocation30_spill] sm:$0xff] }
 0x3fc   :  { %v1396_v16 = vsub.f32 %v3565_v31, %v2783_v46 }
 0x3fd   :  { %v1392_v17 = vadd.f32 0.5, %v1391_v12 }
 0x3ff   :  { %v1397_v19 = vmul.f32 %v1396_v16, %v1392_v17 }
 0x401   :  { %v1398_v32 = vadd.f32 %v2783_v46, %v1397_v19 }
 0x403   :  { %v3646_v2 = vsel %vm1403_vm4, %v1398_v32, %v3565_v31  ;;  %v3662_v31 = vld [vmem:[#allocation4 + $0x30] ss:$24 sps:$4 sm:$0xff]  }
 0x404   :  { %v1419_v50 = vadd.f32 %v3646_v2, %v3641_v3 }
 0x406   :  { %v1420_v51 = vpack.c.bf16 %v1419_v50, %v1419_v50 }
 0x408   :  { %1454 = vmatmul.mubr.bf16.vlgmr.msra.gmra.mrb[48].mxu0 %v1420_v51  ;;  %1495 = vmatmul.mubr.bf16.vlgmr.msra.gmra.mrb[36].mxu1 %v1420_v51 }
 0x409   :  { %1504 = vmatpush1.bf16.msra.mxu0 %v3204_v18  ;;  %1535 = vmatprep.mubr.bf16.mxu0 %v4290_v54  ;;  %v3665_v18 = vld [vmem:[#allocation4 + $0x64] ss:$24 sps:$4 sm:$0xff]  }
 0x40a   :  { %1505 = vmatprep.subr.bf16.mxu0 %v3209_v20  ;;  %1593 = vmatpush1.bf16.msra.mxu1 %v3653_v37  ;;  %v3670_v20 = vld [vmem:[#allocation4 + $0x60] ss:$24 sps:$4 sm:$0xff]  }
 0x40b   :  { %1594 = vmatprep.subr.bf16.mxu1 %v3656_v63  ;;  %1624 = vmatprep.mubr.bf16.mxu1 %v4290_v54 }
 0x40d   :  { %1506 = vmatpush1.bf16.msra.mxu0 %v3218_v22  ;;  %v3678_v22 = vld [vmem:[#allocation4 + $0x90] ss:$24 sps:$4 sm:$0xff]  }
 0x40e   :  { %1507 = vmatprep.subr.bf16.mxu0 %v3224_v24  ;;  %1595 = vmatpush1.bf16.msra.mxu1 %v3662_v31  ;;  %v3681_v24 = vld [vmem:[#allocation4 + $0xc4] ss:$24 sps:$4 sm:$0xff]  }
 0x40f   :  { %1596 = vmatprep.subr.bf16.mxu1 %v3665_v18 }
 0x411   :  { %1508 = vmatpush1.bf16.msra.mxu0 %v3232_v26  ;;  %v3686_v26 = vld [vmem:[#allocation4 + $0xc0] ss:$24 sps:$4 sm:$0xff]  }
 0x412   :  { %1509 = vmatprep.subr.bf16.mxu0 %v3238_v30  ;;  %1597 = vmatpush1.bf16.msra.mxu1 %v3670_v20  ;;  %v3689_v30 = vld [vmem:[#allocation4 + $0xf4] ss:$24 sps:$4 sm:$0xff]  }
 0x413   :  { %1598 = vmatprep.subr.bf16.mxu1 %v3673_v41 }
 0x415   :  { %1510 = vmatpush1.bf16.msra.mxu0 %v3246_v33  ;;  %v3694_v33 = vld [vmem:[#allocation4 + $0xf0] ss:$24 sps:$4 sm:$0xff]  }
 0x416   :  { %1511 = vmatprep.subr.bf16.mxu0 %v3252_v36  ;;  %1599 = vmatpush1.bf16.msra.mxu1 %v3678_v22  ;;  %v3697_v36 = vld [vmem:[#allocation4 + $0x124] ss:$24 sps:$4 sm:$0xff]  }
 0x417   :  { %1600 = vmatprep.subr.bf16.mxu1 %v3681_v24 }
 0x419   :  { %1512 = vmatpush1.bf16.msra.mxu0 %v3260_v40  ;;  %v3702_v40 = vld [vmem:[#allocation4 + $0x120] ss:$24 sps:$4 sm:$0xff]  }
 0x41a   :  { %1513 = vmatprep.subr.bf16.mxu0 %v3266_v43  ;;  %1601 = vmatpush1.bf16.msra.mxu1 %v3686_v26  ;;  %v3705_v43 = vld [vmem:[#allocation4 + $0x154] ss:$24 sps:$4 sm:$0xff]  }
 0x41b   :  { %1602 = vmatprep.subr.bf16.mxu1 %v3689_v30 }
 0x41d   :  { %1514 = vmatpush1.bf16.msra.mxu0 %v3278_v48  ;;  %v3709_v48 = vld [vmem:[#allocation4 + $0xc] ss:$24 sps:$4 sm:$0xff]  }
 0x41e   :  { %1515 = vmatprep.subr.bf16.mxu0 %v3284_v52  ;;  %1603 = vmatpush1.bf16.msra.mxu1 %v3694_v33  ;;  %v3712_v52 = vld [vmem:[#allocation4 + $0x150] ss:$24 sps:$4 sm:$0xff]  }
 0x41f   :  { %1604 = vmatprep.subr.bf16.mxu1 %v3697_v36 }
 0x421   :  { %1516 = vmatpush1.bf16.msra.mxu0 %v3291_v53  ;;  %v3715_v53 = vld [vmem:[#allocation4 + $0x14] ss:$24 sps:$4 sm:$0xff]  }
 0x422   :  { %1517 = vmatprep.subr.bf16.mxu0 %v3297_v56  ;;  %1605 = vmatpush1.bf16.msra.mxu1 %v3702_v40  ;;  %v3718_v56 = vld [vmem:[#allocation4 + $0x8] ss:$24 sps:$4 sm:$0xff]  }
 0x423   :  { %1606 = vmatprep.subr.bf16.mxu1 %v3705_v43 }
 0x425   :  { %1518 = vmatpush1.bf16.msra.mxu0 %v3305_v59  ;;  %v3722_v59 = vld [vmem:[#allocation4 + $0x3c] ss:$24 sps:$4 sm:$0xff]  }
 0x426   :  { %1633 = vmatprep.subr.bf16.mxu0 %v3709_v48  ;;  %1607 = vmatpush1.bf16.msra.mxu1 %v3712_v52 }
 0x427   :  { %1674 = vmatprep.subr.bf16.mxu1 %v3715_v53 }
 0x428   :  { %1536 = vmatmul.mubr.bf16.vlgmr.msra.gmra.mrb[52].mxu0 %v1420_v51 }
 0x429   :  { %1634 = vmatpush1.bf16.msra.mxu0 %v3718_v56  ;;  %1665 = vmatprep.mubr.bf16.mxu0 %v4290_v54 }
 0x42a   :  { %1635 = vmatprep.subr.bf16.mxu0 %v3722_v59 }
 0x42d   :  { %1636 = vmatpush1.bf16.msra.mxu0 %v3216_v21 }
 0x42e   :  { %1637 = vmatprep.subr.bf16.mxu0 %v4313_v42 }
 0x431   :  { %1638 = vmatpush1.bf16.msra.mxu0 %v4314_v44 }
 0x432   :  { %1639 = vmatprep.subr.bf16.mxu0 %v4315_v47 }
 0x435   :  { %1640 = vmatpush1.bf16.msra.mxu0 %v4316_v49 }
 0x436   :  { %1641 = vmatprep.subr.bf16.mxu0 %v4317_v55 }
 0x439   :  { %1642 = vmatpush1.bf16.msra.mxu0 %v4318_v57 }
 0x43a   :  { %1643 = vmatprep.subr.bf16.mxu0 %v4319_v60 }
 0x43d   :  { %1644 = vmatpush1.bf16.msra.mxu0 %v4320_v61 }
 0x43e   :  { %1645 = vmatprep.subr.bf16.mxu0 %v4321_v4  ;;  %v4334_v4 = vld [vmem:[#allocation29_spill] sm:$0xff] }
 0x441   :  { %1646 = vmatpush1.bf16.msra.mxu0 %v4322_v6 }
 0x442   :  { %1647 = vmatprep.subr.bf16.mxu0 %v4323_v7 }
 0x445   :  { %1648 = vmatpush1.bf16.msra.mxu0 %v4324_v8 }
 0x446   :  { %1757 = vmatprep.subr.bf16.mxu0 %v3619_v9 }
 0x4db   :  { %v1455_v21 = vpop.f32.mrb[48].mxu0  ;;  %v1496_v42 = vpop.f32.mrb[36].mxu1 }
 0x4dc   :  { %v1456_v44 = vadd.f32 %v1455_v21, %v4326_v15  ;;  %v1457_v47 = vpop.f32.mrb[49].mxu0  ;;  %v1498_v49 = vpop.f32.mrb[37].mxu1  ;;  %v1497_v34 = vadd.f32 %v1496_v42, %v3461_v1 }
 0x4dd   :  { %v1458_v55 = vadd.f32 %v1457_v47, %v4305_v62  ;;  %v1499_v57 = vadd.f32 %v1498_v49, %v3464_v27  ;;  %v1459_v60 = vpop.f32.mrb[50].mxu0  ;;  %v1500_v61 = vpop.f32.mrb[38].mxu1  ;;  %v4338_v49 = vld [vmem:[#allocation58_spill] sm:$0xff] }
 0x4de   :  { %v1544_v6 = vadd.f32 %v1456_v44, %v4334_v4  ;;  %v1460_v58 = vpop.f32.mrb[51].mxu0  ;;  %v1501_v7 = vpop.f32.mrb[39].mxu1 }
 0x4df   :  { %v1549_v8 = vadd.f32 %v1458_v55, %v4335_v14  ;;  %v1560_v23 = vadd.f32 %v1499_v57, %v4336_v28  ;;  %v4339_v58 = vld [vmem:[#allocation59_spill] sm:$0xff] }
 0x4e0   :  { %v1545_v25 = vmul.f32 0.5, %v1544_v6 }
 0x4e1   :  { %v1561_v13 = vmul.f32 0.5, %v1560_v23  ;;  %v1550_v10 = vmul.f32 0.5, %v1549_v8 }
 0x4e2   :  { %2784 = vtanh.f32 %v1545_v25 }
 0x4e3   :  { %2786 = vtanh.f32 %v1561_v13 }
 0x4e4   :  { %2788 = vtanh.f32 %v1550_v10 }
 0x4ec   :  { %v2785_v11 = vpop.eup %2784 }
 0x4ed   :  { %v1547_v5 = vmul.f32 0.5, %v2785_v11  ;;  %v2787_v12 = vpop.eup %2786 }
 0x4ee   :  { %v2789_v16 = vpop.eup %2788  ;;  %v1563_v17 = vmul.f32 0.5, %v2787_v12  ;;  %v3771_v12 = vld [vmem:[#allocation4 + $0x44] ss:$24 sps:$4 sm:$0xff]  }
 0x4ef   :  { %v1548_v29 = vadd.f32 0.5, %v1547_v5  ;;  %v1552_v32 = vmul.f32 0.5, %v2789_v16  ;;  %v3785_v16 = vld [vmem:[#allocation4 + $0x70] ss:$24 sps:$4 sm:$0xff]  }
 0x4f0   :  { %v1564_v44 = vadd.f32 0.5, %v1563_v17  ;;  %v3788_v17 = vld [vmem:[#allocation4 + $0xa4] ss:$24 sps:$4 sm:$0xff]  }
 0x4f1   :  { %v1554_v35 = vmul.f32 %v1548_v29, %v1497_v34  ;;  %v1553_v61 = vadd.f32 0.5, %v1552_v32  ;;  %v3796_v32 = vld [vmem:[#allocation4 + $0xd4] ss:$24 sps:$4 sm:$0xff]  }
 0x4f3   :  { %v1555_v46 = vadd.f32 %v1554_v35, %v4337_v45 }
 0x4f5   :  { %2790 = vtanh.f32 %v1555_v46  ;;  %v3767_v46 = vld [vmem:[#allocation4 + $0x10] ss:$24 sps:$4 sm:$0xff]  }
 0x4fb   :  { %v1537_v19 = vpop.f32.mrb[52].mxu0 }
 0x4fc   :  { %v1538_v50 = vadd.f32 %v1537_v19, %v4331_v0  ;;  %v1539_v51 = vpop.f32.mrb[53].mxu0  ;;  %v3793_v19 = vld [vmem:[#allocation4 + $0xa0] ss:$24 sps:$4 sm:$0xff]  }
 0x4fd   :  { %v1540_v21 = vadd.f32 %v1539_v51, %v3472_v38  ;;  %v1541_v47 = vpop.f32.mrb[54].mxu0  ;;  %v3804_v51 = vld [vmem:[#allocation4 + $0x104] ss:$24 sps:$4 sm:$0xff]  }
 0x4fe   :  { %v1565_v42 = vadd.f32 %v1538_v50, %v4338_v49  ;;  %v1542_v55 = vpop.f32.mrb[55].mxu0  ;;  %v3801_v50 = vld [vmem:[#allocation4 + $0xd0] ss:$24 sps:$4 sm:$0xff]   ;;  %v3820_v49 = vld [vmem:[#allocation4 + $0x164] ss:$24 sps:$4 sm:$0xff]  }
 0x4ff   :  { %v2791_v57 = vpop.eup %2790  ;;  %v1570_v60 = vmul.f32 %v1564_v44, %v1540_v21  ;;  %v3809_v21 = vld [vmem:[#allocation4 + $0x100] ss:$24 sps:$4 sm:$0xff]   ;;  %v3812_v44 = vld [vmem:[#allocation4 + $0x134] ss:$24 sps:$4 sm:$0xff]   ;;  %v3817_v47 = vld [vmem:[#allocation4 + $0x130] ss:$24 sps:$4 sm:$0xff]  }
 0x500   :  { %v1557_v4 = vsub.f32 %v3641_v3, %v2791_v57  ;;  %v1566_v6 = vmul.f32 0.5, %v1565_v42  ;;  %v3825_v42 = vld [vmem:[#allocation4 + $0x160] ss:$24 sps:$4 sm:$0xff]  }
 0x501   :  { %v1571_v7 = vadd.f32 %v1570_v60, %v4339_v58  ;;  %v3834_v55 = vld [vmem:[#allocation4 + $0x38] ss:$24 sps:$4 sm:$0xff]   ;;  %v3840_v60 = vld [vmem:[#allocation4 + $0x68] ss:$24 sps:$4 sm:$0xff]  }
 0x502   :  { %v1558_v14 = vmul.f32 %v1557_v4, %v1553_v61  ;;  %2792 = vtanh.f32 %v1566_v6  ;;  %4340 = vst [vmem:[#allocation49_spill] sm:$0xff] %v3834_v55  ;;  %4342 = vst [vmem:[#allocation23_spill] sm:$0xff] %v3840_v60  ;;  %v3843_v61 = vld [vmem:[#allocation4 + $0x9c] ss:$24 sps:$4 sm:$0xff]   ;;  %v3846_v4 = vld [vmem:[#allocation4 + $0x98] ss:$24 sps:$4 sm:$0xff]  }
 0x503   :  { %2794 = vtanh.f32 %v1571_v7  ;;  %4343 = vst [vmem:[#allocation44_spill] sm:$0xff] %v3843_v61  ;;  %4344 = vst [vmem:[#allocation22_spill] sm:$0xff] %v3846_v4  ;;  %v3849_v6 = vld [vmem:[#allocation4 + $0xcc] ss:$24 sps:$4 sm:$0xff]   ;;  %v3852_v58 = vld [vmem:[#allocation4 + $0xc8] ss:$24 sps:$4 sm:$0xff]  }
 0x504   :  { %v1559_v8 = vadd.f32 %v2791_v57, %v1558_v14  ;;  %v3837_v57 = vld [vmem:[#allocation4 + $0x6c] ss:$24 sps:$4 sm:$0xff]   ;;  %4345 = vst [vmem:[#allocation62_spill] sm:$0xff] %v3849_v6  ;;  %4346 = vst [vmem:[#allocation63_spill] sm:$0xff] %v3852_v58  ;;  %v3855_v7 = vld [vmem:[#allocation4 + $0xfc] ss:$24 sps:$4 sm:$0xff]  }
 0x505   :  { %4341 = vst [vmem:[#allocation21_spill] sm:$0xff] %v3837_v57  ;;  %4347 = vst [vmem:[#allocation8_spill] sm:$0xff] %v3855_v7  ;;  %v3858_v14 = vld [vmem:[#allocation4 + $0xf8] ss:$24 sps:$4 sm:$0xff]  }
 0x506   :  { %v3758_v34 = vsel %vm1576_vm5, %v1559_v8, %v3641_v3  ;;  %v3777_v3 = vld [vmem:[#allocation4 + $0x40] ss:$24 sps:$4 sm:$0xff]   ;;  %4348 = vst [vmem:[#allocation9_spill] sm:$0xff] %v3858_v14  ;;  %v3861_v8 = vld [vmem:[#allocation4 + $0x12c] ss:$24 sps:$4 sm:$0xff]  }
 0x507   :  { %4349 = vst [vmem:[#allocation10_spill] sm:$0xff] %v3861_v8 }
 0x50c   :  { %v2793_v28 = vpop.eup %2792 }
 0x50d   :  { %v2795_v23 = vpop.eup %2794  ;;  %v1568_v25 = vmul.f32 0.5, %v2793_v28  ;;  %v3864_v28 = vld [vmem:[#allocation4 + $0x128] ss:$24 sps:$4 sm:$0xff]  }
 0x50e   :  { %v1573_v13 = vsub.f32 %v3646_v2, %v2795_v23  ;;  %4350 = vst [vmem:[#allocation11_spill] sm:$0xff] %v3864_v28 }
 0x50f   :  { %v1569_v10 = vadd.f32 0.5, %v1568_v25  ;;  %v3870_v25 = vld [vmem:[#allocation4 + $0x158] ss:$24 sps:$4 sm:$0xff]  }
 0x510   :  { %4352 = vst [vmem:[#allocation13_spill] sm:$0xff] %v3870_v25 }
 0x511   :  { %v1574_v11 = vmul.f32 %v1573_v13, %v1569_v10 }
 0x513   :  { %v1575_v5 = vadd.f32 %v2795_v23, %v1574_v11  ;;  %v3867_v23 = vld [vmem:[#allocation4 + $0x15c] ss:$24 sps:$4 sm:$0xff]  }
 0x514   :  { %4351 = vst [vmem:[#allocation12_spill] sm:$0xff] %v3867_v23 }
 0x515   :  { %v3763_v29 = vsel %vm1580_vm6, %v1575_v5, %v3646_v2  ;;  %v3780_v2 = vld [vmem:[#allocation4 + $0x74] ss:$24 sps:$4 sm:$0xff]  }
 0x516   :  { %v1590_v35 = vadd.f32 %v3763_v29, %v3758_v34 }
 0x518   :  { %v1591_v45 = vpack.c.bf16 %v1590_v35, %v1590_v35 }
 0x51a   :  { %1625 = vmatmul.mubr.bf16.vlgmr.msra.gmra.mrb[40].mxu1 %v1591_v45  ;;  %1666 = vmatmul.mubr.bf16.vlgmr.msra.gmra.mrb[56].mxu0 %v1591_v45 }
 0x51b   :  { %1675 = vmatpush1.bf16.msra.mxu1 %v3767_v46  ;;  %1706 = vmatprep.mubr.bf16.mxu1 %v4290_v54 }
 0x51c   :  { %1676 = vmatprep.subr.bf16.mxu1 %v3771_v12  ;;  %1758 = vmatpush1.bf16.msra.mxu0 %v3653_v37 }
 0x51d   :  { %1759 = vmatprep.subr.bf16.mxu0 %v3656_v63  ;;  %1789 = vmatprep.mubr.bf16.mxu0 %v4290_v54 }
 0x51f   :  { %1677 = vmatpush1.bf16.msra.mxu1 %v3777_v3 }
 0x520   :  { %1678 = vmatprep.subr.bf16.mxu1 %v3780_v2  ;;  %1760 = vmatpush1.bf16.msra.mxu0 %v3662_v31 }
 0x521   :  { %1761 = vmatprep.subr.bf16.mxu0 %v3665_v18 }
 0x523   :  { %1679 = vmatpush1.bf16.msra.mxu1 %v3785_v16 }
 0x524   :  { %1680 = vmatprep.subr.bf16.mxu1 %v3788_v17  ;;  %1762 = vmatpush1.bf16.msra.mxu0 %v3670_v20 }
 0x525   :  { %1763 = vmatprep.subr.bf16.mxu0 %v3673_v41 }
 0x527   :  { %1681 = vmatpush1.bf16.msra.mxu1 %v3793_v19 }
 0x528   :  { %1682 = vmatprep.subr.bf16.mxu1 %v3796_v32  ;;  %1764 = vmatpush1.bf16.msra.mxu0 %v3678_v22 }
 0x529   :  { %1765 = vmatprep.subr.bf16.mxu0 %v3681_v24 }
 0x52b   :  { %1683 = vmatpush1.bf16.msra.mxu1 %v3801_v50 }
 0x52c   :  { %1684 = vmatprep.subr.bf16.mxu1 %v3804_v51  ;;  %1766 = vmatpush1.bf16.msra.mxu0 %v3686_v26 }
 0x52d   :  { %1767 = vmatprep.subr.bf16.mxu0 %v3689_v30 }
 0x52f   :  { %1685 = vmatpush1.bf16.msra.mxu1 %v3809_v21 }
 0x530   :  { %1686 = vmatprep.subr.bf16.mxu1 %v3812_v44  ;;  %1768 = vmatpush1.bf16.msra.mxu0 %v3694_v33 }
 0x531   :  { %1769 = vmatprep.subr.bf16.mxu0 %v3697_v36 }
 0x533   :  { %1687 = vmatpush1.bf16.msra.mxu1 %v3817_v47 }
 0x534   :  { %1688 = vmatprep.subr.bf16.mxu1 %v3820_v49  ;;  %1770 = vmatpush1.bf16.msra.mxu0 %v3702_v40 }
 0x535   :  { %1771 = vmatprep.subr.bf16.mxu0 %v3705_v43 }
 0x537   :  { %1689 = vmatpush1.bf16.msra.mxu1 %v3825_v42 }
 0x538   :  { %1798 = vmatprep.subr.bf16.mxu1 %v3709_v48  ;;  %1772 = vmatpush1.bf16.msra.mxu0 %v3712_v52 }
 0x539   :  { %1839 = vmatprep.subr.bf16.mxu0 %v3715_v53 }
 0x53a   :  { %1707 = vmatmul.mubr.bf16.vlgmr.msra.gmra.mrb[44].mxu1 %v1591_v45 }
 0x53b   :  { %1799 = vmatpush1.bf16.msra.mxu1 %v3718_v56  ;;  %1830 = vmatprep.mubr.bf16.mxu1 %v4290_v54 }
 0x53c   :  { %1800 = vmatprep.subr.bf16.mxu1 %v3722_v59 }
 0x53f   :  { %1801 = vmatpush1.bf16.msra.mxu1 %v3834_v55 }
 0x540   :  { %1802 = vmatprep.subr.bf16.mxu1 %v3837_v57 }
 0x543   :  { %1803 = vmatpush1.bf16.msra.mxu1 %v3840_v60 }
 0x544   :  { %1804 = vmatprep.subr.bf16.mxu1 %v3843_v61  ;;  %v4355_v61 = vld [vmem:[#allocation32_spill] sm:$0xff] }
 0x547   :  { %1805 = vmatpush1.bf16.msra.mxu1 %v3846_v4  ;;  %v4354_v4 = vld [vmem:[#allocation35_spill] sm:$0xff] }
 0x548   :  { %1806 = vmatprep.subr.bf16.mxu1 %v3849_v6 }
 0x54b   :  { %1807 = vmatpush1.bf16.msra.mxu1 %v3852_v58 }
 0x54c   :  { %1808 = vmatprep.subr.bf16.mxu1 %v3855_v7  ;;  %v4353_v7 = vld [vmem:[#allocation33_spill] sm:$0xff] }
 0x54f   :  { %1809 = vmatpush1.bf16.msra.mxu1 %v3858_v14 }
 0x550   :  { %1810 = vmatprep.subr.bf16.mxu1 %v3861_v8 }
 0x553   :  { %1811 = vmatpush1.bf16.msra.mxu1 %v3864_v28 }
 0x554   :  { %1812 = vmatprep.subr.bf16.mxu1 %v3867_v23 }
 0x557   :  { %1813 = vmatpush1.bf16.msra.mxu1 %v3870_v25 }
 0x558   :  { %1922 = vmatprep.subr.bf16.mxu1 %v3619_v9 }
 0x5ed   :  { %v1626_v13 = vpop.f32.mrb[40].mxu1  ;;  %v1667_v10 = vpop.f32.mrb[56].mxu0 }
 0x5ee   :  { %v1627_v11 = vadd.f32 %v1626_v13, %v4326_v15  ;;  %v1628_v5 = vpop.f32.mrb[41].mxu1  ;;  %v1669_v35 = vpop.f32.mrb[57].mxu0 }
 0x5ef   :  { %v1629_v45 = vadd.f32 %v1628_v5, %v4305_v62  ;;  %v1670_v28 = vadd.f32 %v1669_v35, %v3464_v27  ;;  %v1630_v8 = vpop.f32.mrb[42].mxu1  ;;  %v1671_v14 = vpop.f32.mrb[58].mxu0  ;;  %v1668_v5 = vadd.f32 %v1667_v10, %v3461_v1 }
 0x5f0   :  { %v1715_v23 = vadd.f32 %v1627_v11, %v4353_v7  ;;  %v1631_v58 = vpop.f32.mrb[43].mxu1  ;;  %v1672_v6 = vpop.f32.mrb[59].mxu0  ;;  %v4356_v8 = vld [vmem:[#allocation34_spill] sm:$0xff] }
 0x5f1   :  { %v1720_v25 = vadd.f32 %v1629_v45, %v4354_v4  ;;  %v1731_v9 = vadd.f32 %v1670_v28, %v4355_v61 }
 0x5f2   :  { %v1716_v60 = vmul.f32 0.5, %v1715_v23  ;;  %v4357_v23 = vld [vmem:[#allocation56_spill] sm:$0xff] }
 0x5f3   :  { %v1732_v57 = vmul.f32 0.5, %v1731_v9  ;;  %v1721_v13 = vmul.f32 0.5, %v1720_v25 }
 0x5f4   :  { %2796 = vtanh.f32 %v1716_v60 }
 0x5f5   :  { %2798 = vtanh.f32 %v1732_v57 }
 0x5f6   :  { %2800 = vtanh.f32 %v1721_v13 }
 0x5fe   :  { %v2797_v15 = vpop.eup %2796 }
 0x5ff   :  { %v1718_v55 = vmul.f32 0.5, %v2797_v15  ;;  %v2799_v6 = vpop.eup %2798 }
 0x600   :  { %v2801_v58 = vpop.eup %2800  ;;  %v1734_v4 = vmul.f32 0.5, %v2799_v6 }
 0x601   :  { %v1719_v35 = vadd.f32 0.5, %v1718_v55  ;;  %v1723_v61 = vmul.f32 0.5, %v2801_v58 }
 0x602   :  { %v1735_v57 = vadd.f32 0.5, %v1734_v4 }
 0x603   :  { %v1725_v14 = vmul.f32 %v1719_v35, %v1668_v5  ;;  %v1724_v13 = vadd.f32 0.5, %v1723_v61 }
 0x605   :  { %v1726_v7 = vadd.f32 %v1725_v14, %v4356_v8  ;;  %v4358_v14 = vld [vmem:[#allocation57_spill] sm:$0xff] }
 0x607   :  { %2802 = vtanh.f32 %v1726_v7 }
 0x60d   :  { %v1708_v11 = vpop.f32.mrb[44].mxu1 }
 0x60e   :  { %v1709_v60 = vadd.f32 %v1708_v11, %v4331_v0  ;;  %v1710_v9 = vpop.f32.mrb[45].mxu1 }
 0x60f   :  { %v1711_v28 = vadd.f32 %v1710_v9, %v3472_v38  ;;  %v1712_v15 = vpop.f32.mrb[46].mxu1 }
 0x610   :  { %v1736_v25 = vadd.f32 %v1709_v60, %v4357_v23  ;;  %v1713_v55 = vpop.f32.mrb[47].mxu1 }
 0x611   :  { %v2803_v10 = vpop.eup %2802  ;;  %v1741_v45 = vmul.f32 %v1735_v57, %v1711_v28  ;;  %v4361_v55 = vld [vmem:[#allocation23_spill] sm:$0xff] }
 0x612   :  { %v1728_v5 = vsub.f32 %v3758_v34, %v2803_v10  ;;  %v1737_v35 = vmul.f32 0.5, %v1736_v25 }
 0x613   :  { %v1742_v8 = vadd.f32 %v1741_v45, %v4358_v14  ;;  %v4363_v45 = vld [vmem:[#allocation22_spill] sm:$0xff]  ;;  %v4367_v14 = vld [vmem:[#allocation9_spill] sm:$0xff] }
 0x614   :  { %v1729_v7 = vmul.f32 %v1728_v5, %v1724_v13  ;;  %2804 = vtanh.f32 %v1737_v35  ;;  %v4364_v13 = vld [vmem:[#allocation62_spill] sm:$0xff]  ;;  %v4365_v5 = vld [vmem:[#allocation63_spill] sm:$0xff]  ;;  %v4366_v35 = vld [vmem:[#allocation8_spill] sm:$0xff] }
 0x615   :  { %2806 = vtanh.f32 %v1742_v8  ;;  %v4368_v8 = vld [vmem:[#allocation10_spill] sm:$0xff] }
 0x616   :  { %v1730_v6 = vadd.f32 %v2803_v10, %v1729_v7  ;;  %v4362_v10 = vld [vmem:[#allocation44_spill] sm:$0xff]  ;;  %v4369_v7 = vld [vmem:[#allocation11_spill] sm:$0xff] }
 0x618   :  { %v3891_v61 = vsel %vm1580_vm6, %v1730_v6, %v3758_v34  ;;  %v4359_v34 = vld [vmem:[#allocation49_spill] sm:$0xff]  ;;  %v4370_v6 = vld [vmem:[#allocation12_spill] sm:$0xff] }
 0x61e   :  { %v2805_v58 = vpop.eup %2804 }
 0x61f   :  { %v2807_v11 = vpop.eup %2806  ;;  %v1739_v9 = vmul.f32 0.5, %v2805_v58  ;;  %v4371_v58 = vld [vmem:[#allocation13_spill] sm:$0xff] }
 0x620   :  { %v1744_v4 = vsub.f32 %v3763_v29, %v2807_v11 }
 0x621   :  { %v1740_v15 = vadd.f32 0.5, %v1739_v9 }
 0x623   :  { %v1745_v60 = vmul.f32 %v1744_v4, %v1740_v15  ;;  %v4373_v15 = vld [vmem:[#allocation48_spill] sm:$0xff] }
 0x625   :  { %v1746_v23 = vadd.f32 %v2807_v11, %v1745_v60  ;;  %v4372_v11 = vld [vmem:[#allocation7_spill] sm:$0xff] }
 0x627   :  { %v3896_v28 = vsel %vm1576_vm5, %v1746_v23, %v3763_v29  ;;  %v4360_v29 = vld [vmem:[#allocation21_spill] sm:$0xff] }
 0x628   :  { %v1755_v57 = vadd.f32 %v3896_v28, %v3891_v61 }
 0x62a   :  { %v1756_v25 = vpack.c.bf16 %v1755_v57, %v1755_v57 }
 0x62c   :  { %1790 = vmatmul.mubr.bf16.vlgmr.msra.gmra.mrb[60].mxu0 %v1756_v25  ;;  %1831 = vmatmul.mubr.bf16.vlgmr.msra.gmra.mrb[48].mxu1 %v1756_v25 }
 0x62d   :  { %1840 = vmatpush1.bf16.msra.mxu0 %v3767_v46  ;;  %1871 = vmatprep.mubr.bf16.mxu0 %v4290_v54 }
 0x62e   :  { %1841 = vmatprep.subr.bf16.mxu0 %v3771_v12  ;;  %1923 = vmatpush1.bf16.msra.mxu1 %v3653_v37 }
 0x62f   :  { %1924 = vmatprep.subr.bf16.mxu1 %v3656_v63  ;;  %1954 = vmatprep.mubr.bf16.mxu1 %v4290_v54 }
 0x631   :  { %1842 = vmatpush1.bf16.msra.mxu0 %v3777_v3 }
 0x632   :  { %1843 = vmatprep.subr.bf16.mxu0 %v3780_v2  ;;  %1925 = vmatpush1.bf16.msra.mxu1 %v3662_v31 }
 0x633   :  { %1926 = vmatprep.subr.bf16.mxu1 %v3665_v18 }
 0x635   :  { %1844 = vmatpush1.bf16.msra.mxu0 %v3785_v16 }
 0x636   :  { %1845 = vmatprep.subr.bf16.mxu0 %v3788_v17  ;;  %1927 = vmatpush1.bf16.msra.mxu1 %v3670_v20 }
 0x637   :  { %1928 = vmatprep.subr.bf16.mxu1 %v3673_v41 }
 0x639   :  { %1846 = vmatpush1.bf16.msra.mxu0 %v3793_v19 }
 0x63a   :  { %1847 = vmatprep.subr.bf16.mxu0 %v3796_v32  ;;  %1929 = vmatpush1.bf16.msra.mxu1 %v3678_v22 }
 0x63b   :  { %1930 = vmatprep.subr.bf16.mxu1 %v3681_v24 }
 0x63d   :  { %1848 = vmatpush1.bf16.msra.mxu0 %v3801_v50 }
 0x63e   :  { %1849 = vmatprep.subr.bf16.mxu0 %v3804_v51  ;;  %1931 = vmatpush1.bf16.msra.mxu1 %v3686_v26 }
 0x63f   :  { %1932 = vmatprep.subr.bf16.mxu1 %v3689_v30 }
 0x641   :  { %1850 = vmatpush1.bf16.msra.mxu0 %v3809_v21 }
 0x642   :  { %1851 = vmatprep.subr.bf16.mxu0 %v3812_v44  ;;  %1933 = vmatpush1.bf16.msra.mxu1 %v3694_v33 }
 0x643   :  { %1934 = vmatprep.subr.bf16.mxu1 %v3697_v36 }
 0x645   :  { %1852 = vmatpush1.bf16.msra.mxu0 %v3817_v47 }
 0x646   :  { %1853 = vmatprep.subr.bf16.mxu0 %v3820_v49  ;;  %1935 = vmatpush1.bf16.msra.mxu1 %v3702_v40 }
 0x647   :  { %1936 = vmatprep.subr.bf16.mxu1 %v3705_v43 }
 0x649   :  { %1854 = vmatpush1.bf16.msra.mxu0 %v3825_v42 }
 0x64a   :  { %1963 = vmatprep.subr.bf16.mxu0 %v3709_v48  ;;  %1937 = vmatpush1.bf16.msra.mxu1 %v3712_v52 }
 0x64b   :  { %2004 = vmatprep.subr.bf16.mxu1 %v3715_v53 }
 0x64c   :  { %1872 = vmatmul.mubr.bf16.vlgmr.msra.gmra.mrb[64].mxu0 %v1756_v25 }
 0x64d   :  { %1964 = vmatpush1.bf16.msra.mxu0 %v3718_v56  ;;  %1995 = vmatprep.mubr.bf16.mxu0 %v4290_v54 }
 0x64e   :  { %1965 = vmatprep.subr.bf16.mxu0 %v3722_v59 }
 0x651   :  { %1966 = vmatpush1.bf16.msra.mxu0 %v4359_v34 }
 0x652   :  { %1967 = vmatprep.subr.bf16.mxu0 %v4360_v29 }
 0x655   :  { %1968 = vmatpush1.bf16.msra.mxu0 %v4361_v55 }
 0x656   :  { %1969 = vmatprep.subr.bf16.mxu0 %v4362_v10  ;;  %v4376_v10 = vld [vmem:[#allocation28_spill] sm:$0xff] }
 0x659   :  { %1970 = vmatpush1.bf16.msra.mxu0 %v4363_v45  ;;  %v4375_v45 = vld [vmem:[#allocation39_spill] sm:$0xff] }
 0x65a   :  { %1971 = vmatprep.subr.bf16.mxu0 %v4364_v13 }
 0x65d   :  { %1972 = vmatpush1.bf16.msra.mxu0 %v4365_v5  ;;  %v4374_v5 = vld [vmem:[#allocation37_spill] sm:$0xff] }
 0x65e   :  { %1973 = vmatprep.subr.bf16.mxu0 %v4366_v35 }
 0x661   :  { %1974 = vmatpush1.bf16.msra.mxu0 %v4367_v14 }
 0x662   :  { %1975 = vmatprep.subr.bf16.mxu0 %v4368_v8 }
 0x665   :  { %1976 = vmatpush1.bf16.msra.mxu0 %v4369_v7 }
 0x666   :  { %1977 = vmatprep.subr.bf16.mxu0 %v4370_v6 }
 0x669   :  { %1978 = vmatpush1.bf16.msra.mxu0 %v4371_v58 }
 0x66a   :  { %2087 = vmatprep.subr.bf16.mxu0 %v4372_v11 }
 0x6ff   :  { %v1791_v9 = vpop.f32.mrb[60].mxu0  ;;  %v1832_v4 = vpop.f32.mrb[48].mxu1 }
 0x700   :  { %v1792_v60 = vadd.f32 %v1791_v9, %v4373_v15  ;;  %v1793_v23 = vpop.f32.mrb[61].mxu0  ;;  %v1834_v57 = vpop.f32.mrb[49].mxu1 }
 0x701   :  { %v1794_v25 = vadd.f32 %v1793_v23, %v4305_v62  ;;  %v1835_v14 = vadd.f32 %v1834_v57, %v3464_v27  ;;  %v1795_v35 = vpop.f32.mrb[62].mxu0  ;;  %v1836_v8 = vpop.f32.mrb[50].mxu1  ;;  %v1833_v23 = vadd.f32 %v1832_v4, %v3461_v1 }
 0x702   :  { %v1880_v7 = vadd.f32 %v1792_v60, %v4374_v5  ;;  %v1796_v13 = vpop.f32.mrb[63].mxu0  ;;  %v1837_v6 = vpop.f32.mrb[51].mxu1  ;;  %v4377_v8 = vld [vmem:[#allocation38_spill] sm:$0xff] }
 0x703   :  { %v1885_v58 = vadd.f32 %v1794_v25, %v4375_v45  ;;  %v1896_v11 = vadd.f32 %v1835_v14, %v4376_v10 }
 0x704   :  { %v1881_v55 = vmul.f32 0.5, %v1880_v7 }
 0x705   :  { %v1897_v29 = vmul.f32 0.5, %v1896_v11  ;;  %v1886_v9 = vmul.f32 0.5, %v1885_v58 }
 0x706   :  { %2808 = vtanh.f32 %v1881_v55 }
 0x707   :  { %2810 = vtanh.f32 %v1897_v29 }
 0x708   :  { %2812 = vtanh.f32 %v1886_v9 }
 0x710   :  { %v2809_v15 = vpop.eup %2808 }
 0x711   :  { %v1883_v34 = vmul.f32 0.5, %v2809_v15  ;;  %v2811_v13 = vpop.eup %2810  ;;  %v4378_v15 = vld [vmem:[#allocation54_spill] sm:$0xff] }
 0x712   :  { %v2813_v6 = vpop.eup %2812  ;;  %v1899_v45 = vmul.f32 0.5, %v2811_v13 }
 0x713   :  { %v1884_v57 = vadd.f32 0.5, %v1883_v34  ;;  %v1888_v10 = vmul.f32 0.5, %v2813_v6 }
 0x714   :  { %v1900_v29 = vadd.f32 0.5, %v1899_v45 }
 0x715   :  { %v1890_v35 = vmul.f32 %v1884_v57, %v1833_v23  ;;  %v1889_v9 = vadd.f32 0.5, %v1888_v10 }
 0x717   :  { %v1891_v5 = vadd.f32 %v1890_v35, %v4377_v8  ;;  %v4379_v35 = vld [vmem:[#allocation55_spill] sm:$0xff] }
 0x719   :  { %2814 = vtanh.f32 %v1891_v5 }
 0x71f   :  { %v1873_v60 = vpop.f32.mrb[64].mxu0 }
 0x720   :  { %v1874_v55 = vadd.f32 %v1873_v60, %v4331_v0  ;;  %v1875_v14 = vpop.f32.mrb[65].mxu0 }
 0x721   :  { %v1876_v7 = vadd.f32 %v1875_v14, %v3472_v38  ;;  %v1877_v58 = vpop.f32.mrb[66].mxu0 }
 0x722   :  { %v1901_v4 = vadd.f32 %v1874_v55, %v4378_v15  ;;  %v1878_v34 = vpop.f32.mrb[67].mxu0 }
 0x723   :  { %v2815_v25 = vpop.eup %2814  ;;  %v1906_v11 = vmul.f32 %v1900_v29, %v1876_v7 }
 0x724   :  { %v1893_v23 = vsub.f32 %v3891_v61, %v2815_v25  ;;  %v1902_v57 = vmul.f32 0.5, %v1901_v4 }
 0x725   :  { %v1907_v8 = vadd.f32 %v1906_v11, %v4379_v35  ;;  %v4394_v11 = vld [vmem:[#allocation41_spill] sm:$0xff]  ;;  %v4395_v35 = vld [vmem:[#allocation43_spill] sm:$0xff] }
 0x726   :  { %v1894_v5 = vmul.f32 %v1893_v23, %v1889_v9  ;;  %2816 = vtanh.f32 %v1902_v57 }
 0x727   :  { %2818 = vtanh.f32 %v1907_v8 }
 0x728   :  { %v1895_v13 = vadd.f32 %v2815_v25, %v1894_v5  ;;  %v4396_v5 = vld [vmem:[#allocation24_spill] sm:$0xff] }
 0x72a   :  { %v3968_v10 = vsel %vm1403_vm4, %v1895_v13, %v3891_v61 }
 0x730   :  { %v2817_v6 = vpop.eup %2816 }
 0x731   :  { %v2819_v60 = vpop.eup %2818  ;;  %v1904_v14 = vmul.f32 0.5, %v2817_v6 }
 0x732   :  { %v1909_v45 = vsub.f32 %v3896_v28, %v2819_v60 }
 0x733   :  { %v1905_v58 = vadd.f32 0.5, %v1904_v14 }
 0x735   :  { %v1910_v55 = vmul.f32 %v1909_v45, %v1905_v58 }
 0x737   :  { %v1911_v15 = vadd.f32 %v2819_v60, %v1910_v55 }
 0x739   :  { %v3973_v7 = vsel %vm1399_vm3, %v1911_v15, %v3896_v28 }
 0x73a   :  { %v1920_v29 = vadd.f32 %v3973_v7, %v3968_v10 }
 0x73c   :  { %v1921_v4 = vpack.c.bf16 %v1920_v29, %v1920_v29 }
 0x73e   :  { %1955 = vmatmul.mubr.bf16.vlgmr.msra.gmra.mrb[52].mxu1 %v1921_v4  ;;  %1996 = vmatmul.mubr.bf16.vlgmr.msra.gmra.mrb[68].mxu0 %v1921_v4 }
 0x73f   :  { %2005 = vmatpush1.bf16.msra.mxu1 %v3767_v46  ;;  %2036 = vmatprep.mubr.bf16.mxu1 %v4290_v54 }
 0x740   :  { %2006 = vmatprep.subr.bf16.mxu1 %v3771_v12  ;;  %2088 = vmatpush1.bf16.msra.mxu0 %v3653_v37  ;;  %v4380_v37 = vld [vmem:[#allocation49_spill] sm:$0xff] }
 0x741   :  { %2089 = vmatprep.subr.bf16.mxu0 %v3656_v63  ;;  %2119 = vmatprep.mubr.bf16.mxu0 %v4290_v54  ;;  %v4381_v63 = vld [vmem:[#allocation21_spill] sm:$0xff] }
 0x743   :  { %2007 = vmatpush1.bf16.msra.mxu1 %v3777_v3 }
 0x744   :  { %2008 = vmatprep.subr.bf16.mxu1 %v3780_v2  ;;  %2090 = vmatpush1.bf16.msra.mxu0 %v3662_v31  ;;  %v4382_v31 = vld [vmem:[#allocation23_spill] sm:$0xff] }
 0x745   :  { %2091 = vmatprep.subr.bf16.mxu0 %v3665_v18  ;;  %v4383_v18 = vld [vmem:[#allocation44_spill] sm:$0xff] }
 0x747   :  { %2009 = vmatpush1.bf16.msra.mxu1 %v3785_v16 }
 0x748   :  { %2010 = vmatprep.subr.bf16.mxu1 %v3788_v17  ;;  %2092 = vmatpush1.bf16.msra.mxu0 %v3670_v20  ;;  %v4384_v20 = vld [vmem:[#allocation22_spill] sm:$0xff] }
 0x749   :  { %2093 = vmatprep.subr.bf16.mxu0 %v3673_v41  ;;  %v4385_v41 = vld [vmem:[#allocation62_spill] sm:$0xff] }
 0x74b   :  { %2011 = vmatpush1.bf16.msra.mxu1 %v3793_v19 }
 0x74c   :  { %2012 = vmatprep.subr.bf16.mxu1 %v3796_v32  ;;  %2094 = vmatpush1.bf16.msra.mxu0 %v3678_v22  ;;  %v4386_v22 = vld [vmem:[#allocation63_spill] sm:$0xff] }
 0x74d   :  { %2095 = vmatprep.subr.bf16.mxu0 %v3681_v24  ;;  %v4387_v24 = vld [vmem:[#allocation8_spill] sm:$0xff] }
 0x74f   :  { %2013 = vmatpush1.bf16.msra.mxu1 %v3801_v50 }
 0x750   :  { %2014 = vmatprep.subr.bf16.mxu1 %v3804_v51  ;;  %2096 = vmatpush1.bf16.msra.mxu0 %v3686_v26  ;;  %v4388_v26 = vld [vmem:[#allocation9_spill] sm:$0xff] }
 0x751   :  { %2097 = vmatprep.subr.bf16.mxu0 %v3689_v30  ;;  %v4389_v30 = vld [vmem:[#allocation10_spill] sm:$0xff] }
 0x753   :  { %2015 = vmatpush1.bf16.msra.mxu1 %v3809_v21 }
 0x754   :  { %2016 = vmatprep.subr.bf16.mxu1 %v3812_v44  ;;  %2098 = vmatpush1.bf16.msra.mxu0 %v3694_v33  ;;  %v4390_v33 = vld [vmem:[#allocation11_spill] sm:$0xff] }
 0x755   :  { %2099 = vmatprep.subr.bf16.mxu0 %v3697_v36  ;;  %v4391_v36 = vld [vmem:[#allocation12_spill] sm:$0xff] }
 0x757   :  { %2017 = vmatpush1.bf16.msra.mxu1 %v3817_v47 }
 0x758   :  { %2018 = vmatprep.subr.bf16.mxu1 %v3820_v49  ;;  %2100 = vmatpush1.bf16.msra.mxu0 %v3702_v40  ;;  %v4392_v40 = vld [vmem:[#allocation13_spill] sm:$0xff] }
 0x759   :  { %2101 = vmatprep.subr.bf16.mxu0 %v3705_v43 }
 0x75b   :  { %2019 = vmatpush1.bf16.msra.mxu1 %v3825_v42 }
 0x75c   :  { %2128 = vmatprep.subr.bf16.mxu1 %v3709_v48  ;;  %2102 = vmatpush1.bf16.msra.mxu0 %v3712_v52  ;;  %v4393_v52 = vld [vmem:[#allocation48_spill] sm:$0xff] }
 0x75d   :  { %2169 = vmatprep.subr.bf16.mxu0 %v3715_v53 }
 0x75e   :  { %2037 = vmatmul.mubr.bf16.vlgmr.msra.gmra.mrb[56].mxu1 %v1921_v4  ;;  %v4397_v4 = vld [vmem:[#allocation42_spill] sm:$0xff] }
 0x75f   :  { %2129 = vmatpush1.bf16.msra.mxu1 %v3718_v56  ;;  %2160 = vmatprep.mubr.bf16.mxu1 %v4290_v54 }
 0x760   :  { %2130 = vmatprep.subr.bf16.mxu1 %v3722_v59 }
 0x763   :  { %2131 = vmatpush1.bf16.msra.mxu1 %v4380_v37 }
 0x764   :  { %2132 = vmatprep.subr.bf16.mxu1 %v4381_v63 }
 0x767   :  { %2133 = vmatpush1.bf16.msra.mxu1 %v4382_v31 }
 0x768   :  { %2134 = vmatprep.subr.bf16.mxu1 %v4383_v18 }
 0x76b   :  { %2135 = vmatpush1.bf16.msra.mxu1 %v4384_v20 }
 0x76c   :  { %2136 = vmatprep.subr.bf16.mxu1 %v4385_v41 }
 0x76f   :  { %2137 = vmatpush1.bf16.msra.mxu1 %v4386_v22 }
 0x770   :  { %2138 = vmatprep.subr.bf16.mxu1 %v4387_v24 }
 0x773   :  { %2139 = vmatpush1.bf16.msra.mxu1 %v4388_v26 }
 0x774   :  { %2140 = vmatprep.subr.bf16.mxu1 %v4389_v30 }
 0x777   :  { %2141 = vmatpush1.bf16.msra.mxu1 %v4390_v33 }
 0x778   :  { %2142 = vmatprep.subr.bf16.mxu1 %v4391_v36  ;;  %v4398_v36 = vld [vmem:[#allocation52_spill] sm:$0xff] }
 0x77b   :  { %2143 = vmatpush1.bf16.msra.mxu1 %v4392_v40 }
 0x811   :  { %v1956_v43 = vpop.f32.mrb[52].mxu1  ;;  %v1997_v48 = vpop.f32.mrb[68].mxu0 }
 0x812   :  { %v1957_v53 = vadd.f32 %v1956_v43, %v4393_v52  ;;  %v1958_v56 = vpop.f32.mrb[53].mxu1  ;;  %v1999_v59 = vpop.f32.mrb[69].mxu0  ;;  %v1998_v55 = vadd.f32 %v1997_v48, %v3461_v1 }
 0x813   :  { %v1959_v61 = vadd.f32 %v1958_v56, %v4305_v62  ;;  %v2000_v28 = vadd.f32 %v1999_v59, %v3464_v27  ;;  %v1960_v34 = vpop.f32.mrb[54].mxu1  ;;  %v2001_v25 = vpop.f32.mrb[70].mxu0 }
 0x814   :  { %v2045_v9 = vadd.f32 %v1957_v53, %v4394_v11  ;;  %v1961_v23 = vpop.f32.mrb[55].mxu1  ;;  %v2002_v57 = vpop.f32.mrb[71].mxu0 }
 0x815   :  { %v2050_v8 = vadd.f32 %v1959_v61, %v4395_v35  ;;  %v2061_v13 = vadd.f32 %v2000_v28, %v4396_v5  ;;  %v4399_v28 = vld [vmem:[#allocation53_spill] sm:$0xff] }
 0x816   :  { %v2046_v6 = vmul.f32 0.5, %v2045_v9 }
 0x817   :  { %v2062_v60 = vmul.f32 0.5, %v2061_v13  ;;  %v2051_v14 = vmul.f32 0.5, %v2050_v8 }
 0x818   :  { %2820 = vtanh.f32 %v2046_v6 }
 0x819   :  { %2822 = vtanh.f32 %v2062_v60 }
 0x81a   :  { %2824 = vtanh.f32 %v2051_v14 }
 0x822   :  { %v2821_v45 = vpop.eup %2820 }
 0x823   :  { %v2048_v58 = vmul.f32 0.5, %v2821_v45  ;;  %v2823_v63 = vpop.eup %2822 }
 0x824   :  { %v2825_v31 = vpop.eup %2824  ;;  %v2064_v18 = vmul.f32 0.5, %v2823_v63  ;;  %v4400_v63 = vmov 0.0  }
 0x825   :  { %v2049_v15 = vadd.f32 0.5, %v2048_v58  ;;  %v2053_v41 = vmul.f32 0.5, %v2825_v31 }
 0x826   :  { %v2065_v30 = vadd.f32 0.5, %v2064_v18  ;;  %v2339_v18 = vld [vmem:[%s4164_s7] sm:$0xff] }
 0x827   :  { %v2055_v29 = vmul.f32 %v2049_v15, %v1998_v55  ;;  %v2054_v56 = vadd.f32 0.5, %v2053_v41  ;;  %v2257_v55 = vld [vmem:[%s4162_s5 + $0x60] sm:$0xff]  ;;  %v2258_v15 = vld [vmem:[%s4162_s5 + $0x68] sm:$0xff] }
 0x829   :  { %v2056_v37 = vadd.f32 %v2055_v29, %v4397_v4  ;;  %v2620_v29 = vpack.c.bf16 %v2258_v15, %v2257_v55  ;;  %v2259_v4 = vld [vmem:[%s4162_s5 + $0x70] sm:$0xff] }
 0x82b   :  { %2826 = vtanh.f32 %v2056_v37  ;;  %v2260_v37 = vld [vmem:[%s4162_s5 + $0x78] sm:$0xff] }
 0x82c   :  { %v2623_v31 = vpack.c.bf16 %v2260_v37, %v2259_v4 }
 0x831   :  { %v2038_v20 = vpop.f32.mrb[56].mxu1 }
 0x832   :  { %v2039_v22 = vadd.f32 %v2038_v20, %v4331_v0  ;;  %v2040_v24 = vpop.f32.mrb[57].mxu1  ;;  %v2340_v20 = vld [vmem:[%s4164_s7 + $0x8] sm:$0xff] }
 0x833   :  { %v2041_v26 = vadd.f32 %v2040_v24, %v3472_v38  ;;  %v2042_v33 = vpop.f32.mrb[58].mxu1  ;;  %v2626_v41 = vpack.c.bf16 %v2340_v20, %v2339_v18  ;;  %v2341_v20 = vld [vmem:[%s4164_s7 + $0x10] sm:$0xff] }
 0x834   :  { %v2066_v40 = vadd.f32 %v2039_v22, %v4398_v36  ;;  %v2043_v43 = vpop.f32.mrb[59].mxu1 }
 0x835   :  { %v2827_v48 = vpop.eup %2826  ;;  %v2071_v53 = vmul.f32 %v2065_v30, %v2041_v26 }
 0x836   :  { %v2058_v59 = vsub.f32 %v3968_v10, %v2827_v48  ;;  %v2067_v61 = vmul.f32 0.5, %v2066_v40 }
 0x837   :  { %v2072_v34 = vadd.f32 %v2071_v53, %v4399_v28  ;;  %v4401_v53 = vld [vmem:[#allocation45_spill] sm:$0xff]  ;;  %v4402_v28 = vld [vmem:[#allocation47_spill] sm:$0xff] }
 0x838   :  { %v2059_v25 = vmul.f32 %v2058_v59, %v2054_v56  ;;  %2828 = vtanh.f32 %v2067_v61 }
 0x839   :  { %2830 = vtanh.f32 %v2072_v34 }
 0x83a   :  { %v2060_v11 = vadd.f32 %v2827_v48, %v2059_v25  ;;  %v4403_v25 = vld [vmem:[#allocation20_spill] sm:$0xff] }
 0x83c   :  { %v4044_v6 = vsel %vm1226_vm2, %v2060_v11, %v3968_v10  ;;  %v2255_v10 = vld [vmem:[%s4162_s5 + $0x50] sm:$0xff] }
 0x842   :  { %v2829_v9 = vpop.eup %2828 }
 0x843   :  { %v2831_v23 = vpop.eup %2830  ;;  %v2069_v57 = vmul.f32 0.5, %v2829_v9 }
 0x844   :  { %v2074_v35 = vsub.f32 %v3973_v7, %v2831_v23 }
 0x845   :  { %v2070_v8 = vadd.f32 0.5, %v2069_v57 }
 0x847   :  { %v2075_v5 = vmul.f32 %v2074_v35, %v2070_v8 }
 0x849   :  { %v2076_v13 = vadd.f32 %v2831_v23, %v2075_v5  ;;  %v4404_v5 = vld [vmem:[#allocation46_spill] sm:$0xff] }
 0x84b   :  { %v4049_v60 = vsel %vm1222_vm1, %v2076_v13, %v3973_v7  ;;  %v2256_v7 = vld [vmem:[%s4162_s5 + $0x58] sm:$0xff] }
 0x84c   :  { %v2085_v14 = vadd.f32 %v4049_v60, %v4044_v6  ;;  %v2617_v58 = vpack.c.bf16 %v2256_v7, %v2255_v10 }
 0x84e   :  { %v2086_v45 = vpack.c.bf16 %v2085_v14, %v2085_v14 }
 0x850   :  { %2120 = vmatmul.mubr.bf16.vlgmr.msra.gmra.mrb[72].mxu0 %v2086_v45  ;;  %2161 = vmatmul.mubr.bf16.vlgmr.msra.gmra.mrb[60].mxu1 %v2086_v45 }
 0x851   :  { %2170 = vmatpush1.bf16.msra.mxu0 %v3767_v46  ;;  %2201 = vmatprep.mubr.bf16.mxu0 %v4290_v54  ;;  %v2245_v54 = vld [vmem:[%s4162_s5] sm:$0xff]  ;;  %v2246_v46 = vld [vmem:[%s4162_s5 + $0x8] sm:$0xff] }
 0x852   :  { %2171 = vmatprep.subr.bf16.mxu0 %v3771_v12  ;;  %v2602_v12 = vpack.c.bf16 %v2246_v46, %v2245_v54  ;;  %2587 = vmatprep.mubr.msk.f32.mxu1 %vm2922_vm7, %v4400_v63 }
 0x855   :  { %2172 = vmatpush1.bf16.msra.mxu0 %v3777_v3  ;;  %v2921_v3 = vmov 0.0|0.0  }
 0x856   :  { %2173 = vmatprep.subr.bf16.mxu0 %v3780_v2  ;;  %2601 = vmatprep.subr.bf16.mxu1 %v2921_v3  ;;  %v2247_v2 = vld [vmem:[%s4162_s5 + $0x10] sm:$0xff] }
 0x857   :  { %2603 = vmatpush3.bf16.msra.mxu1 %v2602_v12 }
 0x858   :  { %2604 = vmatprep.subr.bf16.mxu1 %v2921_v3 }
 0x859   :  { %2174 = vmatpush1.bf16.msra.mxu0 %v3785_v16  ;;  %v2248_v16 = vld [vmem:[%s4162_s5 + $0x18] sm:$0xff] }
 0x85a   :  { %2175 = vmatprep.subr.bf16.mxu0 %v3788_v17  ;;  %v2605_v17 = vpack.c.bf16 %v2248_v16, %v2247_v2 }
 0x85c   :  { %2606 = vmatpush3.bf16.msra.mxu1 %v2605_v17 }
 0x85d   :  { %2176 = vmatpush1.bf16.msra.mxu0 %v3793_v19  ;;  %2607 = vmatprep.subr.bf16.mxu1 %v2921_v3  ;;  %v2249_v19 = vld [vmem:[%s4162_s5 + $0x20] sm:$0xff] }
 0x85e   :  { %2177 = vmatprep.subr.bf16.mxu0 %v3796_v32  ;;  %v2250_v32 = vld [vmem:[%s4162_s5 + $0x28] sm:$0xff] }
 0x861   :  { %2178 = vmatpush1.bf16.msra.mxu0 %v3801_v50  ;;  %v2608_v50 = vpack.c.bf16 %v2250_v32, %v2249_v19  ;;  %v4405_v32 = vld [vmem:[#allocation50_spill] sm:$0xff] }
 0x862   :  { %2179 = vmatprep.subr.bf16.mxu0 %v3804_v51  ;;  %v2251_v51 = vld [vmem:[%s4162_s5 + $0x30] sm:$0xff] }
 0x863   :  { %2609 = vmatpush3.bf16.msra.mxu1 %v2608_v50 }
 0x864   :  { %2610 = vmatprep.subr.bf16.mxu1 %v2921_v3 }
 0x865   :  { %2180 = vmatpush1.bf16.msra.mxu0 %v3809_v21  ;;  %v2252_v21 = vld [vmem:[%s4162_s5 + $0x38] sm:$0xff] }
 0x866   :  { %2181 = vmatprep.subr.bf16.mxu0 %v3812_v44  ;;  %v2611_v44 = vpack.c.bf16 %v2252_v21, %v2251_v51 }
 0x868   :  { %2612 = vmatpush3.bf16.msra.mxu1 %v2611_v44 }
 0x869   :  { %2182 = vmatpush1.bf16.msra.mxu0 %v3817_v47  ;;  %2613 = vmatprep.subr.bf16.mxu1 %v2921_v3  ;;  %v2253_v47 = vld [vmem:[%s4162_s5 + $0x40] sm:$0xff] }
 0x86a   :  { %2183 = vmatprep.subr.bf16.mxu0 %v3820_v49  ;;  %v2254_v49 = vld [vmem:[%s4162_s5 + $0x48] sm:$0xff] }
 0x86d   :  { %2184 = vmatpush1.bf16.msra.mxu0 %v3825_v42  ;;  %v2614_v42 = vpack.c.bf16 %v2254_v49, %v2253_v47 }
 0x86e   :  { %2625 = vmatprep.subr.bf16.mxu0 %v2921_v3 }
 0x86f   :  { %2615 = vmatpush3.bf16.msra.mxu1 %v2614_v42  ;;  %v4406_v42 = vld [vmem:[#allocation51_spill] sm:$0xff] }
 0x870   :  { %2202 = vmatmul.mubr.bf16.vlgmr.msra.gmra.mrb[76].mxu0 %v2086_v45  ;;  %2616 = vmatprep.subr.bf16.mxu1 %v2921_v3 }
 0x871   :  { %2598 = vmatprep.mubr.msk.f32.mxu0 %vm2922_vm7, %v4400_v63  ;;  %2627 = vmatpush3.bf16.msra.mxu0 %v2626_v41  ;;  %v2342_v41 = vld [vmem:[%s4164_s7 + $0x18] sm:$0xff] }
 0x872   :  { %2628 = vmatprep.subr.bf16.mxu0 %v2921_v3 }
 0x873   :  { %2618 = vmatpush3.bf16.msra.mxu1 %v2617_v58 }
 0x874   :  { %2619 = vmatprep.subr.bf16.mxu1 %v2921_v3 }
 0x877   :  { %2621 = vmatpush3.bf16.msra.mxu1 %v2620_v29 }
 0x878   :  { %2622 = vmatprep.subr.bf16.mxu1 %v2921_v3 }
 0x87b   :  { %2624 = vmatpush3.bf16.msra.mxu1 %v2623_v31 }
 0x923   :  { %v2121_v22 = vpop.f32.mrb[72].mxu0  ;;  %v2162_v24 = vpop.f32.mrb[60].mxu1 }
 0x924   :  { %v2122_v26 = vadd.f32 %v2121_v22, %v4393_v52  ;;  %v2123_v30 = vpop.f32.mrb[73].mxu0  ;;  %v2164_v33 = vpop.f32.mrb[61].mxu1  ;;  %v2629_v22 = vpack.c.bf16 %v2342_v41, %v2341_v20 }
 0x925   :  { %v2124_v36 = vadd.f32 %v2123_v30, %v4305_v62  ;;  %v2165_v40 = vadd.f32 %v2164_v33, %v3464_v27  ;;  %v2125_v43 = vpop.f32.mrb[74].mxu0  ;;  %v2166_v48 = vpop.f32.mrb[62].mxu1  ;;  %v2163_v62 = vadd.f32 %v2162_v24, %v3461_v1  ;;  %v2531_v30 = vld [vmem:[#allocation3] ss:$0 sm:$0xff] }
 0x926   :  { %v2210_v56 = vadd.f32 %v2122_v26, %v4401_v53  ;;  %v2126_v59 = vpop.f32.mrb[75].mxu0  ;;  %v2167_v61 = vpop.f32.mrb[63].mxu1  ;;  %2630 = vmatpush3.bf16.msra.mxu0 %v2629_v22 }
 0x927   :  { %v2215_v34 = vadd.f32 %v2124_v36, %v4402_v28  ;;  %v2226_v11 = vadd.f32 %v2165_v40, %v4403_v25 }
 0x928   :  { %v2211_v9 = vmul.f32 0.5, %v2210_v56 }
 0x929   :  { %v2227_v23 = vmul.f32 0.5, %v2226_v11  ;;  %v2216_v52 = vmul.f32 0.5, %v2215_v34 }
 0x92a   :  { %2832 = vtanh.f32 %v2211_v9 }
 0x92b   :  { %2834 = vtanh.f32 %v2227_v23 }
 0x92c   :  { %2836 = vtanh.f32 %v2216_v52 }
 0x934   :  { %v2833_v57 = vpop.eup %2832 }
 0x935   :  { %v2213_v35 = vmul.f32 0.5, %v2833_v57  ;;  %v2835_v14 = vpop.eup %2834 }
 0x936   :  { %v2837_v45 = vpop.eup %2836  ;;  %v2229_v54 = vmul.f32 0.5, %v2835_v14 }
 0x937   :  { %v2214_v27 = vadd.f32 0.5, %v2213_v35  ;;  %v2218_v12 = vmul.f32 0.5, %v2837_v45 }
 0x938   :  { %v2230_v17 = vadd.f32 0.5, %v2229_v54 }
 0x939   :  { %v2220_v8 = vmul.f32 %v2214_v27, %v2163_v62  ;;  %v2219_v44 = vadd.f32 0.5, %v2218_v12 }
 0x93b   :  { %v2221_v13 = vadd.f32 %v2220_v8, %v4404_v5 }
 0x93d   :  { %2838 = vtanh.f32 %v2221_v13 }
 0x943   :  { %v2203_v46 = vpop.f32.mrb[76].mxu0 }
 0x944   :  { %v2204_v3 = vadd.f32 %v2203_v46, %v4331_v0  ;;  %v2205_v2 = vpop.f32.mrb[77].mxu0 }
 0x945   :  { %v2206_v16 = vadd.f32 %v2205_v2, %v3472_v38  ;;  %v2207_v19 = vpop.f32.mrb[78].mxu0 }
 0x946   :  { %v2231_v1 = vadd.f32 %v2204_v3, %v4405_v32  ;;  %v2208_v50 = vpop.f32.mrb[79].mxu0 }
 0x947   :  { %v2839_v51 = vpop.eup %2838  ;;  %v2236_v21 = vmul.f32 %v2230_v17, %v2206_v16 }
 0x948   :  { %v2223_v47 = vsub.f32 %v4044_v6, %v2839_v51  ;;  %v2232_v49 = vmul.f32 0.5, %v2231_v1 }
 0x949   :  { %v2237_v10 = vadd.f32 %v2236_v21, %v4406_v42 }
 0x94a   :  { %v2224_v7 = vmul.f32 %v2223_v47, %v2219_v44  ;;  %2840 = vtanh.f32 %v2232_v49 }
 0x94b   :  { %2842 = vtanh.f32 %v2237_v10 }
 0x94c   :  { %v2225_v0 = vadd.f32 %v2839_v51, %v2224_v7 }
 0x94e   :  { %v2242_v63 = vsel %vm1049_vm0, %v2225_v0, %v4044_v6  ;;  %v2530_v6 = vld [vmem:[%s4163_s6] ss:$0 sm:$0xff] }
 0x954   :  { %v2841_v58 = vpop.eup %2840 }
 0x955   :  { %v2843_v55 = vpop.eup %2842  ;;  %v2234_v38 = vmul.f32 0.5, %v2841_v58 }
 0x956   :  { %v2239_v15 = vsub.f32 %v4049_v60, %v2843_v55 }
 0x957   :  { %v2235_v29 = vadd.f32 0.5, %v2234_v38 }
 0x959   :  { %v2240_v4 = vmul.f32 %v2239_v15, %v2235_v29 }
 0x95b   :  { %v2241_v37 = vadd.f32 %v2843_v55, %v2240_v4 }
 0x95d   :  { %v2243_v31 = vsel %vm1045_vm15, %v2241_v37, %v4049_v60 }
 0x95e   :  { %v2244_v18 = vadd.f32 %v2243_v31, %v2242_v63 }
 0x960   :  { %2588 = vmatmul.mubr.f32.vlgmr.msra.gmra.mrb[64].mxu1 %v2244_v18 }
 0xa33   :  { %v2334_v24 = vpop.f32.mrb[64].mxu1 }
 0xa34   :  { %v2335_v26 = vadd.f32 %v2530_v6, %v2334_v24  ;;  %v2589_v39 = vpop.f32.mrb[65].mxu1 }
 0xa36   :  { %v2338_v60 = vmax.f32 %v2335_v26, 0.0 }
 0xa38   :  { %2599 = vmatmul.mubr.msk.f32.vlgmr.msra.gmra.mrb[80].mxu0 %vm2350_vm8, %v2338_v60 }
 0xb0b   :  { %v2420_v33 = vpop.f32.mrb[80].mxu0 }
 0xb0c   :  { %v2421_v36 = vadd.f32 %v2531_v30, %v2420_v33  ;;  %v2600_v40 = vpop.f32.mrb[81].mxu0 }
 0xb0e   :  { %2425 = vst.msk [vmem:[%s4166_s9] sm:$0xf] %vm2424_vm9, %v2421_v36 }
 0xb0f   :  { %2430 = vsyncpa [#allocation5], 1 }

</bundles_post_ra>
